<compile_context>
chip_gen: v7x
topology: tpu7x:2x2x1
jax: 0.10.0
libtpu: 0.0.40
codegen_flags: <defaults>
</compile_context>

<pallas_src>
import functools

import jax
import jax.numpy as jnp
from jax.experimental import pallas as pl
from jax.experimental.pallas import tpu as pltpu

LIN = 64  # output channels of linear5..linear2 (fixed by the architecture)


# ----------------------------- helper (specs) -------------------------------

def _full_spec(a):
    nd = a.ndim
    return pl.BlockSpec(a.shape, lambda i, _nd=nd: (0,) * _nd)


# --------------------------- Pallas kernel: stage 1 --------------------------

def _stage1_kernel(o5_ref, o4_ref, o3_ref, o2_ref,
                   w5_ref, b5_ref, w4_ref, b4_ref,
                   w3_ref, b3_ref, w2_ref, b2_ref,
                   r5_ref, r4_ref, p5_ref, p4_ref, p3_ref, p2_ref,
                   pw_ref, pb_ref,
                   s1w_ref, s1b_ref, s2w_ref, s2b_ref,
                   s3w_ref, s3b_ref, s4w_ref, s4b_ref,
                   pout_ref, route_ref):
    dot = lambda a, b: jnp.dot(a, b, preferred_element_type=jnp.float32)

    # linear5..linear2: 1x1 conv + folded BN + ReLU (channels-last matmuls)
    f5 = jnp.maximum(dot(o5_ref[...], w5_ref[...]) + b5_ref[...], 0.0)
    f4 = jnp.maximum(dot(o4_ref[...], w4_ref[...]) + b4_ref[...], 0.0)
    f3 = jnp.maximum(dot(o3_ref[...], w3_ref[...]) + b3_ref[...], 0.0)
    f2 = jnp.maximum(dot(o2_ref[...], w2_ref[...]) + b2_ref[...], 0.0)

    # bilinear(align_corners=True) resize of f5/f4 to the f3 grid via
    # block-diagonal interpolation matrices (one matmul per feature map)
    f5_3 = dot(r5_ref[...], f5)
    f4_3 = dot(r4_ref[...], f4)
    m45 = f4_3 * f5_3
    m345 = f3 * m45

    # predict + featconv merged over the shared predfeat LHS; the lane-concat
    # of predfeat is rewritten as a sum of three 64-row weight-block matmuls.
    pout_ref[...] = (dot(f5_3, pw_ref[0:LIN, :])
                     + dot(m45, pw_ref[LIN:2 * LIN, :])
                     + dot(m345, pw_ref[2 * LIN:3 * LIN, :])
                     + pb_ref[...])

    # adaptive_avg_pool2d(., 1) per batch via block-diagonal pooling matrices
    avg5 = dot(p5_ref[...], f5)
    avg4 = dot(p4_ref[...], f4)
    avg3 = dot(p3_ref[...], f3)
    avg2 = dot(p2_ref[...], f2)

    # switch1 MLP (Dropout = identity in eval); poolfeat concat -> 4 matmuls
    h = (dot(avg5, s1w_ref[0:LIN, :])
         + dot(avg4, s1w_ref[LIN:2 * LIN, :])
         + dot(avg3, s1w_ref[2 * LIN:3 * LIN, :])
         + dot(avg2, s1w_ref[3 * LIN:4 * LIN, :]) + s1b_ref[...])
    h = dot(h, s2w_ref[...]) + s2b_ref[...]
    h = dot(h, s3w_ref[...]) + s3b_ref[...]
    route_ref[...] = dot(h, s4w_ref[...]) + s4b_ref[...]


def stage1(o5_2d, o4_2d, o3_2d, o2_2d, p, r5bd, r4bd, p5m, p4m, p3m, p2m,
           B, H3W3, mask_dim, cls_attributes):
    pw = jnp.concatenate([p["pred_w"], p["featconv_w"]], axis=1)      # (192, 1+Dm)
    pb = jnp.concatenate([p["pred_b"], p["featconv_b"]], axis=0).reshape(1, -1)
    operands = [
        o5_2d, o4_2d, o3_2d, o2_2d,
        p["lin5_w"], p["lin5_b"].reshape(1, -1),
        p["lin4_w"], p["lin4_b"].reshape(1, -1),
        p["lin3_w"], p["lin3_b"].reshape(1, -1),
        p["lin2_w"], p["lin2_b"].reshape(1, -1),
        r5bd, r4bd, p5m, p4m, p3m, p2m,
        pw, pb,
        p["sw1_w"], p["sw1_b"].reshape(1, -1),
        p["sw2_w"], p["sw2_b"].reshape(1, -1),
        p["sw3_w"], p["sw3_b"].reshape(1, -1),
        p["sw4_w"], p["sw4_b"].reshape(1, -1),
    ]
    operands = [a.astype(jnp.float32) for a in operands]
    out_shape = (jax.ShapeDtypeStruct((B * H3W3, 1 + mask_dim), jnp.float32),
                 jax.ShapeDtypeStruct((B, cls_attributes), jnp.float32))
    out_specs = (pl.BlockSpec((B * H3W3, 1 + mask_dim), lambda i: (0, 0)),
                 pl.BlockSpec((B, cls_attributes), lambda i: (0, 0)))
    return pl.pallas_call(
        _stage1_kernel,
        out_shape=out_shape,
        grid=(1,),
        in_specs=[_full_spec(a) for a in operands],
        out_specs=out_specs,
        compiler_params=pltpu.CompilerParams(
            dimension_semantics=("arbitrary",)),
    )(*operands)


# --------------------------- Pallas kernel: stage 2 --------------------------

def _stage2_kernel(cls_ref, fc1w_ref, fc1b_ref, fc2w_ref, fc2b_ref,
                   seg_ref, clsp_ref, rhw_ref, mcs_ref, fuse_ref,
                   *, S, N, C, pad_nc, tau):
    dot = lambda a, b: jnp.dot(a, b, preferred_element_type=jnp.float32)

    # fc1 -> LeakyReLU(0.2) -> fc2 on the route-scaled samples (rows S-major,
    # each S block zero-padded to pad_nc=8 rows; padded rows are discarded).
    x = cls_ref[0]                                                # (S*pad_nc, Dm*A)
    h = dot(x, fc1w_ref[...]) + fc1b_ref[...]
    h = jnp.where(h >= 0.0, h, 0.2 * h)
    cls = dot(h, fc2w_ref[...]) + fc2b_ref[...]                   # (S*pad_nc, Dm)
    nrm = jnp.sqrt(jnp.sum(cls * cls, axis=-1, keepdims=True))
    cls = cls / jnp.maximum(nrm, 1e-12)                           # L2 over D

    # seg bilinear(align_corners) upsample IN-KERNEL: (Dm,H3W3)@(H3W3,HW)
    segt = dot(seg_ref[0], rhw_ref[...])                          # (Dm, HW)
    # feat_norm LayerNorm over D followed by L2-normalize over D collapse to a
    # single per-column scale  xc * rsqrt(sum(xc*xc)); applied post-matmul.
    mu = jnp.mean(segt, axis=0, keepdims=True)
    xc = segt - mu
    ss = jnp.sum(xc * xc, axis=0, keepdims=True)
    scale = jax.lax.rsqrt(jnp.maximum(ss, 1e-24))                 # (1, HW)

    # similarity: bf16 operands, f32 MXU accumulate; scale applied to the
    # (S*pad_nc, HW) result (fewer rows than scaling the (Dm, HW) tile).
    sim = jnp.dot(cls.astype(jnp.bfloat16), xc.astype(jnp.bfloat16),
                  preferred_element_type=jnp.float32) * scale     # (S*pad_nc, HW)

    # max over S: tile-aligned 8-row slices (padded rows are ignored below)
    acc = sim[0:pad_nc]
    for s in range(1, S):
        acc = jnp.maximum(acc, sim[s * pad_nc:(s + 1) * pad_nc])

    # mask_norm (LayerNorm over C) + exp(x/tau) softmax over C + mean over N
    inv_tau = 1.0 / tau
    prob = None
    for n in range(N):
        blk = acc[n * C:(n + 1) * C]                              # (C, HW)
        m = jnp.mean(blk, axis=0, keepdims=True)
        d = blk - m
        v = jnp.mean(d * d, axis=0, keepdims=True)
        ln = d * jax.lax.rsqrt(v + 1e-5)
        num = jnp.exp(ln * inv_tau)
        den = jnp.sum(num, axis=0, keepdims=True)
        term = num * pl.reciprocal(den, approx=True)
        prob = term if prob is None else prob + term
    prob = prob * (1.0 / N)
    mcs_ref[0] = prob                                             # (C, HW)

    # cls branch: upsample + sigmoid, then fuse_mode == 'avg'
    cbig = dot(clsp_ref[0], rhw_ref[...])                         # (1, HW)
    cprob = jax.nn.sigmoid(cbig)
    fuse_ref[0] = (prob[1:2] + cprob) * 0.5


def stage2(cls_in, seg_cm, clsp_cm, rhw_t, p, *, S, N, C, pad_nc, tau, HW):
    B = cls_in.shape[0]
    DA = cls_in.shape[-1]
    Dm = p["fc2_w"].shape[1]
    H3W3 = rhw_t.shape[0]
    operands = [cls_in,
                p["fc1_w"], p["fc1_b"].reshape(1, -1),
                p["fc2_w"], p["fc2_b"].reshape(1, -1),
                seg_cm, clsp_cm, rhw_t]
    operands = [a.astype(jnp.float32) for a in operands]
    in_specs = [
        pl.BlockSpec((1, S * pad_nc, DA), lambda b: (b, 0, 0)),
        pl.BlockSpec(p["fc1_w"].shape, lambda b: (0, 0)),
        pl.BlockSpec((1, Dm), lambda b: (0, 0)),
        pl.BlockSpec(p["fc2_w"].shape, lambda b: (0, 0)),
        pl.BlockSpec((1, Dm), lambda b: (0, 0)),
        pl.BlockSpec((1, Dm, H3W3), lambda b: (b, 0, 0)),
        pl.BlockSpec((1, 1, H3W3), lambda b: (b, 0, 0)),
        pl.BlockSpec(rhw_t.shape, lambda b: (0, 0)),
    ]
    out_shape = (jax.ShapeDtypeStruct((B, C, HW), jnp.float32),
                 jax.ShapeDtypeStruct((B, 1, HW), jnp.float32))
    out_specs = (pl.BlockSpec((1, C, HW), lambda b: (b, 0, 0)),
                 pl.BlockSpec((1, 1, HW), lambda b: (b, 0, 0)))
    return pl.pallas_call(
        functools.partial(_stage2_kernel, S=S, N=N, C=C, pad_nc=pad_nc, tau=tau),
        out_shape=out_shape,
        grid=(B,),
        in_specs=in_specs,
        out_specs=out_specs,
        compiler_params=pltpu.CompilerParams(
            dimension_semantics=("parallel",)),
    )(*operands)


# ------------------------------- JAX glue -----------------------------------

def _interp_matrix(inn, out):
    """Static bilinear (align_corners=True) interpolation matrix (out, inn)."""
    if inn == 1 or out == 1:
        src = jnp.zeros((out,), jnp.float32)
    else:
        src = jnp.arange(out, dtype=jnp.float32) * (inn - 1) / (out - 1)
    i0 = jnp.clip(jnp.floor(src).astype(jnp.int32), 0, inn - 1)
    i1 = jnp.clip(i0 + 1, 0, inn - 1)
    w = src - i0.astype(jnp.float32)
    return ((1.0 - w)[:, None] * jax.nn.one_hot(i0, inn, dtype=jnp.float32)
            + w[:, None] * jax.nn.one_hot(i1, inn, dtype=jnp.float32))


def _resize_matrix(hi, wi, ho, wo):
    """Combined (ho*wo, hi*wi) bilinear(align_corners) interpolation matrix."""
    ry = _interp_matrix(hi, ho)   # (ho, hi)
    rx = _interp_matrix(wi, wo)   # (wo, wi)
    return jnp.einsum("hy,wx->hwyx", ry, rx).reshape(ho * wo, hi * wi)


# --------------------------------- model ------------------------------------

class Args:
    backbone = "pvt"
    mask_dim = 16
    num_classes = 2
    cls_attributes = 4
    num_queries = 3     # S dimension of the decoder embeddings
    sample_num = 2      # N
    topk = 2
    tau = 0.1
    fuse_mode = "avg"
    dec_layers = 1
    shareW = True
    snapshot = None
    patchsize = 32


def kaiming(key, fan_in, fan_out):
    # kaiming_normal_(mode='fan_in', nonlinearity='relu'); stored as (in, out)
    return jax.random.normal(key, (fan_in, fan_out), jnp.float32) * jnp.sqrt(2.0 / fan_in)


def init_params(key, args):
    ks = jax.random.split(key, 16)
    # eval-mode BatchNorm folded into the 1x1 conv: gamma=1, beta=0,
    # running_mean=0, running_var=1  =>  scale = 1/sqrt(1+eps), bias = 0
    bn_scale = 1.0 / jnp.sqrt(1.0 + 1e-5)
    md, A = args.mask_dim, args.cls_attributes
    p = {
        "lin5_w": kaiming(ks[0], 512, LIN) * bn_scale, "lin5_b": jnp.zeros((LIN,)),
        "lin4_w": kaiming(ks[1], 320, LIN) * bn_scale, "lin4_b": jnp.zeros((LIN,)),
        "lin3_w": kaiming(ks[2], 128, LIN) * bn_scale, "lin3_b": jnp.zeros((LIN,)),
        "lin2_w": kaiming(ks[3], 64, LIN) * bn_scale, "lin2_b": jnp.zeros((LIN,)),
        "pred_w": kaiming(ks[4], LIN * 3, 1), "pred_b": jnp.zeros((1,)),
        "featconv_w": kaiming(ks[5], LIN * 3, md), "featconv_b": jnp.zeros((md,)),
        "sw1_w": kaiming(ks[6], LIN * 4, 128), "sw1_b": jnp.zeros((128,)),
        "sw2_w": kaiming(ks[7], 128, 64), "sw2_b": jnp.zeros((64,)),
        "sw3_w": kaiming(ks[8], 64, 32), "sw3_b": jnp.zeros((32,)),
        "sw4_w": kaiming(ks[9], 32, A), "sw4_b": jnp.zeros((A,)),
        # fc1 acts on the (Dm, A)-flattened vector (d*A + a ordering, matching
        # torch.flatten(start_dim=4)); random kaiming init with fan_in = A*Dm.
        "fc1_w": kaiming(ks[10], A * md, md), "fc1_b": jnp.zeros((md,)),
        "fc2_w": kaiming(ks[11], md, md), "fc2_b": jnp.zeros((md,)),
    }
    return p


def model_forward(params, args, img, out2, out3, out4, out5,
                  mean_embed, var_embed, eps_noise):
    returndict = {}
    B = img.shape[0]
    Himg, Wimg = img.shape[2], img.shape[3]
    H5, W5 = out5.shape[2], out5.shape[3]
    H4, W4 = out4.shape[2], out4.shape[3]
    H3, W3 = out3.shape[2], out3.shape[3]
    H2, W2 = out2.shape[2], out2.shape[3]
    H3W3 = H3 * W3
    HW = Himg * Wimg
    Dm, A, C, S, N = (args.mask_dim, args.cls_attributes, args.num_classes,
                      args.num_queries, args.sample_num)

    # one-time NCHW -> channels-last 2D flattening of the (tiny) feature maps
    def to2d(x):
        b, c, h, w = x.shape
        return jnp.transpose(x, (0, 2, 3, 1)).reshape(b * h * w, c)
    o5_2d, o4_2d, o3_2d, o2_2d = to2d(out5), to2d(out4), to2d(out3), to2d(out2)

    # static resize / pooling matrices (block-diagonal over batch)
    eyeB = jnp.eye(B, dtype=jnp.float32)
    r5bd = jnp.kron(eyeB, _resize_matrix(H5, W5, H3, W3))
    r4bd = jnp.kron(eyeB, _resize_matrix(H4, W4, H3, W3))

    def poolmat(hw):
        return jnp.kron(eyeB, jnp.full((1, hw), 1.0 / hw, jnp.float32))
    p5m, p4m, p3m, p2m = (poolmat(H5 * W5), poolmat(H4 * W4),
                          poolmat(H3 * W3), poolmat(H2 * W2))

    # ---- stage 1: convs + resizes + pred/featconv + pools + switch MLP ----
    pout, route_value = stage1(o5_2d, o4_2d, o3_2d, o2_2d, params,
                               r5bd, r4bd, p5m, p4m, p3m, p2m,
                               B, H3W3, Dm, A)
    pout3 = pout.reshape(B, H3W3, 1 + Dm)
    cls_pred_flat = pout3[:, :, 0]                               # (B, H3W3)
    returndict["cls_prob"] = cls_pred_flat.reshape(B, 1, H3, W3)

    # TODO(synk): erosion_to_dilate (cv2 erode/dilate on CPU) and the external
    # MultiScaleMaskedTransformerDecoder have no Pallas equivalent; the
    # decoder outputs mean_embed/var_embed are provided as inputs instead.
    returndict["att_m"] = mean_embed
    returndict["att_v"] = var_embed

    # routing: top-k mask + softmax over selected logits (tiny, stays in XLA)
    _, topk_indices = jax.lax.top_k(route_value, args.topk)
    topk_mask = jnp.sum(jax.nn.one_hot(topk_indices, A, dtype=jnp.float32),
                        axis=-2)
    returndict["topk_indices"] = topk_indices
    returndict["topk_mask"] = topk_mask
    topk_route_value = topk_mask * route_value
    # NOTE: matches the PyTorch reference exactly (zero-valued entries -> -inf,
    # including a selected logit that is exactly 0.0).
    route_prob = jnp.where(topk_route_value == 0.0, -jnp.inf, topk_route_value)
    route_prob = jax.nn.softmax(route_prob, axis=-1)
    returndict["route_prob"] = route_prob

    # reparameterized samples
    samples = mean_embed[None] + var_embed[None] * eps_noise     # (N,B,Dm,C,S,A)
    samples = jnp.transpose(samples, (1, 0, 2, 3, 4, 5))         # (B,N,Dm,C,S,A)
    returndict["samples"] = samples
    sample = jnp.transpose(samples, (0, 1, 3, 4, 2, 5))          # (B,N,C,S,Dm,A)
    sample = sample * route_prob[:, None, None, None, None, :]

    # rows reordered S-major and padded to 8-row groups so the in-kernel
    # max-over-S uses sublane-tile-aligned slices (padded rows are discarded)
    NC = N * C
    pad_nc = -(-NC // 8) * 8
    flat = sample.reshape(B, N, C, S, Dm * A)
    flat = jnp.transpose(flat, (0, 3, 1, 2, 4)).reshape(B, S, NC, Dm * A)
    if pad_nc > NC:
        flat = jnp.pad(flat, ((0, 0), (0, 0), (0, pad_nc - NC), (0, 0)))
    cls_in = flat.reshape(B, S * pad_nc, Dm * A)

    seg_cm = jnp.transpose(pout3[:, :, 1:], (0, 2, 1))           # (B, Dm, H3W3)
    clsp_cm = cls_pred_flat[:, None, :]                          # (B, 1, H3W3)
    rhw_t = _resize_matrix(H3, W3, Himg, Wimg).T                 # (H3W3, HW)

    # ---- stage 2: fc MLP + upsample + similarity + softmax epilogue + fuse ----
    mcs, fuse = stage2(cls_in, seg_cm, clsp_cm, rhw_t, params,
                       S=S, N=N, C=C, pad_nc=pad_nc, tau=args.tau, HW=HW)
    returndict["mcs_prob"] = mcs.reshape(B, C, Himg, Wimg)
    # fuse_mode == 'avg' (only mode implemented, matching Args.fuse_mode)
    returndict["fuse_prob"] = fuse.reshape(B, 1, Himg, Wimg)
    return returndict


# ---------------------------------- main -------------------------------------

if __name__ == "__main__":
    args = Args()
    key = jax.random.PRNGKey(0)
    keys = jax.random.split(key, 10)

    B, Himg, Wimg = 2, 32, 32
    img = jax.random.normal(keys[0], (B, 3, Himg, Wimg), jnp.float32)

    # synthetic pvt-style backbone feature maps at strides 4 / 8 / 16 / 32
    out2 = jax.random.normal(keys[1], (B, 64, 8, 8), jnp.float32)
    out3 = jax.random.normal(keys[2], (B, 128, 4, 4), jnp.float32)
    out4 = jax.random.normal(keys[3], (B, 320, 2, 2), jnp.float32)
    out5 = jax.random.normal(keys[4], (B, 512, 1, 1), jnp.float32)

    S = args.num_queries
    emb_shape = (B, args.mask_dim, args.num_classes, S, args.cls_attributes)
    mean_embed = jax.random.normal(keys[5], emb_shape, jnp.float32)
    var_embed = jax.nn.softplus(jax.random.normal(keys[6], emb_shape, jnp.float32))
    eps_noise = jax.random.normal(keys[7], (args.sample_num,) + emb_shape,
                                  jnp.float32)

    params = init_params(keys[8], args)

    fwd = jax.jit(lambda p, *xs: model_forward(p, args, *xs))
    out = fwd(params, img, out2, out3, out4, out5,
              mean_embed, var_embed, eps_noise)
    jax.block_until_ready(out)

    assert out["fuse_prob"].shape == (B, 1, Himg, Wimg)
    assert out["mcs_prob"].shape == (B, args.num_classes, Himg, Wimg)
    assert out["cls_prob"].shape == (B, 1, 4, 4)
    assert out["route_prob"].shape == (B, args.cls_attributes)
    print("KERNEL_OK")
</pallas_src>

<mosaic_0001>
module attributes {stable_mosaic.version = 11 : i64} {
  func.func @_stage1_kernel(%arg0: i32, %arg1: memref<2x512xf32, #tpu.memory_space<vmem>>, %arg2: memref<8x320xf32, #tpu.memory_space<vmem>>, %arg3: memref<32x128xf32, #tpu.memory_space<vmem>>, %arg4: memref<128x64xf32, #tpu.memory_space<vmem>>, %arg5: memref<512x64xf32, #tpu.memory_space<vmem>>, %arg6: memref<1x64xf32, #tpu.memory_space<vmem>>, %arg7: memref<320x64xf32, #tpu.memory_space<vmem>>, %arg8: memref<1x64xf32, #tpu.memory_space<vmem>>, %arg9: memref<128x64xf32, #tpu.memory_space<vmem>>, %arg10: memref<1x64xf32, #tpu.memory_space<vmem>>, %arg11: memref<64x64xf32, #tpu.memory_space<vmem>>, %arg12: memref<1x64xf32, #tpu.memory_space<vmem>>, %arg13: memref<32x2xf32, #tpu.memory_space<vmem>>, %arg14: memref<32x8xf32, #tpu.memory_space<vmem>>, %arg15: memref<2x2xf32, #tpu.memory_space<vmem>>, %arg16: memref<2x8xf32, #tpu.memory_space<vmem>>, %arg17: memref<2x32xf32, #tpu.memory_space<vmem>>, %arg18: memref<2x128xf32, #tpu.memory_space<vmem>>, %arg19: memref<192x17xf32, #tpu.memory_space<vmem>>, %arg20: memref<1x17xf32, #tpu.memory_space<vmem>>, %arg21: memref<256x128xf32, #tpu.memory_space<vmem>>, %arg22: memref<1x128xf32, #tpu.memory_space<vmem>>, %arg23: memref<128x64xf32, #tpu.memory_space<vmem>>, %arg24: memref<1x64xf32, #tpu.memory_space<vmem>>, %arg25: memref<64x32xf32, #tpu.memory_space<vmem>>, %arg26: memref<1x32xf32, #tpu.memory_space<vmem>>, %arg27: memref<32x4xf32, #tpu.memory_space<vmem>>, %arg28: memref<1x4xf32, #tpu.memory_space<vmem>>, %arg29: memref<32x17xf32, #tpu.memory_space<vmem>>, %arg30: memref<2x4xf32, #tpu.memory_space<vmem>>) attributes {dimension_semantics = [#tpu.dimension_semantics<arbitrary>], iteration_bounds = array<i64: 1>, scalar_prefetch = 0 : i64, scratch_operands = 0 : i64, tpu.core_type = #tpu.core_type<tc>, window_params = [{pipeline_mode = #tpu.pipeline_mode<synchronous>, transform_indices = @transform_0, window_bounds = array<i64: 2, 512>}, {pipeline_mode = #tpu.pipeline_mode<synchronous>, transform_indices = @transform_1, window_bounds = array<i64: 8, 320>}, {pipeline_mode = #tpu.pipeline_mode<synchronous>, transform_indices = @transform_2, window_bounds = array<i64: 32, 128>}, {pipeline_mode = #tpu.pipeline_mode<synchronous>, transform_indices = @transform_3, window_bounds = array<i64: 128, 64>}, {pipeline_mode = #tpu.pipeline_mode<synchronous>, transform_indices = @transform_4, window_bounds = array<i64: 512, 64>}, {pipeline_mode = #tpu.pipeline_mode<synchronous>, transform_indices = @transform_5, window_bounds = array<i64: 1, 64>}, {pipeline_mode = #tpu.pipeline_mode<synchronous>, transform_indices = @transform_6, window_bounds = array<i64: 320, 64>}, {pipeline_mode = #tpu.pipeline_mode<synchronous>, transform_indices = @transform_7, window_bounds = array<i64: 1, 64>}, {pipeline_mode = #tpu.pipeline_mode<synchronous>, transform_indices = @transform_8, window_bounds = array<i64: 128, 64>}, {pipeline_mode = #tpu.pipeline_mode<synchronous>, transform_indices = @transform_9, window_bounds = array<i64: 1, 64>}, {pipeline_mode = #tpu.pipeline_mode<synchronous>, transform_indices = @transform_10, window_bounds = array<i64: 64, 64>}, {pipeline_mode = #tpu.pipeline_mode<synchronous>, transform_indices = @transform_11, window_bounds = array<i64: 1, 64>}, {pipeline_mode = #tpu.pipeline_mode<synchronous>, transform_indices = @transform_12, window_bounds = array<i64: 32, 2>}, {pipeline_mode = #tpu.pipeline_mode<synchronous>, transform_indices = @transform_13, window_bounds = array<i64: 32, 8>}, {pipeline_mode = #tpu.pipeline_mode<synchronous>, transform_indices = @transform_14, window_bounds = array<i64: 2, 2>}, {pipeline_mode = #tpu.pipeline_mode<synchronous>, transform_indices = @transform_15, window_bounds = array<i64: 2, 8>}, {pipeline_mode = #tpu.pipeline_mode<synchronous>, transform_indices = @transform_16, window_bounds = array<i64: 2, 32>}, {pipeline_mode = #tpu.pipeline_mode<synchronous>, transform_indices = @transform_17, window_bounds = array<i64: 2, 128>}, {pipeline_mode = #tpu.pipeline_mode<synchronous>, transform_indices = @transform_18, window_bounds = array<i64: 192, 17>}, {pipeline_mode = #tpu.pipeline_mode<synchronous>, transform_indices = @transform_19, window_bounds = array<i64: 1, 17>}, {pipeline_mode = #tpu.pipeline_mode<synchronous>, transform_indices = @transform_20, window_bounds = array<i64: 256, 128>}, {pipeline_mode = #tpu.pipeline_mode<synchronous>, transform_indices = @transform_21, window_bounds = array<i64: 1, 128>}, {pipeline_mode = #tpu.pipeline_mode<synchronous>, transform_indices = @transform_22, window_bounds = array<i64: 128, 64>}, {pipeline_mode = #tpu.pipeline_mode<synchronous>, transform_indices = @transform_23, window_bounds = array<i64: 1, 64>}, {pipeline_mode = #tpu.pipeline_mode<synchronous>, transform_indices = @transform_24, window_bounds = array<i64: 64, 32>}, {pipeline_mode = #tpu.pipeline_mode<synchronous>, transform_indices = @transform_25, window_bounds = array<i64: 1, 32>}, {pipeline_mode = #tpu.pipeline_mode<synchronous>, transform_indices = @transform_26, window_bounds = array<i64: 32, 4>}, {pipeline_mode = #tpu.pipeline_mode<synchronous>, transform_indices = @transform_27, window_bounds = array<i64: 1, 4>}, {pipeline_mode = #tpu.pipeline_mode<synchronous>, transform_indices = @transform_28, window_bounds = array<i64: 32, 17>}, {pipeline_mode = #tpu.pipeline_mode<synchronous>, transform_indices = @transform_29, window_bounds = array<i64: 2, 4>}]} {
    %c0 = arith.constant 0 : index
    %c0_0 = arith.constant 0 : index
    %0 = vector.load %arg1[%c0, %c0_0] : memref<2x512xf32, #tpu.memory_space<vmem>>, vector<2x512xf32>
    %c0_1 = arith.constant 0 : index
    %c0_2 = arith.constant 0 : index
    %1 = vector.load %arg5[%c0_1, %c0_2] : memref<512x64xf32, #tpu.memory_space<vmem>>, vector<512x64xf32>
    %cst = arith.constant dense<0.000000e+00> : vector<2x64xf32>
    %2 = tpu.matmul %0, %1, %cst {dimension_numbers = #tpu.dot_dimension_numbers<[1], [0], [0], [1], [0, 0, 1, 1], [], []>} : vector<2x512xf32>, vector<512x64xf32>, vector<2x64xf32> -> vector<2x64xf32>
    %c0_3 = arith.constant 0 : index
    %c0_4 = arith.constant 0 : index
    %3 = vector.load %arg6[%c0_3, %c0_4] : memref<1x64xf32, #tpu.memory_space<vmem>>, vector<1x64xf32>
    %4 = vector.broadcast %3 : vector<1x64xf32> to vector<2x64xf32>
    %5 = arith.addf %2, %4 : vector<2x64xf32>
    %cst_5 = arith.constant 0.000000e+00 : f32
    %6 = vector.broadcast %cst_5 : f32 to vector<2x64xf32>
    %7 = arith.maximumf %5, %6 : vector<2x64xf32>
    %c0_6 = arith.constant 0 : index
    %c0_7 = arith.constant 0 : index
    %8 = vector.load %arg2[%c0_6, %c0_7] : memref<8x320xf32, #tpu.memory_space<vmem>>, vector<8x320xf32>
    %c0_8 = arith.constant 0 : index
    %c0_9 = arith.constant 0 : index
    %9 = vector.load %arg7[%c0_8, %c0_9] : memref<320x64xf32, #tpu.memory_space<vmem>>, vector<320x64xf32>
    %cst_10 = arith.constant dense<0.000000e+00> : vector<8x64xf32>
    %10 = tpu.matmul %8, %9, %cst_10 {dimension_numbers = #tpu.dot_dimension_numbers<[1], [0], [0], [1], [0, 0, 1, 1], [], []>} : vector<8x320xf32>, vector<320x64xf32>, vector<8x64xf32> -> vector<8x64xf32>
    %c0_11 = arith.constant 0 : index
    %c0_12 = arith.constant 0 : index
    %11 = vector.load %arg8[%c0_11, %c0_12] : memref<1x64xf32, #tpu.memory_space<vmem>>, vector<1x64xf32>
    %12 = vector.broadcast %11 : vector<1x64xf32> to vector<8x64xf32>
    %13 = arith.addf %10, %12 : vector<8x64xf32>
    %cst_13 = arith.constant 0.000000e+00 : f32
    %14 = vector.broadcast %cst_13 : f32 to vector<8x64xf32>
    %15 = arith.maximumf %13, %14 : vector<8x64xf32>
    %c0_14 = arith.constant 0 : index
    %c0_15 = arith.constant 0 : index
    %16 = vector.load %arg3[%c0_14, %c0_15] : memref<32x128xf32, #tpu.memory_space<vmem>>, vector<32x128xf32>
    %c0_16 = arith.constant 0 : index
    %c0_17 = arith.constant 0 : index
    %17 = vector.load %arg9[%c0_16, %c0_17] : memref<128x64xf32, #tpu.memory_space<vmem>>, vector<128x64xf32>
    %cst_18 = arith.constant dense<0.000000e+00> : vector<32x64xf32>
    %18 = tpu.matmul %16, %17, %cst_18 {dimension_numbers = #tpu.dot_dimension_numbers<[1], [0], [0], [1], [0, 0, 1, 1], [], []>} : vector<32x128xf32>, vector<128x64xf32>, vector<32x64xf32> -> vector<32x64xf32>
    %c0_19 = arith.constant 0 : index
    %c0_20 = arith.constant 0 : index
    %19 = vector.load %arg10[%c0_19, %c0_20] : memref<1x64xf32, #tpu.memory_space<vmem>>, vector<1x64xf32>
    %20 = vector.broadcast %19 : vector<1x64xf32> to vector<32x64xf32>
    %21 = arith.addf %18, %20 : vector<32x64xf32>
    %cst_21 = arith.constant 0.000000e+00 : f32
    %22 = vector.broadcast %cst_21 : f32 to vector<32x64xf32>
    %23 = arith.maximumf %21, %22 : vector<32x64xf32>
    %c0_22 = arith.constant 0 : index
    %c0_23 = arith.constant 0 : index
    %24 = vector.load %arg4[%c0_22, %c0_23] : memref<128x64xf32, #tpu.memory_space<vmem>>, vector<128x64xf32>
    %c0_24 = arith.constant 0 : index
    %c0_25 = arith.constant 0 : index
    %25 = vector.load %arg11[%c0_24, %c0_25] : memref<64x64xf32, #tpu.memory_space<vmem>>, vector<64x64xf32>
    %cst_26 = arith.constant dense<0.000000e+00> : vector<128x64xf32>
    %26 = tpu.matmul %24, %25, %cst_26 {dimension_numbers = #tpu.dot_dimension_numbers<[1], [0], [0], [1], [0, 0, 1, 1], [], []>} : vector<128x64xf32>, vector<64x64xf32>, vector<128x64xf32> -> vector<128x64xf32>
    %c0_27 = arith.constant 0 : index
    %c0_28 = arith.constant 0 : index
    %27 = vector.load %arg12[%c0_27, %c0_28] : memref<1x64xf32, #tpu.memory_space<vmem>>, vector<1x64xf32>
    %28 = vector.broadcast %27 : vector<1x64xf32> to vector<128x64xf32>
    %29 = arith.addf %26, %28 : vector<128x64xf32>
    %cst_29 = arith.constant 0.000000e+00 : f32
    %30 = vector.broadcast %cst_29 : f32 to vector<128x64xf32>
    %31 = arith.maximumf %29, %30 : vector<128x64xf32>
    %c0_30 = arith.constant 0 : index
    %c0_31 = arith.constant 0 : index
    %32 = vector.load %arg13[%c0_30, %c0_31] : memref<32x2xf32, #tpu.memory_space<vmem>>, vector<32x2xf32>
    %cst_32 = arith.constant dense<0.000000e+00> : vector<32x64xf32>
    %33 = tpu.matmul %32, %7, %cst_32 {dimension_numbers = #tpu.dot_dimension_numbers<[1], [0], [0], [1], [0, 0, 1, 1], [], []>} : vector<32x2xf32>, vector<2x64xf32>, vector<32x64xf32> -> vector<32x64xf32>
    %c0_33 = arith.constant 0 : index
    %c0_34 = arith.constant 0 : index
    %34 = vector.load %arg14[%c0_33, %c0_34] : memref<32x8xf32, #tpu.memory_space<vmem>>, vector<32x8xf32>
    %cst_35 = arith.constant dense<0.000000e+00> : vector<32x64xf32>
    %35 = tpu.matmul %34, %15, %cst_35 {dimension_numbers = #tpu.dot_dimension_numbers<[1], [0], [0], [1], [0, 0, 1, 1], [], []>} : vector<32x8xf32>, vector<8x64xf32>, vector<32x64xf32> -> vector<32x64xf32>
    %36 = arith.mulf %35, %33 : vector<32x64xf32>
    %37 = arith.mulf %23, %36 : vector<32x64xf32>
    %c0_36 = arith.constant 0 : index
    %c0_37 = arith.constant 0 : index
    %38 = vector.load %arg19[%c0_36, %c0_37] : memref<192x17xf32, #tpu.memory_space<vmem>>, vector<64x17xf32>
    %cst_38 = arith.constant dense<0.000000e+00> : vector<32x17xf32>
    %39 = tpu.matmul %33, %38, %cst_38 {dimension_numbers = #tpu.dot_dimension_numbers<[1], [0], [0], [1], [0, 0, 1, 1], [], []>} : vector<32x64xf32>, vector<64x17xf32>, vector<32x17xf32> -> vector<32x17xf32>
    %c64 = arith.constant 64 : index
    %c0_39 = arith.constant 0 : index
    %40 = vector.load %arg19[%c64, %c0_39] : memref<192x17xf32, #tpu.memory_space<vmem>>, vector<64x17xf32>
    %cst_40 = arith.constant dense<0.000000e+00> : vector<32x17xf32>
    %41 = tpu.matmul %36, %40, %cst_40 {dimension_numbers = #tpu.dot_dimension_numbers<[1], [0], [0], [1], [0, 0, 1, 1], [], []>} : vector<32x64xf32>, vector<64x17xf32>, vector<32x17xf32> -> vector<32x17xf32>
    %42 = arith.addf %39, %41 : vector<32x17xf32>
    %c128 = arith.constant 128 : index
    %c0_41 = arith.constant 0 : index
    %43 = vector.load %arg19[%c128, %c0_41] : memref<192x17xf32, #tpu.memory_space<vmem>>, vector<64x17xf32>
    %cst_42 = arith.constant dense<0.000000e+00> : vector<32x17xf32>
    %44 = tpu.matmul %37, %43, %cst_42 {dimension_numbers = #tpu.dot_dimension_numbers<[1], [0], [0], [1], [0, 0, 1, 1], [], []>} : vector<32x64xf32>, vector<64x17xf32>, vector<32x17xf32> -> vector<32x17xf32>
    %45 = arith.addf %42, %44 : vector<32x17xf32>
    %c0_43 = arith.constant 0 : index
    %c0_44 = arith.constant 0 : index
    %46 = vector.load %arg20[%c0_43, %c0_44] : memref<1x17xf32, #tpu.memory_space<vmem>>, vector<1x17xf32>
    %47 = vector.broadcast %46 : vector<1x17xf32> to vector<32x17xf32>
    %48 = arith.addf %45, %47 : vector<32x17xf32>
    %c0_45 = arith.constant 0 : index
    %c0_46 = arith.constant 0 : index
    %49 = vector.load %arg29[%c0_45, %c0_46] : memref<32x17xf32, #tpu.memory_space<vmem>>, vector<32x17xf32>
    tpu.vector_store %arg29[%c0_45, %c0_46], %48 {strides = array<i32>} : memref<32x17xf32, #tpu.memory_space<vmem>>, vector<32x17xf32>,
    %c0_47 = arith.constant 0 : index
    %c0_48 = arith.constant 0 : index
    %50 = vector.load %arg15[%c0_47, %c0_48] : memref<2x2xf32, #tpu.memory_space<vmem>>, vector<2x2xf32>
    %cst_49 = arith.constant dense<0.000000e+00> : vector<2x64xf32>
    %51 = tpu.matmul %50, %7, %cst_49 {dimension_numbers = #tpu.dot_dimension_numbers<[1], [0], [0], [1], [0, 0, 1, 1], [], []>} : vector<2x2xf32>, vector<2x64xf32>, vector<2x64xf32> -> vector<2x64xf32>
    %c0_50 = arith.constant 0 : index
    %c0_51 = arith.constant 0 : index
    %52 = vector.load %arg16[%c0_50, %c0_51] : memref<2x8xf32, #tpu.memory_space<vmem>>, vector<2x8xf32>
    %cst_52 = arith.constant dense<0.000000e+00> : vector<2x64xf32>
    %53 = tpu.matmul %52, %15, %cst_52 {dimension_numbers = #tpu.dot_dimension_numbers<[1], [0], [0], [1], [0, 0, 1, 1], [], []>} : vector<2x8xf32>, vector<8x64xf32>, vector<2x64xf32> -> vector<2x64xf32>
    %c0_53 = arith.constant 0 : index
    %c0_54 = arith.constant 0 : index
    %54 = vector.load %arg17[%c0_53, %c0_54] : memref<2x32xf32, #tpu.memory_space<vmem>>, vector<2x32xf32>
    %cst_55 = arith.constant dense<0.000000e+00> : vector<2x64xf32>
    %55 = tpu.matmul %54, %23, %cst_55 {dimension_numbers = #tpu.dot_dimension_numbers<[1], [0], [0], [1], [0, 0, 1, 1], [], []>} : vector<2x32xf32>, vector<32x64xf32>, vector<2x64xf32> -> vector<2x64xf32>
    %c0_56 = arith.constant 0 : index
    %c0_57 = arith.constant 0 : index
    %56 = vector.load %arg18[%c0_56, %c0_57] : memref<2x128xf32, #tpu.memory_space<vmem>>, vector<2x128xf32>
    %cst_58 = arith.constant dense<0.000000e+00> : vector<2x64xf32>
    %57 = tpu.matmul %56, %31, %cst_58 {dimension_numbers = #tpu.dot_dimension_numbers<[1], [0], [0], [1], [0, 0, 1, 1], [], []>} : vector<2x128xf32>, vector<128x64xf32>, vector<2x64xf32> -> vector<2x64xf32>
    %c0_59 = arith.constant 0 : index
    %c0_60 = arith.constant 0 : index
    %58 = vector.load %arg21[%c0_59, %c0_60] : memref<256x128xf32, #tpu.memory_space<vmem>>, vector<64x128xf32>
    %cst_61 = arith.constant dense<0.000000e+00> : vector<2x128xf32>
    %59 = tpu.matmul %51, %58, %cst_61 {dimension_numbers = #tpu.dot_dimension_numbers<[1], [0], [0], [1], [0, 0, 1, 1], [], []>} : vector<2x64xf32>, vector<64x128xf32>, vector<2x128xf32> -> vector<2x128xf32>
    %c64_62 = arith.constant 64 : index
    %c0_63 = arith.constant 0 : index
    %60 = vector.load %arg21[%c64_62, %c0_63] : memref<256x128xf32, #tpu.memory_space<vmem>>, vector<64x128xf32>
    %cst_64 = arith.constant dense<0.000000e+00> : vector<2x128xf32>
    %61 = tpu.matmul %53, %60, %cst_64 {dimension_numbers = #tpu.dot_dimension_numbers<[1], [0], [0], [1], [0, 0, 1, 1], [], []>} : vector<2x64xf32>, vector<64x128xf32>, vector<2x128xf32> -> vector<2x128xf32>
    %62 = arith.addf %59, %61 : vector<2x128xf32>
    %c128_65 = arith.constant 128 : index
    %c0_66 = arith.constant 0 : index
    %63 = vector.load %arg21[%c128_65, %c0_66] : memref<256x128xf32, #tpu.memory_space<vmem>>, vector<64x128xf32>
    %cst_67 = arith.constant dense<0.000000e+00> : vector<2x128xf32>
    %64 = tpu.matmul %55, %63, %cst_67 {dimension_numbers = #tpu.dot_dimension_numbers<[1], [0], [0], [1], [0, 0, 1, 1], [], []>} : vector<2x64xf32>, vector<64x128xf32>, vector<2x128xf32> -> vector<2x128xf32>
    %65 = arith.addf %62, %64 : vector<2x128xf32>
    %c192 = arith.constant 192 : index
    %c0_68 = arith.constant 0 : index
    %66 = vector.load %arg21[%c192, %c0_68] : memref<256x128xf32, #tpu.memory_space<vmem>>, vector<64x128xf32>
    %cst_69 = arith.constant dense<0.000000e+00> : vector<2x128xf32>
    %67 = tpu.matmul %57, %66, %cst_69 {dimension_numbers = #tpu.dot_dimension_numbers<[1], [0], [0], [1], [0, 0, 1, 1], [], []>} : vector<2x64xf32>, vector<64x128xf32>, vector<2x128xf32> -> vector<2x128xf32>
    %68 = arith.addf %65, %67 : vector<2x128xf32>
    %c0_70 = arith.constant 0 : index
    %c0_71 = arith.constant 0 : index
    %69 = vector.load %arg22[%c0_70, %c0_71] : memref<1x128xf32, #tpu.memory_space<vmem>>, vector<1x128xf32>
    %70 = vector.broadcast %69 : vector<1x128xf32> to vector<2x128xf32>
    %71 = arith.addf %68, %70 : vector<2x128xf32>
    %c0_72 = arith.constant 0 : index
    %c0_73 = arith.constant 0 : index
    %72 = vector.load %arg23[%c0_72, %c0_73] : memref<128x64xf32, #tpu.memory_space<vmem>>, vector<128x64xf32>
    %cst_74 = arith.constant dense<0.000000e+00> : vector<2x64xf32>
    %73 = tpu.matmul %71, %72, %cst_74 {dimension_numbers = #tpu.dot_dimension_numbers<[1], [0], [0], [1], [0, 0, 1, 1], [], []>} : vector<2x128xf32>, vector<128x64xf32>, vector<2x64xf32> -> vector<2x64xf32>
    %c0_75 = arith.constant 0 : index
    %c0_76 = arith.constant 0 : index
    %74 = vector.load %arg24[%c0_75, %c0_76] : memref<1x64xf32, #tpu.memory_space<vmem>>, vector<1x64xf32>
    %75 = vector.broadcast %74 : vector<1x64xf32> to vector<2x64xf32>
    %76 = arith.addf %73, %75 : vector<2x64xf32>
    %c0_77 = arith.constant 0 : index
    %c0_78 = arith.constant 0 : index
    %77 = vector.load %arg25[%c0_77, %c0_78] : memref<64x32xf32, #tpu.memory_space<vmem>>, vector<64x32xf32>
    %cst_79 = arith.constant dense<0.000000e+00> : vector<2x32xf32>
    %78 = tpu.matmul %76, %77, %cst_79 {dimension_numbers = #tpu.dot_dimension_numbers<[1], [0], [0], [1], [0, 0, 1, 1], [], []>} : vector<2x64xf32>, vector<64x32xf32>, vector<2x32xf32> -> vector<2x32xf32>
    %c0_80 = arith.constant 0 : index
    %c0_81 = arith.constant 0 : index
    %79 = vector.load %arg26[%c0_80, %c0_81] : memref<1x32xf32, #tpu.memory_space<vmem>>, vector<1x32xf32>
    %80 = vector.broadcast %79 : vector<1x32xf32> to vector<2x32xf32>
    %81 = arith.addf %78, %80 : vector<2x32xf32>
    %c0_82 = arith.constant 0 : index
    %c0_83 = arith.constant 0 : index
    %82 = vector.load %arg27[%c0_82, %c0_83] : memref<32x4xf32, #tpu.memory_space<vmem>>, vector<32x4xf32>
    %cst_84 = arith.constant dense<0.000000e+00> : vector<2x4xf32>
    %83 = tpu.matmul %81, %82, %cst_84 {dimension_numbers = #tpu.dot_dimension_numbers<[1], [0], [0], [1], [0, 0, 1, 1], [], []>} : vector<2x32xf32>, vector<32x4xf32>, vector<2x4xf32> -> vector<2x4xf32>
    %c0_85 = arith.constant 0 : index
    %c0_86 = arith.constant 0 : index
    %84 = vector.load %arg28[%c0_85, %c0_86] : memref<1x4xf32, #tpu.memory_space<vmem>>, vector<1x4xf32>
    %85 = vector.broadcast %84 : vector<1x4xf32> to vector<2x4xf32>
    %86 = arith.addf %83, %85 : vector<2x4xf32>
    %c0_87 = arith.constant 0 : index
    %c0_88 = arith.constant 0 : index
    %87 = vector.load %arg30[%c0_87, %c0_88] : memref<2x4xf32, #tpu.memory_space<vmem>>, vector<2x4xf32>
    tpu.vector_store %arg30[%c0_87, %c0_88], %86 {strides = array<i32>} : memref<2x4xf32, #tpu.memory_space<vmem>>, vector<2x4xf32>,
    return
  }
  func.func @transform_0(%arg0: i32) -> (i32, i32) {
    %c0_i32 = arith.constant 0 : i32
    %c0_i32_0 = arith.constant 0 : i32
    %c0_i32_1 = arith.constant 0 : i32
    return %c0_i32, %c0_i32_0 : i32, i32
  }
  func.func @transform_1(%arg0: i32) -> (i32, i32) {
    %c0_i32 = arith.constant 0 : i32
    %c0_i32_0 = arith.constant 0 : i32
    %c0_i32_1 = arith.constant 0 : i32
    return %c0_i32, %c0_i32_0 : i32, i32
  }
  func.func @transform_2(%arg0: i32) -> (i32, i32) {
    %c0_i32 = arith.constant 0 : i32
    %c0_i32_0 = arith.constant 0 : i32
    %c0_i32_1 = arith.constant 0 : i32
    return %c0_i32, %c0_i32_0 : i32, i32
  }
  func.func @transform_3(%arg0: i32) -> (i32, i32) {
    %c0_i32 = arith.constant 0 : i32
    %c0_i32_0 = arith.constant 0 : i32
    %c0_i32_1 = arith.constant 0 : i32
    return %c0_i32, %c0_i32_0 : i32, i32
  }
  func.func @transform_4(%arg0: i32) -> (i32, i32) {
    %c0_i32 = arith.constant 0 : i32
    %c0_i32_0 = arith.constant 0 : i32
    %c0_i32_1 = arith.constant 0 : i32
    return %c0_i32, %c0_i32_0 : i32, i32
  }
  func.func @transform_5(%arg0: i32) -> (i32, i32) {
    %c0_i32 = arith.constant 0 : i32
    %c0_i32_0 = arith.constant 0 : i32
    %c0_i32_1 = arith.constant 0 : i32
    return %c0_i32, %c0_i32_0 : i32, i32
  }
  func.func @transform_6(%arg0: i32) -> (i32, i32) {
    %c0_i32 = arith.constant 0 : i32
    %c0_i32_0 = arith.constant 0 : i32
    %c0_i32_1 = arith.constant 0 : i32
    return %c0_i32, %c0_i32_0 : i32, i32
  }
  func.func @transform_7(%arg0: i32) -> (i32, i32) {
    %c0_i32 = arith.constant 0 : i32
    %c0_i32_0 = arith.constant 0 : i32
    %c0_i32_1 = arith.constant 0 : i32
    return %c0_i32, %c0_i32_0 : i32, i32
  }
  func.func @transform_8(%arg0: i32) -> (i32, i32) {
    %c0_i32 = arith.constant 0 : i32
    %c0_i32_0 = arith.constant 0 : i32
    %c0_i32_1 = arith.constant 0 : i32
    return %c0_i32, %c0_i32_0 : i32, i32
  }
  func.func @transform_9(%arg0: i32) -> (i32, i32) {
    %c0_i32 = arith.constant 0 : i32
    %c0_i32_0 = arith.constant 0 : i32
    %c0_i32_1 = arith.constant 0 : i32
    return %c0_i32, %c0_i32_0 : i32, i32
  }
  func.func @transform_10(%arg0: i32) -> (i32, i32) {
    %c0_i32 = arith.constant 0 : i32
    %c0_i32_0 = arith.constant 0 : i32
    %c0_i32_1 = arith.constant 0 : i32
    return %c0_i32, %c0_i32_0 : i32, i32
  }
  func.func @transform_11(%arg0: i32) -> (i32, i32) {
    %c0_i32 = arith.constant 0 : i32
    %c0_i32_0 = arith.constant 0 : i32
    %c0_i32_1 = arith.constant 0 : i32
    return %c0_i32, %c0_i32_0 : i32, i32
  }
  func.func @transform_12(%arg0: i32) -> (i32, i32) {
    %c0_i32 = arith.constant 0 : i32
    %c0_i32_0 = arith.constant 0 : i32
    %c0_i32_1 = arith.constant 0 : i32
    return %c0_i32, %c0_i32_0 : i32, i32
  }
  func.func @transform_13(%arg0: i32) -> (i32, i32) {
    %c0_i32 = arith.constant 0 : i32
    %c0_i32_0 = arith.constant 0 : i32
    %c0_i32_1 = arith.constant 0 : i32
    return %c0_i32, %c0_i32_0 : i32, i32
  }
  func.func @transform_14(%arg0: i32) -> (i32, i32) {
    %c0_i32 = arith.constant 0 : i32
    %c0_i32_0 = arith.constant 0 : i32
    %c0_i32_1 = arith.constant 0 : i32
    return %c0_i32, %c0_i32_0 : i32, i32
  }
  func.func @transform_15(%arg0: i32) -> (i32, i32) {
    %c0_i32 = arith.constant 0 : i32
    %c0_i32_0 = arith.constant 0 : i32
    %c0_i32_1 = arith.constant 0 : i32
    return %c0_i32, %c0_i32_0 : i32, i32
  }
  func.func @transform_16(%arg0: i32) -> (i32, i32) {
    %c0_i32 = arith.constant 0 : i32
    %c0_i32_0 = arith.constant 0 : i32
    %c0_i32_1 = arith.constant 0 : i32
    return %c0_i32, %c0_i32_0 : i32, i32
  }
  func.func @transform_17(%arg0: i32) -> (i32, i32) {
    %c0_i32 = arith.constant 0 : i32
    %c0_i32_0 = arith.constant 0 : i32
    %c0_i32_1 = arith.constant 0 : i32
    return %c0_i32, %c0_i32_0 : i32, i32
  }
  func.func @transform_18(%arg0: i32) -> (i32, i32) {
    %c0_i32 = arith.constant 0 : i32
    %c0_i32_0 = arith.constant 0 : i32
    %c0_i32_1 = arith.constant 0 : i32
    return %c0_i32, %c0_i32_0 : i32, i32
  }
  func.func @transform_19(%arg0: i32) -> (i32, i32) {
    %c0_i32 = arith.constant 0 : i32
    %c0_i32_0 = arith.constant 0 : i32
    %c0_i32_1 = arith.constant 0 : i32
    return %c0_i32, %c0_i32_0 : i32, i32
  }
  func.func @transform_20(%arg0: i32) -> (i32, i32) {
    %c0_i32 = arith.constant 0 : i32
    %c0_i32_0 = arith.constant 0 : i32
    %c0_i32_1 = arith.constant 0 : i32
    return %c0_i32, %c0_i32_0 : i32, i32
  }
  func.func @transform_21(%arg0: i32) -> (i32, i32) {
    %c0_i32 = arith.constant 0 : i32
    %c0_i32_0 = arith.constant 0 : i32
    %c0_i32_1 = arith.constant 0 : i32
    return %c0_i32, %c0_i32_0 : i32, i32
  }
  func.func @transform_22(%arg0: i32) -> (i32, i32) {
    %c0_i32 = arith.constant 0 : i32
    %c0_i32_0 = arith.constant 0 : i32
    %c0_i32_1 = arith.constant 0 : i32
    return %c0_i32, %c0_i32_0 : i32, i32
  }
  func.func @transform_23(%arg0: i32) -> (i32, i32) {
    %c0_i32 = arith.constant 0 : i32
    %c0_i32_0 = arith.constant 0 : i32
    %c0_i32_1 = arith.constant 0 : i32
    return %c0_i32, %c0_i32_0 : i32, i32
  }
  func.func @transform_24(%arg0: i32) -> (i32, i32) {
    %c0_i32 = arith.constant 0 : i32
    %c0_i32_0 = arith.constant 0 : i32
    %c0_i32_1 = arith.constant 0 : i32
    return %c0_i32, %c0_i32_0 : i32, i32
  }
  func.func @transform_25(%arg0: i32) -> (i32, i32) {
    %c0_i32 = arith.constant 0 : i32
    %c0_i32_0 = arith.constant 0 : i32
    %c0_i32_1 = arith.constant 0 : i32
    return %c0_i32, %c0_i32_0 : i32, i32
  }
  func.func @transform_26(%arg0: i32) -> (i32, i32) {
    %c0_i32 = arith.constant 0 : i32
    %c0_i32_0 = arith.constant 0 : i32
    %c0_i32_1 = arith.constant 0 : i32
    return %c0_i32, %c0_i32_0 : i32, i32
  }
  func.func @transform_27(%arg0: i32) -> (i32, i32) {
    %c0_i32 = arith.constant 0 : i32
    %c0_i32_0 = arith.constant 0 : i32
    %c0_i32_1 = arith.constant 0 : i32
    return %c0_i32, %c0_i32_0 : i32, i32
  }
  func.func @transform_28(%arg0: i32) -> (i32, i32) {
    %c0_i32 = arith.constant 0 : i32
    %c0_i32_0 = arith.constant 0 : i32
    %c0_i32_1 = arith.constant 0 : i32
    return %c0_i32, %c0_i32_0 : i32, i32
  }
  func.func @transform_29(%arg0: i32) -> (i32, i32) {
    %c0_i32 = arith.constant 0 : i32
    %c0_i32_0 = arith.constant 0 : i32
    %c0_i32_1 = arith.constant 0 : i32
    return %c0_i32, %c0_i32_0 : i32, i32
  }
}

module attributes {stable_mosaic.version = 11 : i64} {
  func.func @_stage2_kernel(%arg0: i32, %arg1: memref<1x24x64xf32, #tpu.memory_space<vmem>>, %arg2: memref<64x16xf32, #tpu.memory_space<vmem>>, %arg3: memref<1x16xf32, #tpu.memory_space<vmem>>, %arg4: memref<16x16xf32, #tpu.memory_space<vmem>>, %arg5: memref<1x16xf32, #tpu.memory_space<vmem>>, %arg6: memref<1x16x16xf32, #tpu.memory_space<vmem>>, %arg7: memref<1x1x16xf32, #tpu.memory_space<vmem>>, %arg8: memref<16x1024xf32, #tpu.memory_space<vmem>>, %arg9: memref<1x2x1024xf32, #tpu.memory_space<vmem>>, %arg10: memref<1x1x1024xf32, #tpu.memory_space<vmem>>) attributes {dimension_semantics = [#tpu.dimension_semantics<parallel>], iteration_bounds = array<i64: 2>, scalar_prefetch = 0 : i64, scratch_operands = 0 : i64, tpu.core_type = #tpu.core_type<tc>, window_params = [{transform_indices = @transform_0, window_bounds = array<i64: 1, 24, 64>}, {pipeline_mode = #tpu.pipeline_mode<synchronous>, transform_indices = @transform_1, window_bounds = array<i64: 64, 16>}, {pipeline_mode = #tpu.pipeline_mode<synchronous>, transform_indices = @transform_2, window_bounds = array<i64: 1, 16>}, {pipeline_mode = #tpu.pipeline_mode<synchronous>, transform_indices = @transform_3, window_bounds = array<i64: 16, 16>}, {pipeline_mode = #tpu.pipeline_mode<synchronous>, transform_indices = @transform_4, window_bounds = array<i64: 1, 16>}, {transform_indices = @transform_5, window_bounds = array<i64: 1, 16, 16>}, {transform_indices = @transform_6, window_bounds = array<i64: 1, 1, 16>}, {pipeline_mode = #tpu.pipeline_mode<synchronous>, transform_indices = @transform_7, window_bounds = array<i64: 16, 1024>}, {transform_indices = @transform_8, window_bounds = array<i64: 1, 2, 1024>}, {transform_indices = @transform_9, window_bounds = array<i64: 1, 1, 1024>}]} {
    %c0 = arith.constant 0 : index
    %c0_0 = arith.constant 0 : index
    %c0_1 = arith.constant 0 : index
    %0 = vector.load %arg1[%c0, %c0_0, %c0_1] : memref<1x24x64xf32, #tpu.memory_space<vmem>>, vector<1x24x64xf32>
    %1 = vector.shape_cast %0 : vector<1x24x64xf32> to vector<24x64xf32>
    %c0_2 = arith.constant 0 : index
    %c0_3 = arith.constant 0 : index
    %2 = vector.load %arg2[%c0_2, %c0_3] : memref<64x16xf32, #tpu.memory_space<vmem>>, vector<64x16xf32>
    %cst = arith.constant dense<0.000000e+00> : vector<24x16xf32>
    %3 = tpu.matmul %1, %2, %cst {dimension_numbers = #tpu.dot_dimension_numbers<[1], [0], [0], [1], [0, 0, 1, 1], [], []>} : vector<24x64xf32>, vector<64x16xf32>, vector<24x16xf32> -> vector<24x16xf32>
    %c0_4 = arith.constant 0 : index
    %c0_5 = arith.constant 0 : index
    %4 = vector.load %arg3[%c0_4, %c0_5] : memref<1x16xf32, #tpu.memory_space<vmem>>, vector<1x16xf32>
    %5 = vector.broadcast %4 : vector<1x16xf32> to vector<24x16xf32>
    %6 = arith.addf %3, %5 : vector<24x16xf32>
    %cst_6 = arith.constant 0.000000e+00 : f32
    %7 = vector.broadcast %cst_6 : f32 to vector<24x16xf32>
    %8 = arith.cmpf oge, %6, %7 : vector<24x16xf32>
    %cst_7 = arith.constant 2.000000e-01 : f32
    %9 = vector.broadcast %cst_7 : f32 to vector<24x16xf32>
    %10 = arith.mulf %9, %6 : vector<24x16xf32>
    %11 = arith.select %8, %6, %10 : vector<24x16xi1>, vector<24x16xf32>
    %c0_8 = arith.constant 0 : index
    %c0_9 = arith.constant 0 : index
    %12 = vector.load %arg4[%c0_8, %c0_9] : memref<16x16xf32, #tpu.memory_space<vmem>>, vector<16x16xf32>
    %cst_10 = arith.constant dense<0.000000e+00> : vector<24x16xf32>
    %13 = tpu.matmul %11, %12, %cst_10 {dimension_numbers = #tpu.dot_dimension_numbers<[1], [0], [0], [1], [0, 0, 1, 1], [], []>} : vector<24x16xf32>, vector<16x16xf32>, vector<24x16xf32> -> vector<24x16xf32>
    %c0_11 = arith.constant 0 : index
    %c0_12 = arith.constant 0 : index
    %14 = vector.load %arg5[%c0_11, %c0_12] : memref<1x16xf32, #tpu.memory_space<vmem>>, vector<1x16xf32>
    %15 = vector.broadcast %14 : vector<1x16xf32> to vector<24x16xf32>
    %16 = arith.addf %13, %15 : vector<24x16xf32>
    %17 = arith.mulf %16, %16 : vector<24x16xf32>
    %cst_13 = arith.constant dense<0.000000e+00> : vector<24xf32>
    %18 = vector.multi_reduction <add>, %17, %cst_13 [1] : vector<24x16xf32> to vector<24xf32>
    %19 = vector.shape_cast %18 : vector<24xf32> to vector<24x1xf32>
    %20 = math.sqrt %19 : vector<24x1xf32>
    %cst_14 = arith.constant 9.99999996E-13 : f32
    %21 = vector.broadcast %cst_14 : f32 to vector<24x1xf32>
    %22 = arith.maximumf %20, %21 : vector<24x1xf32>
    %23 = vector.broadcast %22 : vector<24x1xf32> to vector<24x16xf32>
    %24 = arith.divf %16, %23 : vector<24x16xf32>
    %c0_15 = arith.constant 0 : index
    %c0_16 = arith.constant 0 : index
    %c0_17 = arith.constant 0 : index
    %25 = vector.load %arg6[%c0_15, %c0_16, %c0_17] : memref<1x16x16xf32, #tpu.memory_space<vmem>>, vector<1x16x16xf32>
    %26 = vector.shape_cast %25 : vector<1x16x16xf32> to vector<16x16xf32>
    %c0_18 = arith.constant 0 : index
    %c0_19 = arith.constant 0 : index
    %27 = vector.load %arg8[%c0_18, %c0_19] : memref<16x1024xf32, #tpu.memory_space<vmem>>, vector<16x1024xf32>
    %cst_20 = arith.constant dense<0.000000e+00> : vector<16x1024xf32>
    %28 = tpu.matmul %26, %27, %cst_20 {dimension_numbers = #tpu.dot_dimension_numbers<[1], [0], [0], [1], [0, 0, 1, 1], [], []>} : vector<16x16xf32>, vector<16x1024xf32>, vector<16x1024xf32> -> vector<16x1024xf32>
    %cst_21 = arith.constant dense<0.000000e+00> : vector<1024xf32>
    %29 = vector.multi_reduction <add>, %28, %cst_21 [0] : vector<16x1024xf32> to vector<1024xf32>
    %30 = vector.shape_cast %29 : vector<1024xf32> to vector<1x1024xf32>
    %cst_22 = arith.constant 1.600000e+01 : f32
    %31 = vector.broadcast %cst_22 : f32 to vector<1x1024xf32>
    %32 = arith.divf %30, %31 : vector<1x1024xf32>
    %33 = vector.broadcast %32 : vector<1x1024xf32> to vector<16x1024xf32>
    %34 = arith.subf %28, %33 : vector<16x1024xf32>
    %35 = arith.mulf %34, %34 : vector<16x1024xf32>
    %cst_23 = arith.constant dense<0.000000e+00> : vector<1024xf32>
    %36 = vector.multi_reduction <add>, %35, %cst_23 [0] : vector<16x1024xf32> to vector<1024xf32>
    %37 = vector.shape_cast %36 : vector<1024xf32> to vector<1x1024xf32>
    %cst_24 = arith.constant 1.000000e-24 : f32
    %38 = vector.broadcast %cst_24 : f32 to vector<1x1024xf32>
    %39 = arith.maximumf %37, %38 : vector<1x1024xf32>
    %40 = math.rsqrt %39 : vector<1x1024xf32>
    %41 = arith.truncf %24 : vector<24x16xf32> to vector<24x16xbf16>
    %42 = arith.truncf %34 : vector<16x1024xf32> to vector<16x1024xbf16>
    %cst_25 = arith.constant dense<0.000000e+00> : vector<24x1024xf32>
    %43 = tpu.matmul %41, %42, %cst_25 {dimension_numbers = #tpu.dot_dimension_numbers<[1], [0], [0], [1], [0, 0, 1, 1], [], []>} : vector<24x16xbf16>, vector<16x1024xbf16>, vector<24x1024xf32> -> vector<24x1024xf32>
    %44 = vector.broadcast %40 : vector<1x1024xf32> to vector<24x1024xf32>
    %45 = arith.mulf %43, %44 : vector<24x1024xf32>
    %46 = vector.extract_strided_slice %45 {offsets = [0, 0], sizes = [8, 1024], strides = [1, 1]} : vector<24x1024xf32> to vector<8x1024xf32>
    %47 = vector.extract_strided_slice %45 {offsets = [8, 0], sizes = [8, 1024], strides = [1, 1]} : vector<24x1024xf32> to vector<8x1024xf32>
    %48 = arith.maximumf %46, %47 : vector<8x1024xf32>
    %49 = vector.extract_strided_slice %45 {offsets = [16, 0], sizes = [8, 1024], strides = [1, 1]} : vector<24x1024xf32> to vector<8x1024xf32>
    %50 = arith.maximumf %48, %49 : vector<8x1024xf32>
    %51 = vector.extract_strided_slice %50 {offsets = [0, 0], sizes = [2, 1024], strides = [1, 1]} : vector<8x1024xf32> to vector<2x1024xf32>
    %cst_26 = arith.constant dense<0.000000e+00> : vector<1024xf32>
    %52 = vector.multi_reduction <add>, %51, %cst_26 [0] : vector<2x1024xf32> to vector<1024xf32>
    %53 = vector.shape_cast %52 : vector<1024xf32> to vector<1x1024xf32>
    %cst_27 = arith.constant 2.000000e+00 : f32
    %54 = vector.broadcast %cst_27 : f32 to vector<1x1024xf32>
    %55 = arith.divf %53, %54 : vector<1x1024xf32>
    %56 = vector.broadcast %55 : vector<1x1024xf32> to vector<2x1024xf32>
    %57 = arith.subf %51, %56 : vector<2x1024xf32>
    %58 = arith.mulf %57, %57 : vector<2x1024xf32>
    %cst_28 = arith.constant dense<0.000000e+00> : vector<1024xf32>
    %59 = vector.multi_reduction <add>, %58, %cst_28 [0] : vector<2x1024xf32> to vector<1024xf32>
    %60 = vector.shape_cast %59 : vector<1024xf32> to vector<1x1024xf32>
    %cst_29 = arith.constant 2.000000e+00 : f32
    %61 = vector.broadcast %cst_29 : f32 to vector<1x1024xf32>
    %62 = arith.divf %60, %61 : vector<1x1024xf32>
    %cst_30 = arith.constant 9.99999974E-6 : f32
    %63 = vector.broadcast %cst_30 : f32 to vector<1x1024xf32>
    %64 = arith.addf %62, %63 : vector<1x1024xf32>
    %65 = math.rsqrt %64 : vector<1x1024xf32>
    %66 = vector.broadcast %65 : vector<1x1024xf32> to vector<2x1024xf32>
    %67 = arith.mulf %57, %66 : vector<2x1024xf32>
    %cst_31 = arith.constant 1.000000e+01 : f32
    %68 = vector.broadcast %cst_31 : f32 to vector<2x1024xf32>
    %69 = arith.mulf %67, %68 : vector<2x1024xf32>
    %70 = math.exp %69 : vector<2x1024xf32>
    %cst_32 = arith.constant dense<0.000000e+00> : vector<1024xf32>
    %71 = vector.multi_reduction <add>, %70, %cst_32 [0] : vector<2x1024xf32> to vector<1024xf32>
    %72 = vector.shape_cast %71 : vector<1024xf32> to vector<1x1024xf32>
    %73 = tpu.reciprocal %72 {approx = true} : vector<1x1024xf32> -> vector<1x1024xf32>
    %74 = vector.broadcast %73 : vector<1x1024xf32> to vector<2x1024xf32>
    %75 = arith.mulf %70, %74 : vector<2x1024xf32>
    %76 = vector.extract_strided_slice %50 {offsets = [2, 0], sizes = [2, 1024], strides = [1, 1]} : vector<8x1024xf32> to vector<2x1024xf32>
    %cst_33 = arith.constant dense<0.000000e+00> : vector<1024xf32>
    %77 = vector.multi_reduction <add>, %76, %cst_33 [0] : vector<2x1024xf32> to vector<1024xf32>
    %78 = vector.shape_cast %77 : vector<1024xf32> to vector<1x1024xf32>
    %cst_34 = arith.constant 2.000000e+00 : f32
    %79 = vector.broadcast %cst_34 : f32 to vector<1x1024xf32>
    %80 = arith.divf %78, %79 : vector<1x1024xf32>
    %81 = vector.broadcast %80 : vector<1x1024xf32> to vector<2x1024xf32>
    %82 = arith.subf %76, %81 : vector<2x1024xf32>
    %83 = arith.mulf %82, %82 : vector<2x1024xf32>
    %cst_35 = arith.constant dense<0.000000e+00> : vector<1024xf32>
    %84 = vector.multi_reduction <add>, %83, %cst_35 [0] : vector<2x1024xf32> to vector<1024xf32>
    %85 = vector.shape_cast %84 : vector<1024xf32> to vector<1x1024xf32>
    %cst_36 = arith.constant 2.000000e+00 : f32
    %86 = vector.broadcast %cst_36 : f32 to vector<1x1024xf32>
    %87 = arith.divf %85, %86 : vector<1x1024xf32>
    %cst_37 = arith.constant 9.99999974E-6 : f32
    %88 = vector.broadcast %cst_37 : f32 to vector<1x1024xf32>
    %89 = arith.addf %87, %88 : vector<1x1024xf32>
    %90 = math.rsqrt %89 : vector<1x1024xf32>
    %91 = vector.broadcast %90 : vector<1x1024xf32> to vector<2x1024xf32>
    %92 = arith.mulf %82, %91 : vector<2x1024xf32>
    %cst_38 = arith.constant 1.000000e+01 : f32
    %93 = vector.broadcast %cst_38 : f32 to vector<2x1024xf32>
    %94 = arith.mulf %92, %93 : vector<2x1024xf32>
    %95 = math.exp %94 : vector<2x1024xf32>
    %cst_39 = arith.constant dense<0.000000e+00> : vector<1024xf32>
    %96 = vector.multi_reduction <add>, %95, %cst_39 [0] : vector<2x1024xf32> to vector<1024xf32>
    %97 = vector.shape_cast %96 : vector<1024xf32> to vector<1x1024xf32>
    %98 = tpu.reciprocal %97 {approx = true} : vector<1x1024xf32> -> vector<1x1024xf32>
    %99 = vector.broadcast %98 : vector<1x1024xf32> to vector<2x1024xf32>
    %100 = arith.mulf %95, %99 : vector<2x1024xf32>
    %101 = arith.addf %75, %100 : vector<2x1024xf32>
    %cst_40 = arith.constant 5.000000e-01 : f32
    %102 = vector.broadcast %cst_40 : f32 to vector<2x1024xf32>
    %103 = arith.mulf %101, %102 : vector<2x1024xf32>
    %c0_41 = arith.constant 0 : index
    %c0_42 = arith.constant 0 : index
    %c0_43 = arith.constant 0 : index
    %104 = vector.load %arg9[%c0_41, %c0_42, %c0_43] : memref<1x2x1024xf32, #tpu.memory_space<vmem>>, vector<1x2x1024xf32>
    %105 = vector.shape_cast %104 : vector<1x2x1024xf32> to vector<2x1024xf32>
    %106 = vector.shape_cast %103 : vector<2x1024xf32> to vector<1x2x1024xf32>
    tpu.vector_store %arg9[%c0_41, %c0_42, %c0_43], %106 {strides = array<i32>} : memref<1x2x1024xf32, #tpu.memory_space<vmem>>, vector<1x2x1024xf32>,
    %c0_44 = arith.constant 0 : index
    %c0_45 = arith.constant 0 : index
    %c0_46 = arith.constant 0 : index
    %107 = vector.load %arg7[%c0_44, %c0_45, %c0_46] : memref<1x1x16xf32, #tpu.memory_space<vmem>>, vector<1x1x16xf32>
    %108 = vector.shape_cast %107 : vector<1x1x16xf32> to vector<1x16xf32>
    %c0_47 = arith.constant 0 : index
    %c0_48 = arith.constant 0 : index
    %109 = vector.load %arg8[%c0_47, %c0_48] : memref<16x1024xf32, #tpu.memory_space<vmem>>, vector<16x1024xf32>
    %cst_49 = arith.constant dense<0.000000e+00> : vector<1x1024xf32>
    %110 = tpu.matmul %108, %109, %cst_49 {dimension_numbers = #tpu.dot_dimension_numbers<[1], [0], [0], [1], [0, 0, 1, 1], [], []>} : vector<1x16xf32>, vector<16x1024xf32>, vector<1x1024xf32> -> vector<1x1024xf32>
    %111 = arith.negf %110 : vector<1x1024xf32>
    %112 = math.exp %111 : vector<1x1024xf32>
    %cst_50 = arith.constant 1.000000e+00 : f32
    %113 = vector.broadcast %cst_50 : f32 to vector<1x1024xf32>
    %114 = arith.addf %113, %112 : vector<1x1024xf32>
    %115 = arith.divf %113, %114 : vector<1x1024xf32>
    %116 = vector.extract_strided_slice %103 {offsets = [1, 0], sizes = [1, 1024], strides = [1, 1]} : vector<2x1024xf32> to vector<1x1024xf32>
    %117 = arith.addf %116, %115 : vector<1x1024xf32>
    %cst_51 = arith.constant 5.000000e-01 : f32
    %118 = vector.broadcast %cst_51 : f32 to vector<1x1024xf32>
    %119 = arith.mulf %117, %118 : vector<1x1024xf32>
    %c0_52 = arith.constant 0 : index
    %c0_53 = arith.constant 0 : index
    %c0_54 = arith.constant 0 : index
    %120 = vector.load %arg10[%c0_52, %c0_53, %c0_54] : memref<1x1x1024xf32, #tpu.memory_space<vmem>>, vector<1x1x1024xf32>
    %121 = vector.shape_cast %120 : vector<1x1x1024xf32> to vector<1x1024xf32>
    %122 = vector.shape_cast %119 : vector<1x1024xf32> to vector<1x1x1024xf32>
    tpu.vector_store %arg10[%c0_52, %c0_53, %c0_54], %122 {strides = array<i32>} : memref<1x1x1024xf32, #tpu.memory_space<vmem>>, vector<1x1x1024xf32>,
    return
  }
  func.func @transform_0(%arg0: i32) -> (i32, i32, i32) {
    %c0_i32 = arith.constant 0 : i32
    %c0_i32_0 = arith.constant 0 : i32
    %c0_i32_1 = arith.constant 0 : i32
    return %arg0, %c0_i32, %c0_i32_0 : i32, i32, i32
  }
  func.func @transform_1(%arg0: i32) -> (i32, i32) {
    %c0_i32 = arith.constant 0 : i32
    %c0_i32_0 = arith.constant 0 : i32
    %c0_i32_1 = arith.constant 0 : i32
    return %c0_i32, %c0_i32_0 : i32, i32
  }
  func.func @transform_2(%arg0: i32) -> (i32, i32) {
    %c0_i32 = arith.constant 0 : i32
    %c0_i32_0 = arith.constant 0 : i32
    %c0_i32_1 = arith.constant 0 : i32
    return %c0_i32, %c0_i32_0 : i32, i32
  }
  func.func @transform_3(%arg0: i32) -> (i32, i32) {
    %c0_i32 = arith.constant 0 : i32
    %c0_i32_0 = arith.constant 0 : i32
    %c0_i32_1 = arith.constant 0 : i32
    return %c0_i32, %c0_i32_0 : i32, i32
  }
  func.func @transform_4(%arg0: i32) -> (i32, i32) {
    %c0_i32 = arith.constant 0 : i32
    %c0_i32_0 = arith.constant 0 : i32
    %c0_i32_1 = arith.constant 0 : i32
    return %c0_i32, %c0_i32_0 : i32, i32
  }
  func.func @transform_5(%arg0: i32) -> (i32, i32, i32) {
    %c0_i32 = arith.constant 0 : i32
    %c0_i32_0 = arith.constant 0 : i32
    %c0_i32_1 = arith.constant 0 : i32
    return %arg0, %c0_i32, %c0_i32_0 : i32, i32, i32
  }
  func.func @transform_6(%arg0: i32) -> (i32, i32, i32) {
    %c0_i32 = arith.constant 0 : i32
    %c0_i32_0 = arith.constant 0 : i32
    %c0_i32_1 = arith.constant 0 : i32
    return %arg0, %c0_i32, %c0_i32_0 : i32, i32, i32
  }
  func.func @transform_7(%arg0: i32) -> (i32, i32) {
    %c0_i32 = arith.constant 0 : i32
    %c0_i32_0 = arith.constant 0 : i32
    %c0_i32_1 = arith.constant 0 : i32
    return %c0_i32, %c0_i32_0 : i32, i32
  }
  func.func @transform_8(%arg0: i32) -> (i32, i32, i32) {
    %c0_i32 = arith.constant 0 : i32
    %c0_i32_0 = arith.constant 0 : i32
    %c0_i32_1 = arith.constant 0 : i32
    return %arg0, %c0_i32, %c0_i32_0 : i32, i32, i32
  }
  func.func @transform_9(%arg0: i32) -> (i32, i32, i32) {
    %c0_i32 = arith.constant 0 : i32
    %c0_i32_0 = arith.constant 0 : i32
    %c0_i32_1 = arith.constant 0 : i32
    return %arg0, %c0_i32, %c0_i32_0 : i32, i32, i32
  }
}

</mosaic_0001>

<bundles_post_ra>
// kernel: mul.18
= control target key start
LH: loop header
LB: loop body
LE: loop exit
PB: predicated region body
PF: predicated region fallthrough
CT: control target
= control target key end

     0   :  { %vm21_vm0 = vcmask 31744   ;;  %s56_s14 = smov 4   ;;  %s57_s15 = smov 8   ;;  %vm27_vm1 = vcmask 130144   ;;  %vm33_vm2 = vcmask 97344   ;;  %vm39_vm3 = vcmask 64544   ;;  %s83_s0 = inlined_call_operand.vmem [shape: f32[4,4,2,2], index: 0, kind: input, shape index: {}]   ;;  %s84_s1 = inlined_call_operand.vmem [shape: f32[16,4], index: 1, kind: output, shape index: {}]  }
   0x1   :  { %v49_v0 = vld [vmem:[%s83_s0 + $0xc] sm:$0xf]  ;;  %v50_v1 = vld [vmem:[%s83_s0 + $0x8] sm:$0xf]  ;;  %v51_v2 = vld [vmem:[%s83_s0 + $0x4] sm:$0xf] }
   0x2   :  { %8 = vst [vmem:[#allocation1 + $0x18] sm:$0xf] %v49_v0  ;;  %13 = vst [vmem:[#allocation1 + $0x10] sm:$0xf] %v50_v1  ;;  %v18_v3 = vld [vmem:[%s83_s0] sm:$0xf] }
   0x3   :  { %17 = vst [vmem:[#allocation1 + $0x8] sm:$0xf] %v51_v2  ;;  %19 = vst [vmem:[#allocation1] sm:$0xf] %v18_v3  ;;  %s55_s0 = smov 12  }
   0xa   :  { %v24_v4 = vld [vmem:[#allocation1 + $0x3] ss:$8 sm:$0xf]   ;;  %v36_v5 = vld [vmem:[#allocation1 + $0x1] ss:$8 sm:$0xf]  }
   0xb   :  { %25 = vrot.lane.b32.xlu0 %v24_v4, %s55_s0  ;;  %v20_v6 = vld [vmem:[#allocation1] ss:$8 sm:$0xf]   ;;  %v30_v7 = vld [vmem:[#allocation1 + $0x2] ss:$8 sm:$0xf]   ;;  %37 = vrot.lane.b32.xlu1 %v36_v5, %s56_s14 }
   0xc   :  { %22 = vst.msk [vmem:[#allocation0] sm:$0xf] %vm21_vm0, %v20_v6  }
   0xf   :  { %31 = vrot.lane.b32.xlu0 %v30_v7, %s57_s15 }
  0x7d   :  { %v26_v8 = vpop.permute.xlu0 %25   ;;  %v38_v9 = vpop.permute.xlu1 %37  }
  0x7e   :  { %28 = vst.msk [vmem:[#allocation0] sm:$0xf] %vm27_vm1, %v26_v8  }
  0x81   :  { %v32_v10 = vpop.permute.xlu0 %31  }
  0x82   :  { %34 = vst.msk [vmem:[#allocation0] sm:$0xf] %vm33_vm2, %v32_v10  }
  0x83   :  { %40 = vst.msk [vmem:[#allocation0] sm:$0xf] %vm39_vm3, %v38_v9  }
  0x8a   :  { %v44_v11 = vld [vmem:[#allocation0] sm:$0xf] }
  0x8b   :  { %46 = vst [vmem:[%s84_s1] sm:$0xf] %v44_v11 }

// kernel: squeeze.2
= control target key start
LH: loop header
LB: loop body
LE: loop exit
PB: predicated region body
PF: predicated region fallthrough
CT: control target
= control target key end

     0   :  { %s106_s0 = inlined_call_operand.vmem [shape: f32[2,16,1], index: 0, kind: input, shape index: {}]   ;;  %s107_s1 = inlined_call_operand.hbm [shape: f32[2,1,4,4], index: 1, kind: output, shape index: {}]  }
   0x1   :  { %v5_v0 = vld [vmem:[%s106_s0] sm:$0x3] }
   0x2   :  { %6 = vst [vmem:[#allocation3] sm:$0x3] %v5_v0 }
   0x3   :  { %2 = vsyncpa [#allocation1], 0  ;;  %s77_s0 = smov 124   ;;  %s78_s8 = smov 116   ;;  %vm8_vm0 = vcmask 31744  }
   0x4   :  { %s79_s9 = smov 120   ;;  %s80_s10 = smov [#allocation0]  }
   0x5   :  { %s43_s11 = sshll.u32 %s80_s10, 4  ;;  %s44_s11 = int_to_ptr.vmem [resolvable:$true] %s43_s11 }
   0x6   :  { %s53_s12 = scalar_lea.vmem %s44_s11, 128  ;;  %p58_p1 = scmp.lt.s32.totalorder %s44_s11, %s44_s11 }
   0x7   :  { %p54_p0 = scmp.ne.s32.totalorder %s44_s11, %s53_s12  ;;  %p59_p2 = scmp.lt.s32.totalorder %s53_s12, %s53_s12 }
   0x9   :  { %v10_v1 = vld [vmem:[#allocation3] sm:$0x3]   ;;  %p60_p3 = por %p59_p2, %p58_p1 }
   0xa   :  { %v22_v2 = vld [vmem:[#allocation3] sm:$0x3]   ;;  %11 = vrot.lane.b32.xlu0 %v10_v1, %s77_s0 }
   0xb   :  { %23 = vrot.lane.b32.xlu1 %v22_v2, %s78_s8  ;;  %v7_v3 = vld [vmem:[#allocation3] sm:$0x3]   ;;  %p61_p4 = pnand %p60_p3, %p54_p0 }
   0xc   :  { %v16_v4 = vld [vmem:[#allocation3] sm:$0x3]   ;;  %9 = vst.msk [vmem:[#allocation2] ss:$8 sm:$0x3] %vm8_vm0, %v7_v3  }
   0xe   :  { %17 = vrot.lane.b32.xlu0 %v16_v4, %s79_s9 }
  0x7c   :  { %v12_v5 = vpop.permute.xlu0 %11  }
  0x7d   :  { %v24_v6 = vpop.permute.xlu1 %23   ;;  %15 = vst.msk [vmem:[#allocation2 + $0x1] ss:$8 sm:$0x3] %vm8_vm0, %v12_v5  }
  0x7e   :  { %27 = vst.msk [vmem:[#allocation2 + $0x3] ss:$8 sm:$0x3] %vm8_vm0, %v24_v6  }
  0x80   :  { %v18_v7 = vpop.permute.xlu0 %17  }
  0x81   :  { %21 = vst.msk [vmem:[#allocation2 + $0x2] ss:$8 sm:$0x3] %vm8_vm0, %v18_v7  }
  0x88   :  { %v31_v8 = vld [vmem:[#allocation2] sm:$0xf]  ;;  %v35_v9 = vld [vmem:[#allocation2 + $0x8] sm:$0xf] }
  0x89   :  { %33 = vst [vmem:[#allocation0] sm:$0xf] %v31_v8  ;;  %38 = vst [vmem:[#allocation0 + $0x4] sm:$0xf] %v35_v9 }
  0x8a   :  { %64 = shalt.err (!%p61_p4)
}
  0x8b   :  { %s65_s15 = scalar_lea.hbm %s107_s1, 128 }
  0x8c   :  { %p66_p5 = scmp.ne.s32.totalorder %s107_s1, %s65_s15  ;;  %p69_p6 = scmp.lt.u32.totalorder %s65_s15, %s107_s1 }
  0x8e   :  { %p71_p7 = pnand %p69_p6, %p66_p5 }
  0x90   :  { %74 = shalt.err (!%p71_p7)
}
  0x91   :  { %46 = dma.vmem_to_hbm [thread:$0]  %s44_s11, 128, %s107_s1, [#allocation1]  }
  0x92   :  { %75 = dma.done.wait [#allocation1], 128  }
  0x93   :  { %76 = vsyncadd [#allocation1], 4294967168 }
  0x94   :  { %48 = vsyncpa [#allocation1], 1 }

// kernel: _lambda_.3
= control target key start
LH: loop header
LB: loop body
LE: loop exit
PB: predicated region body
PF: predicated region fallthrough
CT: control target
= control target key end

     0   :  { %s3031_s30 = smov 0   ;;  %s3735_s0 = inlined_call_operand.vmem [shape: f32[2,24,64], index: 0, kind: input, shape index: {}]   ;;  %s3736_s1 = inlined_call_operand.vmem [shape: f32[64,16], index: 1, kind: input, shape index: {}]   ;;  %s3737_s2 = inlined_call_operand.vmem [shape: f32[1,16], index: 2, kind: input, shape index: {}]   ;;  %s3738_s3 = inlined_call_operand.vmem [shape: f32[16,16], index: 3, kind: input, shape index: {}]   ;;  %s3739_s4 = inlined_call_operand.vmem [shape: f32[1,16], index: 4, kind: input, shape index: {}]   ;;  %s3740_s5 = inlined_call_operand.vmem [shape: f32[2,16,16], index: 5, kind: input, shape index: {}]   ;;  %s3741_s6 = inlined_call_operand.vmem [shape: f32[2,1,16], index: 6, kind: input, shape index: {}]   ;;  %s3742_s7 = inlined_call_operand.vmem [shape: f32[16,1024], index: 7, kind: input, shape index: {}]   ;;  %s3743_s8 = inlined_call_operand.vmem [shape: f32[2,2,1024], index: 8, kind: output, shape index: {0}]   ;;  %s3744_s9 = inlined_call_operand.vmem [shape: f32[2,1,1024], index: 9, kind: output, shape index: {1}]  }
   0x1 LB: > { %s2644_s10 = sadd.s32 4294967295, %s2973_s30   ;;  %p2648_p0 = scmp.ge.s32.totalorder %s2973_s30, 1  ;;  %s2973_s30 = sphi %s3031_s30, %s20_s30  }
   0x2   : > { %p308_p1 = scmp.lt.s32.totalorder %s2973_s30, 3 }
   0x4   : > { %p309_p2 = pnand %p2648_p0, %p308_p1 }
   0x5   : > { %v382_v0 = vld [vmem:[%s3736_s1] sm:$0xff] (!%p309_p2)  ;;  %v383_v1 = vld [vmem:[%s3736_s1 + $0x8] sm:$0xff] (!%p309_p2)  ;;  %v384_v2 = vld [vmem:[%s3736_s1 + $0x10] sm:$0xff] (!%p309_p2)  ;;  %v2975_v3 = vmov (!%p309_p2), 0.0|0.0   ;;  %vm2976_vm0 = vmmov (!%p309_p2), 0   ;;  %v2977_v6 = vmov (!%p309_p2), 0.0  }
   0x6   : > { %312 = sbr.rel (%p309_p2) target bundleno = 1061 (0x425), region = 52  ;;  %2749 = vmatprep.subr.bf16.mxu0 (!%p309_p2), %v2975_v3  ;;  %v2750_v4 = vpack.c.bf16 (!%p309_p2), %v383_v1, %v382_v0  ;;  %v385_v5 = vld [vmem:[%s3736_s1 + $0x18] sm:$0xff] (!%p309_p2)  ;;  %2727 = vmatprep.mubr.msk.f32.mxu0 (!%p309_p2), %vm2976_vm0, %v2977_v6  ;;  %p356_p3 = scmp.lt.s32.totalorder (!%p309_p2), %s2644_s10, 1  ;;  %v386_v8 = vld [vmem:[%s3736_s1 + $0x20] sm:$0xff] (!%p309_p2)  ;;  %v387_v9 = vld [vmem:[%s3736_s1 + $0x28] sm:$0xff] (!%p309_p2)  ;;  %vm397_vm1 = vcmask (!%p309_p2), 523264  }
   0x7   : > { %2761 = vmatprep.subr.bf16.mxu1 (!%p309_p2), %v2975_v3  ;;  %2740 = vmatprep.mubr.msk.f32.mxu1 (!%p309_p2), %vm2976_vm0, %v2977_v6  ;;  %v2753_v7 = vpack.c.bf16 (!%p309_p2), %v385_v5, %v384_v2  ;;  %v2756_v10 = vpack.c.bf16 (!%p309_p2), %v387_v9, %v386_v8  ;;  %v388_v11 = vld [vmem:[%s3736_s1 + $0x30] sm:$0xff] (!%p309_p2)  ;;  %v389_v12 = vld [vmem:[%s3736_s1 + $0x38] sm:$0xff] (!%p309_p2)  ;;  %v496_v17 = vld [vmem:[%s3738_s3] sm:$0xff] (!%p309_p2)  ;;  %vm505_vm2 = vcmask (!%p309_p2), 130048   ;;  %vm1398_vm12 = vcmask (!%p309_p2), 1041408  }
   0x8   : > { %2751 = vmatpush3.bf16.msra.mxu0 (!%p309_p2), %v2750_v4  ;;  %v2759_v13 = vpack.c.bf16 (!%p309_p2), %v389_v12, %v388_v11  ;;  %v497_v18 = vld [vmem:[%s3738_s3 + $0x8] sm:$0xff] (!%p309_p2)  ;;  %v643_v26 = vld [vmem:[%s3742_s7 + $0x20] sm:$0xff] (!%p309_p2)  ;;  %v642_v37 = vld [vmem:[%s3742_s7 + $0x18] sm:$0xff] (!%p309_p2) }
   0x9   : > { %2752 = vmatprep.subr.bf16.mxu0 (!%p309_p2), %v2975_v3  ;;  %v2762_v19 = vpack.c.bf16 (!%p309_p2), %v497_v18, %v496_v17  ;;  %v640_v20 = vld [vmem:[%s3742_s7 + $0x8] sm:$0xff] (!%p309_p2)  ;;  %v651_v27 = vld [vmem:[%s3742_s7 + $0x60] sm:$0xff] (!%p309_p2)  ;;  %v650_v38 = vld [vmem:[%s3742_s7 + $0x58] sm:$0xff] (!%p309_p2) }
   0xa   : > { %v648_v21 = vld [vmem:[%s3742_s7 + $0x48] sm:$0xff] (!%p309_p2)  ;;  %v3108_v28 = vpack.c.bf16 (!%p309_p2), %v651_v27, %v643_v26  ;;  %v2655_v31 = vld [vmem:[%s3737_s2] ss:$0 sm:$0xff] (!%p309_p2)  ;;  %v3137_v42 = vpack.c.bf16 (!%p309_p2), %v650_v38, %v642_v37  ;;  %v641_v52 = vld [vmem:[%s3742_s7 + $0x10] sm:$0xff] (!%p309_p2) }
   0xb   : > { %2763 = vmatpush3.bf16.msra.mxu1 (!%p309_p2), %v2762_v19  ;;  %v3090_v22 = vpack.c.bf16 (!%p309_p2), %v648_v21, %v640_v20  ;;  %v644_v23 = vld [vmem:[%s3742_s7 + $0x28] sm:$0xff] (!%p309_p2)  ;;  %v639_v33 = vld [vmem:[%s3742_s7] sm:$0xff] (!%p309_p2)  ;;  %v649_v53 = vld [vmem:[%s3742_s7 + $0x50] sm:$0xff] (!%p309_p2) }
   0xc   : > { %2754 = vmatpush3.bf16.msra.mxu0 (!%p309_p2), %v2753_v7  ;;  %v652_v24 = vld [vmem:[%s3742_s7 + $0x68] sm:$0xff] (!%p309_p2)  ;;  %v647_v34 = vld [vmem:[%s3742_s7 + $0x40] sm:$0xff] (!%p309_p2)  ;;  %v646_v55 = vld [vmem:[%s3742_s7 + $0x38] sm:$0xff] (!%p309_p2)  ;;  %v3161_v57 = vpack.c.bf16 (!%p309_p2), %v649_v53, %v641_v52 }
   0xd   : > { %s3746_s10 = smov (!%p356_p3, %s2644_s10), 1  ;;  %2755 = vmatprep.subr.bf16.mxu0 %v2975_v3  ;;  %2765 = vmatprep.subr.bf16.mxu1 %v3090_v22  ;;  %v3100_v25 = vpack.c.bf16 %v652_v24, %v644_v23  ;;  %v3135_v40 = vpack.c.bf16 %v647_v34, %v639_v33  ;;  %v654_v56 = vld [vmem:[%s3742_s7 + $0x78] sm:$0xff]  ;;  %v645_v59 = vld [vmem:[%s3742_s7 + $0x30] sm:$0xff]  ;;  %v2659_v34 = vld [vmem:[%s3739_s4] ss:$0 sm:$0xff] }
   0xe   : > { %s2796_s27 = smul.u32 24, %s3746_s10  ;;  %s2693_s20 = sshll.u32 %s3746_s10, 4  ;;  %v3163_v58 = vpack.c.bf16 %v654_v56, %v646_v55  ;;  %v653_v60 = vld [vmem:[%s3742_s7 + $0x70] sm:$0xff] }
   0xf   : > { %s365_s12 = scalar_lea.vmem %s3740_s5, %s2693_s20  ;;  %v3177_v61 = vpack.c.bf16 %v653_v60, %v645_v59  ;;  %s368_s22 = scalar_lea.vmem %s3741_s6, %s3746_s10 }
  0x10   : > { %2757 = vmatpush3.bf16.msra.mxu0 %v2756_v10  ;;  %s360_s11 = scalar_lea.vmem %s3735_s0, %s2796_s27  ;;  %v637_v29 = vld [vmem:[%s365_s12] sm:$0xff]  ;;  %v638_v30 = vld [vmem:[%s365_s12 + $0x8] sm:$0xff]  ;;  %s3708_s25 = scalar_lea.vmem %s3743_s8, %s2693_s20 }
  0x11   : > { %2758 = vmatprep.subr.bf16.mxu0 %v2975_v3  ;;  %v379_v14 = vld [vmem:[%s360_s11] sm:$0xff]  ;;  %v380_v15 = vld [vmem:[%s360_s11 + $0x8] sm:$0xff]  ;;  %v381_v16 = vld [vmem:[%s360_s11 + $0x10] sm:$0xff]  ;;  %s2654_s20 = sshll.u32 %s3746_s10, 3 }
  0x12   : > { %s377_s28 = scalar_lea.vmem %s3744_s9, %s2654_s20 }
  0x14   : > { %2760 = vmatpush3.bf16.msra.mxu0 %v2759_v13 }
  0x15   : > { %2773 = vmatprep.subr.bf16.mxu0 %v3100_v25 }
  0x17   : > { %2728 = vmatmul.mubr.msk.f32.vlgmr.msra.gmra.mrb[0].mxu0 %vm397_vm1, %v379_v14 }
  0x18   : > { %2730 = vmatprep.mubr.msk.f32.mxu0 %vm2976_vm0, %v2977_v6  ;;  %2775 = vmatpush1.bf16.msra.mxu0 %v3108_v28 }
  0x1b   : > { %2731 = vmatmul.mubr.msk.f32.gmra.mrb[2].mxu0 %vm397_vm1, %v380_v15 }
  0x1c   : > { %2733 = vmatprep.mubr.msk.f32.mxu0 %vm2976_vm0, %v2977_v6 }
  0x1f   : > { %2734 = vmatmul.mubr.msk.f32.gmra.mrb[4].mxu0 %vm397_vm1, %v381_v16 }
  0x20   : > { %879 = vmatprep.mubr.f32.mxu0 %v2977_v6 }
  0x23   : > { %2667 = vmatmul.mubr.msk.f32.vlgmr.msra.gmra.mrb[6].mxu0 %vm505_vm2, %v637_v29 }
  0x24   : > { %885 = vmatprep.mubr.f32.mxu0 %v2977_v6 }
  0x27   : > { %2668 = vmatmul.mubr.msk.f32.gmra.mrb[8].mxu0 %vm505_vm2, %v638_v30 }
  0xea   : > { %v473_v32 = vpop.f32.mrb[0].mxu0 }
  0xeb   : > { %v474_v35 = vadd.f32 %v2655_v31, %v473_v32  ;;  %v2729_v36 = vpop.f32.mrb[1].mxu0 }
  0xed   : > { %vm487_vm3 = vcmp.ge.f32.partialorder %v474_v35, 0.0  ;;  %v490_v39 = vmul.f32 0.2, %v474_v35 }
  0xee   : > { %v478_v41 = vpop.f32.mrb[2].mxu0 }
  0xef   : > { %v479_v43 = vadd.f32 %v2655_v31, %v478_v41  ;;  %v2732_v44 = vpop.f32.mrb[3].mxu0  ;;  %v493_v45 = vsel %vm487_vm3, %v474_v35, %v490_v39 }
  0xf0   : > { %2741 = vmatmul.mubr.msk.f32.vlgmr.msra.gmra.mrb[0].mxu1 %vm505_vm2, %v493_v45 }
  0xf1   : > { %vm488_vm4 = vcmp.ge.f32.partialorder %v479_v43, 0.0  ;;  %v491_v46 = vmul.f32 0.2, %v479_v43  ;;  %2743 = vmatprep.mubr.msk.f32.mxu1 %vm2976_vm0, %v2977_v6  ;;  %2767 = vmatpush1.bf16.msra.mxu1 %v3135_v40 }
  0xf2   : > { %v483_v47 = vpop.f32.mrb[4].mxu0  ;;  %2769 = vmatprep.subr.bf16.mxu1 %v3137_v42 }
  0xf3   : > { %v484_v48 = vadd.f32 %v2655_v31, %v483_v47  ;;  %v494_v49 = vsel %vm488_vm4, %v479_v43, %v491_v46  ;;  %v2735_v50 = vpop.f32.mrb[5].mxu0 }
  0xf4   : > { %2744 = vmatmul.mubr.msk.f32.gmra.mrb[2].mxu1 %vm505_vm2, %v494_v49 }
  0xf5   : > { %vm489_vm5 = vcmp.ge.f32.partialorder %v484_v48, 0.0  ;;  %v492_v51 = vmul.f32 0.2, %v484_v48  ;;  %2746 = vmatprep.mubr.msk.f32.mxu1 %vm2976_vm0, %v2977_v6 }
  0xf6   : > { %v881_v62 = vpop.f32.mrb[6].mxu0 }
  0xf7   : > { %v495_v54 = vsel %vm489_vm5, %v484_v48, %v492_v51  ;;  %v883_v63 = vpop.f32.mrb[7].mxu0 }
  0xf8   : > { %2747 = vmatmul.mubr.msk.f32.gmra.mrb[4].mxu1 %vm505_vm2, %v495_v54 }
  0xf9   : > { %725 = vmatprep.mubr.f32.mxu1 %v2977_v6 }
  0xfa   : > { %v887_v0 = vpop.f32.mrb[8].mxu0 }
  0xfb   : > { %v997_v1 = vadd.f32 %v887_v0, %v881_v62  ;;  %v889_v7 = vpop.f32.mrb[9].mxu0 }
  0xfc   : > { %2663 = vmatmul.mubr.msk.f32.vlgmr.msra.gmra.mrb[6].mxu1 %vm505_vm2, %v637_v29  ;;  %v1004_v8 = vadd.f32 %v889_v7, %v883_v63 }
  0xfd   : > { %731 = vmatprep.mubr.f32.mxu1 %v2977_v6  ;;  %2771 = vmatpush1.bf16.msra.mxu1 %v3161_v57  ;;  %v998_v2 = vrot.slane %v997_v1, 4 }
  0xfe   : > { %2777 = vmatprep.subr.bf16.mxu1 %v3163_v58  ;;  %v1005_v10 = vrot.slane %v1004_v8, 4 }
  0xff   : > { %v999_v3 = vadd.f32 %v998_v2, %v997_v1 }
 0x100   : > { %2664 = vmatmul.mubr.msk.f32.gmra.mrb[8].mxu1 %vm505_vm2, %v638_v30  ;;  %v1006_v12 = vadd.f32 %v1005_v10, %v1004_v8 }
 0x101   : > { %802 = vmatprep.mubr.f32.mxu1 %v2977_v6  ;;  %v1000_v4 = vrot.slane %v999_v3, 2 }
 0x102   : > { %v1007_v14 = vrot.slane %v1006_v12, 2 }
 0x103   : > { %v1001_v5 = vadd.f32 %v1000_v4, %v999_v3 }
 0x104   : > { %2665 = vmatmul.mubr.msk.f32.vlgmr.msra.gmra.mrb[10].mxu1 %vm505_vm2, %v637_v29  ;;  %v1008_v17 = vadd.f32 %v1007_v14, %v1006_v12 }
 0x105   : > { %808 = vmatprep.mubr.f32.mxu1 %v2977_v6  ;;  %2779 = vmatpush1.bf16.msra.mxu1 %v3177_v61  ;;  %v1002_v9 = vrot.slane %v1001_v5, 1 }
 0x106   : > { %v1009_v21 = vrot.slane %v1008_v17, 1 }
 0x107   : > { %v1003_v11 = vadd.f32 %v1002_v9, %v1001_v5 }
 0x108   : > { %2666 = vmatmul.mubr.msk.f32.gmra.mrb[12].mxu1 %vm505_vm2, %v638_v30  ;;  %v1010_v24 = vadd.f32 %v1009_v21, %v1008_v17 }
 0x109   : > { %956 = vmatprep.mubr.f32.mxu1 %v2977_v6  ;;  %v1030_v13 = vmul.f32 0.0625, %v1003_v11 }
 0x10a   : > { %v1031_v26 = vmul.f32 0.0625, %v1010_v24 }
 0x10b   : > { %v3187_v15 = vsub.f32 %v881_v62, %v1030_v13  ;;  %v3189_v16 = vsub.f32 %v887_v0, %v1030_v13 }
 0x10c   : > { %2669 = vmatmul.mubr.msk.f32.vlgmr.msra.gmra.mrb[14].mxu1 %vm505_vm2, %v637_v29  ;;  %v3199_v27 = vsub.f32 %v883_v63, %v1031_v26  ;;  %v3201_v29 = vsub.f32 %v889_v7, %v1031_v26 }
 0x10d   : > { %962 = vmatprep.mubr.f32.mxu1 %v2977_v6  ;;  %v1054_v18 = vmul.f32 %v3187_v15, %v3187_v15  ;;  %v1062_v19 = vmul.f32 %v3189_v16, %v3189_v16  ;;  %v1144_v20 = vpack.c.bf16 %v3189_v16, %v3187_v15 }
 0x10e   : > { %v1063_v31 = vmul.f32 %v3201_v29, %v3201_v29  ;;  %v1145_v32 = vpack.c.bf16 %v3201_v29, %v3199_v27 }
 0x10f   : > { %v3197_v23 = vadd.f32 %v1062_v19, %v1054_v18 }
 0x110   : > { %2670 = vmatmul.mubr.msk.f32.gmra.mrb[16].mxu1 %vm505_vm2, %v638_v30  ;;  %v1055_v30 = vmul.f32 %v3199_v27, %v3199_v27 }
 0x112   : > { %v3209_v33 = vadd.f32 %v1063_v31, %v1055_v30 }
 0x1c3   : > { %v581_v35 = vpop.f32.mrb[0].mxu1 }
 0x1c4   : > { %v3214_v36 = vadd.f32 %v2659_v34, %v581_v35  ;;  %v2742_v37 = vpop.f32.mrb[1].mxu1 }
 0x1c6   : > { %v595_v38 = vmul.f32 %v3214_v36, %v3214_v36 }
 0x1c7   : > { %v586_v39 = vpop.f32.mrb[2].mxu1 }
 0x1c8   : > { %v3218_v41 = vadd.f32 %v2659_v34, %v586_v39  ;;  %v2745_v43 = vpop.f32.mrb[3].mxu1  ;;  %v598_v44 = vsel %vm505_vm2, %v595_v38, 0.0 }
 0x1c9   : > { %599 = vadd.xlane.f32.xlu0 %v598_v44 }
 0x1ca   : > { %v596_v45 = vmul.f32 %v3218_v41, %v3218_v41 }
 0x1cb   : > { %v591_v46 = vpop.f32.mrb[4].mxu1 }
 0x1cc   : > { %v3223_v47 = vadd.f32 %v2659_v34, %v591_v46  ;;  %v601_v48 = vsel %vm505_vm2, %v596_v45, 0.0  ;;  %v2748_v49 = vpop.f32.mrb[5].mxu1 }
 0x1cd   : > { %602 = vadd.xlane.f32.xlu0 %v601_v48 }
 0x1ce   : > { %v597_v50 = vmul.f32 %v3223_v47, %v3223_v47 }
 0x1cf   : > { %v727_v51 = vpop.f32.mrb[6].mxu1 }
 0x1d0   : > { %v604_v52 = vsel %vm505_vm2, %v597_v50, 0.0  ;;  %v729_v53 = vpop.f32.mrb[7].mxu1 }
 0x1d1   : > { %605 = vadd.xlane.f32.xlu1 %v604_v52 }
 0x1d3   : > { %v733_v54 = vpop.f32.mrb[8].mxu1 }
 0x1d4   : > { %v969_v55 = vadd.f32 %v733_v54, %v727_v51  ;;  %v735_v56 = vpop.f32.mrb[9].mxu1 }
 0x1d5   : > { %v976_v59 = vadd.f32 %v735_v56, %v729_v53 }
 0x1d6   : > { %v970_v60 = vrot.slane %v969_v55, 4 }
 0x1d7   : > { %v977_v62 = vrot.slane %v976_v59, 4  ;;  %v804_v63 = vpop.f32.mrb[10].mxu1 }
 0x1d8   : > { %v971_v0 = vadd.f32 %v970_v60, %v969_v55  ;;  %v806_v1 = vpop.f32.mrb[11].mxu1 }
 0x1d9   : > { %v978_v2 = vadd.f32 %v977_v62, %v976_v59 }
 0x1da   : > { %v972_v3 = vrot.slane %v971_v0, 2 }
 0x1db   : > { %v979_v4 = vrot.slane %v978_v2, 2  ;;  %v810_v5 = vpop.f32.mrb[12].mxu1 }
 0x1dc   : > { %v973_v7 = vadd.f32 %v972_v3, %v971_v0  ;;  %v983_v8 = vadd.f32 %v810_v5, %v804_v63  ;;  %v812_v9 = vpop.f32.mrb[13].mxu1 }
 0x1dd   : > { %v980_v10 = vadd.f32 %v979_v4, %v978_v2  ;;  %v990_v11 = vadd.f32 %v812_v9, %v806_v1 }
 0x1de   : > { %v974_v12 = vrot.slane %v973_v7, 1  ;;  %v984_v13 = vrot.slane %v983_v8, 4 }
 0x1df   : > { %v981_v14 = vrot.slane %v980_v10, 1  ;;  %v991_v17 = vrot.slane %v990_v11, 4  ;;  %v3229_v18 = vpop.f32.mrb[14].mxu1 }
 0x1e0   : > { %v975_v19 = vadd.f32 %v974_v12, %v973_v7  ;;  %v985_v21 = vadd.f32 %v984_v13, %v983_v8  ;;  %v3231_v24 = vpop.f32.mrb[15].mxu1 }
 0x1e1   : > { %v982_v26 = vadd.f32 %v981_v14, %v980_v10  ;;  %v992_v30 = vadd.f32 %v991_v17, %v990_v11 }
 0x1e2   : > { %v1026_v31 = vmul.f32 0.0625, %v975_v19  ;;  %v986_v34 = vrot.slane %v985_v21, 2 }
 0x1e3   : > { %v1027_v35 = vmul.f32 0.0625, %v982_v26  ;;  %v993_v37 = vrot.slane %v992_v30, 2  ;;  %v964_v38 = vpop.f32.mrb[16].mxu1 }
 0x1e4   : > { %v1034_v39 = vsub.f32 %v727_v51, %v1026_v31  ;;  %v1042_v43 = vsub.f32 %v733_v54, %v1026_v31  ;;  %v987_v44 = vadd.f32 %v986_v34, %v985_v21  ;;  %v1011_v45 = vadd.f32 %v964_v38, %v3229_v18  ;;  %v966_v46 = vpop.f32.mrb[17].mxu1 }
 0x1e5   : > { %v1035_v48 = vsub.f32 %v729_v53, %v1027_v35  ;;  %v1043_v49 = vsub.f32 %v735_v56, %v1027_v35  ;;  %v994_v50 = vadd.f32 %v993_v37, %v992_v30  ;;  %v1018_v52 = vadd.f32 %v966_v46, %v3231_v24 }
 0x1e6   : > { %v1050_v55 = vmul.f32 %v1034_v39, %v1034_v39  ;;  %v1058_v59 = vmul.f32 %v1042_v43, %v1042_v43  ;;  %v1140_v60 = vpack.c.bf16 %v1042_v43, %v1034_v39  ;;  %v988_v62 = vrot.slane %v987_v44, 1 }
 0x1e7   : > { %v1051_v0 = vmul.f32 %v1035_v48, %v1035_v48  ;;  %v1059_v2 = vmul.f32 %v1043_v49, %v1043_v49  ;;  %v1141_v3 = vpack.c.bf16 %v1043_v49, %v1035_v48  ;;  %v995_v4 = vrot.slane %v994_v50, 1 }
 0x1e8   : > { %v3235_v7 = vadd.f32 %v1058_v59, %v1050_v55  ;;  %v989_v51 = vadd.f32 %v988_v62, %v987_v44  ;;  %v1012_v54 = vrot.slane %v1011_v45, 4  ;;  %v1019_v8 = vrot.slane %v1018_v52, 4 }
 0x1e9   : > { %v3237_v10 = vadd.f32 %v1059_v2, %v1051_v0  ;;  %v996_v53 = vadd.f32 %v995_v4, %v994_v50  ;;  %1154 = vmatprep.subr.bf16.mxu0 %v1141_v3 }
 0x1ea   : > { %v1028_v56 = vmul.f32 0.0625, %v989_v51  ;;  %v1013_v11 = vadd.f32 %v1012_v54, %v1011_v45  ;;  %v1020_v12 = vadd.f32 %v1019_v8, %v1018_v52  ;;  %1155 = vmatpush1.bf16.msra.mxu0 %v1140_v60 }
 0x1eb   : > { %v1029_v13 = vmul.f32 0.0625, %v996_v53  ;;  %1256 = vmatprep.subr.bf16.mxu0 %v1145_v32  ;;  %v2978_v32 = vmov 0  }
 0x1ec   : > { %v1036_v14 = vsub.f32 %v804_v63, %v1028_v56  ;;  %v1044_v17 = vsub.f32 %v810_v5, %v1028_v56  ;;  %v1014_v19 = vrot.slane %v1013_v11, 2  ;;  %v1021_v30 = vrot.slane %v1020_v12, 2  ;;  %1186 = vmatprep.mubr.bf16.mxu0 %v2978_v32  ;;  %1237 = vmatprep.mubr.bf16.mxu1 %v2978_v32 }
 0x1ed   : > { %v1037_v21 = vsub.f32 %v806_v1, %v1029_v13  ;;  %v1045_v26 = vsub.f32 %v812_v9, %v1029_v13 }
 0x1ee   : > { %v1052_v31 = vmul.f32 %v1036_v14, %v1036_v14  ;;  %v1060_v34 = vmul.f32 %v1044_v17, %v1044_v17  ;;  %v1142_v35 = vpack.c.bf16 %v1044_v17, %v1036_v14  ;;  %v1015_v45 = vadd.f32 %v1014_v19, %v1013_v11 }
 0x1ef   : > { %v1053_v37 = vmul.f32 %v1037_v21, %v1037_v21  ;;  %v1061_v39 = vmul.f32 %v1045_v26, %v1045_v26  ;;  %v1143_v43 = vpack.c.bf16 %v1045_v26, %v1037_v21  ;;  %v1022_v48 = vadd.f32 %v1021_v30, %v1020_v12 }
 0x1f0   : > { %v3242_v44 = vadd.f32 %v1060_v34, %v1052_v31  ;;  %v1016_v27 = vrot.slane %v1015_v45, 1 }
 0x1f1   : > { %v3244_v49 = vadd.f32 %v1061_v39, %v1053_v37  ;;  %1205 = vmatprep.subr.bf16.mxu1 %v1143_v43  ;;  %v1023_v29 = vrot.slane %v1022_v48, 1 }
 0x1f2   : > { %1206 = vmatpush1.bf16.msra.mxu1 %v1142_v35  ;;  %v1017_v63 = vadd.f32 %v1016_v27, %v1015_v45 }
 0x1f3   : > { %v1024_v1 = vadd.f32 %v1023_v29, %v1022_v48 }
 0x1f4   : > { %v1032_v5 = vmul.f32 0.0625, %v1017_v63 }
 0x1f5   : > { %v1033_v9 = vmul.f32 0.0625, %v1024_v1 }
 0x1f6   : > { %v1040_v50 = vsub.f32 %v3229_v18, %v1032_v5  ;;  %v1048_v52 = vsub.f32 %v964_v38, %v1032_v5 }
 0x1f7   : > { %v1041_v55 = vsub.f32 %v3231_v24, %v1033_v9  ;;  %v1049_v59 = vsub.f32 %v966_v46, %v1033_v9 }
 0x1f8   : > { %v1056_v60 = vmul.f32 %v1040_v50, %v1040_v50  ;;  %v1064_v62 = vmul.f32 %v1048_v52, %v1048_v52  ;;  %v1146_v0 = vpack.c.bf16 %v1048_v52, %v1040_v50 }
 0x1f9   : > { %v1057_v2 = vmul.f32 %v1041_v55, %v1041_v55  ;;  %v1065_v3 = vmul.f32 %v1049_v59, %v1049_v59  ;;  %v1147_v4 = vpack.c.bf16 %v1049_v59, %v1041_v55 }
 0x1fa   : > { %v3250_v51 = vadd.f32 %v1064_v62, %v1056_v60 }
 0x1fb   : > { %v3252_v54 = vadd.f32 %v1065_v3, %v1057_v2  ;;  %1307 = vmatprep.subr.bf16.mxu1 %v1147_v4 }
 0x1fd   : > { %v1116_v3 = vrot.slane %v3252_v54, 4 }
 0x256   : > { %v600_v8 = vpop.xlane.xlu0 %599 }
 0x257   : > { %2811 = vrsqrt.f32 %v600_v8  ;;  %vm609_vm6 = vcmp.eq.f32.partialorder %v600_v8, inf  ;;  %v612_v46 = vand.u32 2147483648, %v600_v8  ;;  %vm611_vm7 = vcmp.eq.f32.partialorder %v600_v8, 0.0 }
 0x25a   : > { %v603_v53 = vpop.xlane.xlu0 %602 }
 0x25b   : > { %2813 = vrsqrt.f32 %v603_v53  ;;  %vm616_vm8 = vcmp.eq.f32.partialorder %v603_v53, inf  ;;  %v619_v17 = vand.u32 2147483648, %v603_v53  ;;  %vm618_vm9 = vcmp.eq.f32.partialorder %v603_v53, 0.0 }
 0x25e   : > { %v606_v18 = vpop.xlane.xlu1 %605 }
 0x25f   : > { %2815 = vrsqrt.f32 %v606_v18  ;;  %vm623_vm10 = vcmp.eq.f32.partialorder %v606_v18, inf  ;;  %v626_v34 = vand.u32 2147483648, %v606_v18  ;;  %vm625_vm11 = vcmp.eq.f32.partialorder %v606_v18, 0.0 }
 0x261   : > { %v2812_v38 = vpop.eup %2811 }
 0x262   : > { %v608_v24 = vmul.f32 %v2812_v38, %v600_v8 }
 0x264   : > { %v610_v56 = vsel %vm609_vm6, %v600_v8, %v608_v24 }
 0x265   : > { %v2814_v11 = vpop.eup %2813  ;;  %v613_v12 = vsel %vm611_vm7, %v612_v46, %v610_v56  ;;  %v1117_v46 = vadd.f32 %v1116_v3, %v3252_v54 }
 0x266   : > { %v628_v13 = vmax.f32 %v613_v12, 1e-12  ;;  %v615_v14 = vmul.f32 %v2814_v11, %v603_v53 }
 0x268   : > { %v617_v19 = vsel %vm616_vm8, %v603_v53, %v615_v14  ;;  %2817 = vrcp.f32 %v628_v13  ;;  %v1118_v13 = vrot.slane %v1117_v46, 2 }
 0x269   : > { %v2816_v21 = vpop.eup %2815  ;;  %v620_v26 = vsel %vm618_vm9, %v619_v17, %v617_v19 }
 0x26a   : > { %v629_v30 = vmax.f32 %v620_v26, 1e-12  ;;  %v622_v31 = vmul.f32 %v2816_v21, %v606_v18 }
 0x26c   : > { %2819 = vrcp.f32 %v629_v30  ;;  %v624_v35 = vsel %vm623_vm10, %v606_v18, %v622_v31 }
 0x26d   : > { %v627_v37 = vsel %vm625_vm11, %v626_v34, %v624_v35 }
 0x26e   : > { %v630_v39 = vmax.f32 %v627_v37, 1e-12 }
 0x270   : > { %2821 = vrcp.f32 %v630_v39 }
 0x272   : > { %v2818_v43 = vpop.eup %2817 }
 0x273   : > { %v632_v48 = vmul.f32 %v2818_v43, %v3214_v36 }
 0x276   : > { %v2820_v45 = vpop.eup %2819 }
 0x277   : > { %v634_v27 = vmul.f32 %v2820_v45, %v3218_v41 }
 0x279   : > { %v1138_v29 = vpack.c.bf16 %v634_v27, %v632_v48 }
 0x27a   : > { %v2822_v63 = vpop.eup %2821 }
 0x27b   : > { %2671 = vmatmul.mubr.msk.bf16.vlgmr.msra.gmra.mrb[12].mxu0 %vm505_vm2, %v1138_v29  ;;  %2673 = vmatmul.mubr.msk.bf16.vlgmr.msra.gmra.mrb[20].mxu1 %vm505_vm2, %v1138_v29  ;;  %v636_v1 = vmul.f32 %v2822_v63, %v3223_v47 }
 0x27c   : > { %1257 = vmatpush1.bf16.msra.mxu0 %v1144_v20  ;;  %1308 = vmatpush1.bf16.msra.mxu1 %v1146_v0  ;;  %v1109_v0 = vrot.slane %v3250_v51, 4 }
 0x27d   : > { %1196 = vmatprep.mubr.bf16.mxu0 %v2978_v32  ;;  %1247 = vmatprep.mubr.bf16.mxu1 %v2978_v32  ;;  %v1139_v36 = vpack.c.bf16 %v636_v1, %v636_v1 }
 0x27e   : > { %2781 = vmatprep.subr.bf16.mxu0 %v3090_v22  ;;  %2789 = vmatprep.subr.bf16.mxu1 %v3100_v25  ;;  %v2086_v22 = vld [vmem:[%s368_s22] sm:$0x1]  ;;  %v1067_v25 = vrot.slane %v3235_v7, 4  ;;  %v1110_v24 = vadd.f32 %v1109_v0, %v3250_v51 }
 0x280   : > { %v1111_v12 = vrot.slane %v1110_v24, 2 }
 0x282   : > { %v1112_v19 = vadd.f32 %v1111_v12, %v1110_v24 }
 0x283   : > { %2672 = vmatmul.mubr.msk.bf16.gmra.mrb[16].mxu0 %vm505_vm2, %v1139_v36  ;;  %2674 = vmatmul.mubr.msk.bf16.gmra.mrb[24].mxu1 %vm505_vm2, %v1139_v36 }
 0x284   : > { %1288 = vmatprep.mubr.bf16.mxu0 %v2978_v32  ;;  %1339 = vmatprep.mubr.bf16.mxu1 %v2978_v32  ;;  %v1113_v31 = vrot.slane %v1112_v19, 1 }
 0x28b   : > { %2675 = vmatmul.mubr.msk.bf16.vlgmr.msra.gmra.mrb[20].mxu0 %vm505_vm2, %v1138_v29  ;;  %2677 = vmatmul.mubr.msk.bf16.vlgmr.msra.gmra.mrb[28].mxu1 %vm505_vm2, %v1138_v29 }
 0x28c   : > { %1298 = vmatprep.mubr.bf16.mxu0 %v2978_v32  ;;  %1349 = vmatprep.mubr.bf16.mxu1 %v2978_v32 }
 0x28d   : > { %2783 = vmatpush1.bf16.msra.mxu0 %v3135_v40  ;;  %2791 = vmatpush1.bf16.msra.mxu1 %v3108_v28  ;;  %v1074_v28 = vrot.slane %v3237_v10, 4  ;;  %v1081_v40 = vrot.slane %v3242_v44, 4 }
 0x28e   : > { %2785 = vmatprep.subr.bf16.mxu0 %v3137_v42  ;;  %v1088_v42 = vrot.slane %v3244_v49, 4 }
 0x28f   : > { %v1082_v15 = vadd.f32 %v1081_v40, %v3242_v44  ;;  %v1102_v44 = vrot.slane %v3209_v33, 4 }
 0x291   : > { %v1083_v20 = vrot.slane %v1082_v15, 2  ;;  %v1103_v18 = vadd.f32 %v1102_v44, %v3209_v33 }
 0x293   : > { %2676 = vmatmul.mubr.msk.bf16.gmra.mrb[24].mxu0 %vm505_vm2, %v1139_v36  ;;  %2678 = vmatmul.mubr.msk.bf16.gmra.mrb[32].mxu1 %vm505_vm2, %v1139_v36  ;;  %v1084_v5 = vadd.f32 %v1083_v20, %v1082_v15  ;;  %v1104_v11 = vrot.slane %v1103_v18, 2 }
 0x294   : > { %2170 = vmatprep.mubr.f32.mxu0 %v2977_v6  ;;  %2312 = vmatprep.mubr.f32.mxu1 %v2977_v6 }
 0x295   : > { %v1085_v55 = vrot.slane %v1084_v5, 1  ;;  %v1105_v17 = vadd.f32 %v1104_v11, %v1103_v18 }
 0x297   : > { %v1086_v62 = vadd.f32 %v1085_v55, %v1084_v5  ;;  %v1106_v33 = vrot.slane %v1105_v17, 1 }
 0x299   : > { %v1124_v53 = vmax.f32 %v1086_v62, 1e-24  ;;  %v1107_v29 = vadd.f32 %v1106_v33, %v1105_v17 }
 0x29b   : > { %2679 = vmatmul.mubr.msk.f32.vlgmr.msra.gmra.mrb[10].mxu0 %vm505_vm2, %v2086_v22  ;;  %2681 = vmatmul.mubr.msk.f32.vlgmr.msra.gmra.mrb[18].mxu1 %vm505_vm2, %v2086_v22 }
 0x29c   : > { %2787 = vmatpush1.bf16.msra.mxu0 %v3161_v57  ;;  %2241 = vmatprep.mubr.f32.mxu0 %v2977_v6  ;;  %v1068_v57 = vadd.f32 %v1067_v25, %v3235_v7  ;;  %v1114_v25 = vadd.f32 %v1113_v31, %v1112_v19 }
 0x29d   : > { %2793 = vmatprep.subr.bf16.mxu0 %v3163_v58  ;;  %v1075_v58 = vadd.f32 %v1074_v28, %v3237_v10  ;;  %v1095_v10 = vrot.slane %v3197_v23, 4 }
 0x29e   : > { %v1069_v16 = vrot.slane %v1068_v57, 2  ;;  %v1128_v5 = vmax.f32 %v1114_v25, 1e-24 }
 0x29f   : > { %2680 = vmatmul.mubr.msk.f32.vlgmr.msra.gmra.mrb[28].mxu0 %vm505_vm2, %v2086_v22  ;;  %v1096_v8 = vadd.f32 %v1095_v10, %v3197_v23  ;;  %v1119_v23 = vadd.f32 %v1118_v13, %v1117_v46 }
 0x2a0   : > { %2795 = vmatpush1.bf16.msra.mxu0 %v3177_v61  ;;  %2383 = vmatprep.mubr.f32.mxu0 %v2977_v6  ;;  %v1089_v61 = vadd.f32 %v1088_v42, %v3244_v49  ;;  %v1076_v6 = vrot.slane %v1075_v58, 2  ;;  %v1070_v47 = vadd.f32 %v1069_v16, %v1068_v57 }
 0x2a1   : > { %v1097_v56 = vrot.slane %v1096_v8, 2  ;;  %v1120_v34 = vrot.slane %v1119_v23, 1 }
 0x2a2   : > { %v1090_v41 = vrot.slane %v1089_v61, 2  ;;  %v1077_v32 = vadd.f32 %v1076_v6, %v1075_v58  ;;  %v1071_v50 = vrot.slane %v1070_v47, 1 }
 0x2a3   : > { %2682 = vmatmul.mubr.msk.f32.vlgmr.msra.gmra.mrb[30].mxu0 %vm505_vm2, %v2086_v22  ;;  %v1098_v14 = vadd.f32 %v1097_v56, %v1096_v8  ;;  %v1121_v58 = vadd.f32 %v1120_v34, %v1119_v23 }
 0x2a4   : > { %v1091_v9 = vadd.f32 %v1090_v41, %v1089_v61  ;;  %v1078_v52 = vrot.slane %v1077_v32, 1  ;;  %v1072_v60 = vadd.f32 %v1071_v50, %v1070_v47  ;;  %v1127_v41 = vmax.f32 %v1107_v29, 1e-24 }
 0x2a5   : > { %v1099_v21 = vrot.slane %v1098_v14, 1 }
 0x2a6   : > { %v1092_v59 = vrot.slane %v1091_v9, 1  ;;  %v1079_v7 = vadd.f32 %v1078_v52, %v1077_v32  ;;  %v1122_v2 = vmax.f32 %v1072_v60, 1e-24 }
 0x2a7   : > { %v1100_v39 = vadd.f32 %v1099_v21, %v1098_v14 }
 0x2a8   : > { %v1093_v49 = vadd.f32 %v1092_v59, %v1091_v9  ;;  %v1123_v4 = vmax.f32 %v1079_v7, 1e-24  ;;  %2823 = vrsqrt.f32 %v1122_v2  ;;  %v1129_v9 = vmax.f32 %v1121_v58, 1e-24 }
 0x2a9   : > { %v1126_v16 = vmax.f32 %v1100_v39, 1e-24 }
 0x2aa   : > { %v1125_v38 = vmax.f32 %v1093_v49, 1e-24  ;;  %2825 = vrsqrt.f32 %v1123_v4 }
 0x2ab   : > { %2827 = vrsqrt.f32 %v1124_v53 }
 0x2ac   : > { %2829 = vrsqrt.f32 %v1125_v38 }
 0x2ad   : > { %2831 = vrsqrt.f32 %v1126_v16 }
 0x2ae   : > { %2833 = vrsqrt.f32 %v1127_v41 }
 0x2af   : > { %2835 = vrsqrt.f32 %v1128_v5 }
 0x2b0   : > { %2837 = vrsqrt.f32 %v1129_v9 }
 0x2b2   : > { %v2824_v26 = vpop.eup %2823 }
 0x2b4   : > { %v2826_v30 = vpop.eup %2825 }
 0x2b5   : > { %v2828_v51 = vpop.eup %2827 }
 0x2b6   : > { %v2830_v37 = vpop.eup %2829 }
 0x34e   : > { %v1188_v35 = vpop.f32.mrb[12].mxu0  ;;  %v1239_v54 = vpop.f32.mrb[20].mxu1 }
 0x34f   : > { %v1358_v43 = vmul.f32 %v2824_v26, %v1188_v35  ;;  %v1360_v45 = vmul.f32 %v2828_v51, %v1239_v54  ;;  %v1190_v48 = vpop.f32.mrb[13].mxu0  ;;  %v1241_v27 = vpop.f32.mrb[21].mxu1 }
 0x350   : > { %v1359_v63 = vmul.f32 %v2826_v30, %v1190_v48  ;;  %v1361_v1 = vmul.f32 %v2830_v37, %v1241_v27  ;;  %v1192_v36 = vpop.f32.mrb[14].mxu0  ;;  %v1243_v22 = vpop.f32.mrb[22].mxu1 }
 0x351   : > { %v1366_v28 = vmul.f32 %v2824_v26, %v1192_v36  ;;  %v1368_v40 = vmul.f32 %v2828_v51, %v1243_v22  ;;  %v1194_v42 = vpop.f32.mrb[15].mxu0  ;;  %v1245_v57 = vpop.f32.mrb[23].mxu1 }
 0x352   : > { %v1367_v15 = vmul.f32 %v2826_v30, %v1194_v42  ;;  %v1369_v61 = vmul.f32 %v2830_v37, %v1245_v57  ;;  %v3345_v36 = vpop.eup %2831 }
 0x353   : > { %v1382_v6 = vmax.f32 %v1358_v43, %v1366_v28  ;;  %v1384_v20 = vmax.f32 %v1360_v45, %v1368_v40  ;;  %v3352_v58 = vpop.eup %2833 }
 0x354   : > { %v1383_v47 = vmax.f32 %v1359_v63, %v1367_v15  ;;  %v1385_v32 = vmax.f32 %v1361_v1, %v1369_v61 }
 0x356   : > { %v1198_v50 = vpop.f32.mrb[16].mxu0  ;;  %v1249_v52 = vpop.f32.mrb[24].mxu1 }
 0x357   : > { %v1374_v55 = vmul.f32 %v2824_v26, %v1198_v50  ;;  %v1376_v59 = vmul.f32 %v2828_v51, %v1249_v52  ;;  %v1200_v60 = vpop.f32.mrb[17].mxu0  ;;  %v1251_v7 = vpop.f32.mrb[25].mxu1 }
 0x358   : > { %v1375_v10 = vmul.f32 %v2826_v30, %v1200_v60  ;;  %v1377_v62 = vmul.f32 %v2830_v37, %v1251_v7  ;;  %v1202_v44 = vpop.f32.mrb[18].mxu0  ;;  %v1253_v49 = vpop.f32.mrb[26].mxu1 }
 0x359   : > { %v3310_v0 = vmax.f32 %v1382_v6, %v1374_v55  ;;  %v3312_v2 = vmax.f32 %v1384_v20, %v1376_v59  ;;  %v1203_v3 = vpop.f32.mrb[19].mxu0  ;;  %v1254_v4 = vpop.f32.mrb[27].mxu1 }
 0x35a   : > { %v3314_v8 = vmax.f32 %v1383_v47, %v1375_v10  ;;  %v3316_v53 = vmax.f32 %v1385_v32, %v1377_v62  ;;  %v3354_v20 = vpop.eup %2835 }
 0x35b   : > { %v1399_v18 = vsel %vm1398_vm12, %v3310_v0, 0.0  ;;  %v1672_v38 = vrot.slane %v3310_v0, 2  ;;  %v1413_v24 = vsel %vm1398_vm12, %v3312_v2, 0.0  ;;  %v1674_v46 = vrot.slane %v3312_v2, 2  ;;  %v3356_v9 = vpop.eup %2837 }
 0x35c   : > { %v1400_v56 = vrot.slane %v1399_v18, 4  ;;  %v1414_v11 = vrot.slane %v1413_v24, 4  ;;  %v1406_v12 = vsel %vm1398_vm12, %v3314_v8, 0.0  ;;  %v1673_v13 = vrot.slane %v3314_v8, 2 }
 0x35d   : > { %v1688_v14 = vsel %vm1398_vm12, %v1672_v38, 0.0  ;;  %v1702_v17 = vsel %vm1398_vm12, %v1674_v46, 0.0  ;;  %v1407_v19 = vrot.slane %v1406_v12, 4  ;;  %v1420_v23 = vsel %vm1398_vm12, %v3316_v53, 0.0 }
 0x35e   : > { %v1401_v21 = vadd.f32 %v1400_v56, %v1399_v18  ;;  %v1689_v26 = vrot.slane %v1688_v14, 4  ;;  %v1415_v33 = vadd.f32 %v1414_v11, %v1413_v24  ;;  %v1703_v30 = vrot.slane %v1702_v17, 4  ;;  %v3331_v31 = vpop.f32.mrb[20].mxu0  ;;  %v3333_v51 = vpop.f32.mrb[28].mxu1 }
 0x35f   : > { %v1408_v34 = vadd.f32 %v1407_v19, %v1406_v12  ;;  %v1695_v35 = vsel %vm1398_vm12, %v1673_v13, 0.0  ;;  %v1421_v54 = vrot.slane %v1420_v23, 4  ;;  %v1675_v37 = vrot.slane %v3316_v53, 2  ;;  %v3337_v39 = vpop.f32.mrb[21].mxu0  ;;  %v3339_v43 = vpop.f32.mrb[29].mxu1 }
 0x360   : > { %v1402_v45 = vrot.slane %v1401_v21, 2  ;;  %v1690_v48 = vadd.f32 %v1689_v26, %v1688_v14  ;;  %v1416_v27 = vrot.slane %v1415_v33, 2  ;;  %v1704_v29 = vadd.f32 %v1703_v30, %v1702_v17  ;;  %v3341_v63 = vpop.f32.mrb[22].mxu0  ;;  %v3343_v1 = vpop.f32.mrb[30].mxu1 }
 0x361   : > { %v1409_v22 = vrot.slane %v1408_v34, 2  ;;  %v1696_v25 = vrot.slane %v1695_v35, 4  ;;  %v1422_v28 = vadd.f32 %v1421_v54, %v1420_v23  ;;  %v1709_v40 = vsel %vm1398_vm12, %v1675_v37, 0.0  ;;  %v3348_v42 = vpop.f32.mrb[23].mxu0  ;;  %v3350_v57 = vpop.f32.mrb[31].mxu1 }
 0x362   : > { %v1403_v15 = vadd.f32 %v1402_v45, %v1401_v21  ;;  %v1691_v61 = vrot.slane %v1690_v48, 2  ;;  %v1417_v16 = vadd.f32 %v1416_v27, %v1415_v33  ;;  %v1705_v6 = vrot.slane %v1704_v29, 2 }
 0x363   : > { %v1410_v41 = vadd.f32 %v1409_v22, %v1408_v34  ;;  %v1697_v47 = vadd.f32 %v1696_v25, %v1695_v35  ;;  %v1423_v32 = vrot.slane %v1422_v28, 2  ;;  %v1710_v5 = vrot.slane %v1709_v40, 4 }
 0x364   : > { %v1404_v50 = vrot.slane %v1403_v15, 1  ;;  %v1692_v52 = vadd.f32 %v1691_v61, %v1690_v48  ;;  %v1418_v55 = vrot.slane %v1417_v16, 1  ;;  %v1706_v59 = vadd.f32 %v1705_v6, %v1704_v29 }
 0x365   : > { %v1411_v60 = vrot.slane %v1410_v41, 1  ;;  %v1698_v7 = vrot.slane %v1697_v47, 2  ;;  %v1424_v10 = vadd.f32 %v1423_v32, %v1422_v28  ;;  %v1711_v62 = vadd.f32 %v1710_v5, %v1709_v40 }
 0x366   : > { %v1405_v44 = vadd.f32 %v1404_v50, %v1403_v15  ;;  %v1693_v49 = vrot.slane %v1692_v52, 1  ;;  %v1419_v3 = vadd.f32 %v1418_v55, %v1417_v16  ;;  %v1707_v4 = vrot.slane %v1706_v59, 1  ;;  %v3358_v18 = vpop.f32.mrb[24].mxu0  ;;  %v3360_v38 = vpop.f32.mrb[32].mxu1 }
 0x367   : > { %v1412_v24 = vadd.f32 %v1411_v60, %v1410_v41  ;;  %v1699_v46 = vadd.f32 %v1698_v7, %v1697_v47  ;;  %v1425_v56 = vrot.slane %v1424_v10, 1  ;;  %v1712_v11 = vrot.slane %v1711_v62, 2  ;;  %v3362_v12 = vpop.f32.mrb[25].mxu0  ;;  %v3364_v13 = vpop.f32.mrb[33].mxu1 }
 0x368   : > { %v1456_v14 = vmul.f32 0.5, %v1405_v44  ;;  %v1694_v17 = vadd.f32 %v1693_v49, %v1692_v52  ;;  %v1458_v19 = vmul.f32 0.5, %v1419_v3  ;;  %v1708_v23 = vadd.f32 %v1707_v4, %v1706_v59  ;;  %v1304_v21 = vpop.f32.mrb[26].mxu0  ;;  %v1355_v26 = vpop.f32.mrb[34].mxu1 }
 0x369   : > { %v1457_v33 = vmul.f32 0.5, %v1412_v24  ;;  %v1700_v30 = vrot.slane %v1699_v46, 1  ;;  %v1426_v34 = vadd.f32 %v1425_v56, %v1424_v10  ;;  %v1713_v35 = vadd.f32 %v1712_v11, %v1711_v62  ;;  %v1305_v54 = vpop.f32.mrb[27].mxu0  ;;  %v1356_v37 = vpop.f32.mrb[35].mxu1 }
 0x36a   : > { %v3367_v45 = vsub.f32 %v3310_v0, %v1456_v14  ;;  %v1744_v48 = vmul.f32 0.5, %v1694_v17  ;;  %v3370_v27 = vsub.f32 %v3312_v2, %v1458_v19  ;;  %v1746_v29 = vmul.f32 0.5, %v1708_v23 }
 0x36b   : > { %v3373_v22 = vsub.f32 %v3314_v8, %v1457_v33  ;;  %v1701_v25 = vadd.f32 %v1700_v30, %v1699_v46  ;;  %v1459_v28 = vmul.f32 0.5, %v1426_v34  ;;  %v1714_v40 = vrot.slane %v1713_v35, 1 }
 0x36c   : > { %v1472_v15 = vmul.f32 %v3367_v45, %v3367_v45  ;;  %v3378_v61 = vsub.f32 %v3310_v0, %v1744_v48  ;;  %v1474_v16 = vmul.f32 %v3370_v27, %v3370_v27  ;;  %v3383_v6 = vsub.f32 %v3312_v2, %v1746_v29 }
 0x36d   : > { %v1473_v41 = vmul.f32 %v3373_v22, %v3373_v22  ;;  %v1745_v47 = vmul.f32 0.5, %v1701_v25  ;;  %v3388_v32 = vsub.f32 %v3316_v53, %v1459_v28  ;;  %v1715_v5 = vadd.f32 %v1714_v40, %v1713_v35 }
 0x36e   : > { %v1480_v50 = vsel %vm1398_vm12, %v1472_v15, 0.0  ;;  %v1760_v0 = vmul.f32 %v3378_v61, %v3378_v61  ;;  %v1494_v52 = vsel %vm1398_vm12, %v1474_v16, 0.0  ;;  %v1762_v55 = vmul.f32 %v3383_v6, %v3383_v6  ;;  %v3396_v2 = vpop.f32.mrb[10].mxu0 }
 0x36f   : > { %v1481_v59 = vrot.slane %v1480_v50, 4  ;;  %v1495_v60 = vrot.slane %v1494_v52, 4  ;;  %v1487_v7 = vsel %vm1398_vm12, %v1473_v41, 0.0  ;;  %v3400_v10 = vsub.f32 %v3314_v8, %v1745_v47  ;;  %v3402_v62 = vpop.f32.mrb[11].mxu0 }
 0x370   : > { %v1776_v44 = vrot.slane %v1760_v0, 2  ;;  %v1778_v49 = vrot.slane %v1762_v55, 2  ;;  %v1488_v3 = vrot.slane %v1487_v7, 4  ;;  %v1475_v4 = vmul.f32 %v3388_v32, %v3388_v32 }
 0x371   : > { %v1482_v24 = vadd.f32 %v1481_v59, %v1480_v50  ;;  %v1496_v46 = vadd.f32 %v1495_v60, %v1494_v52  ;;  %v1761_v56 = vmul.f32 %v3400_v10, %v3400_v10  ;;  %v1747_v11 = vmul.f32 0.5, %v1715_v5 }
 0x372   : > { %v1792_v14 = vsel %vm1398_vm12, %v1776_v44, 0.0  ;;  %v1806_v17 = vsel %vm1398_vm12, %v1778_v49, 0.0  ;;  %v1489_v8 = vadd.f32 %v1488_v3, %v1487_v7  ;;  %v1501_v19 = vsel %vm1398_vm12, %v1475_v4, 0.0  ;;  %v3411_v23 = vpop.f32.mrb[28].mxu0  ;;  %v3421_v7 = vpop.f32.mrb[18].mxu1 }
 0x373   : > { %v1483_v21 = vrot.slane %v1482_v24, 2  ;;  %v1793_v26 = vrot.slane %v1792_v14, 4  ;;  %v1497_v33 = vrot.slane %v1496_v46, 2  ;;  %v1807_v30 = vrot.slane %v1806_v17, 4  ;;  %v3413_v34 = vpop.f32.mrb[29].mxu0 }
 0x374   : > { %v1490_v35 = vrot.slane %v1489_v8, 2  ;;  %v1777_v54 = vrot.slane %v1761_v56, 2  ;;  %v1502_v37 = vrot.slane %v1501_v19, 4  ;;  %v3416_v48 = vsub.f32 %v3316_v53, %v1747_v11 }
 0x375   : > { %v1484_v29 = vadd.f32 %v1483_v21, %v1482_v24  ;;  %v1794_v25 = vadd.f32 %v1793_v26, %v1792_v14  ;;  %v1498_v28 = vadd.f32 %v1497_v33, %v1496_v46  ;;  %v1808_v40 = vadd.f32 %v1807_v30, %v1806_v17  ;;  %v3425_v46 = vpop.f32.mrb[19].mxu1 }
 0x376   : > { %v1491_v15 = vadd.f32 %v1490_v35, %v1489_v8  ;;  %v1799_v16 = vsel %vm1398_vm12, %v1777_v54, 0.0  ;;  %v1503_v41 = vadd.f32 %v1502_v37, %v1501_v19  ;;  %v1763_v47 = vmul.f32 %v3416_v48, %v3416_v48  ;;  %v3423_v44 = vpop.f32.mrb[30].mxu0 }
 0x377   : > { %v1485_v5 = vrot.slane %v1484_v29, 1  ;;  %v1795_v50 = vrot.slane %v1794_v25, 2  ;;  %v1499_v0 = vrot.slane %v1498_v28, 1  ;;  %v1809_v52 = vrot.slane %v1808_v40, 2  ;;  %v3427_v56 = vpop.f32.mrb[31].mxu0 }
 0x378   : > { %v1492_v55 = vrot.slane %v1491_v15, 1  ;;  %v1800_v59 = vrot.slane %v1799_v16, 4  ;;  %v1504_v60 = vrot.slane %v1503_v41, 2  ;;  %v1779_v53 = vrot.slane %v1763_v47, 2 }
 0x379   : > { %v1486_v49 = vadd.f32 %v1485_v5, %v1484_v29  ;;  %v1796_v3 = vadd.f32 %v1795_v50, %v1794_v25  ;;  %v1500_v4 = vadd.f32 %v1499_v0, %v1498_v28  ;;  %v1810_v24 = vadd.f32 %v1809_v52, %v1808_v40 }
 0x37a   : > { %v1493_v11 = vadd.f32 %v1492_v55, %v1491_v15  ;;  %v1801_v14 = vadd.f32 %v1800_v59, %v1799_v16  ;;  %v1505_v17 = vadd.f32 %v1504_v60, %v1503_v41  ;;  %v1813_v8 = vsel %vm1398_vm12, %v1779_v53, 0.0 }
 0x37b   : > { %v1536_v19 = vmul.f32 0.5, %v1486_v49  ;;  %v1797_v21 = vrot.slane %v1796_v3, 1  ;;  %v1538_v26 = vmul.f32 0.5, %v1500_v4  ;;  %v1811_v33 = vrot.slane %v1810_v24, 1 }
 0x37c   : > { %v1537_v30 = vmul.f32 0.5, %v1493_v11  ;;  %v1802_v35 = vrot.slane %v1801_v14, 2  ;;  %v1506_v54 = vrot.slane %v1505_v17, 1  ;;  %v1814_v37 = vrot.slane %v1813_v8, 4 }
 0x37d   : > { %v1544_v29 = vadd.f32 1e-05, %v1536_v19  ;;  %v1798_v25 = vadd.f32 %v1797_v21, %v1796_v3  ;;  %v1546_v28 = vadd.f32 1e-05, %v1538_v26  ;;  %v1812_v40 = vadd.f32 %v1811_v33, %v1810_v24 }
 0x37e   : > { %v1545_v47 = vadd.f32 1e-05, %v1537_v30  ;;  %v1803_v5 = vadd.f32 %v1802_v35, %v1801_v14  ;;  %v1507_v50 = vadd.f32 %v1506_v54, %v1505_v17  ;;  %v1815_v15 = vadd.f32 %v1814_v37, %v1813_v8 }
 0x37f   : > { %2839 = vrsqrt.f32 %v1544_v29  ;;  %v1848_v16 = vmul.f32 0.5, %v1798_v25  ;;  %v1850_v41 = vmul.f32 0.5, %v1812_v40  ;;  %v1362_v0 = vmul.f32 %v3345_v36, %v3331_v31 }
 0x380   : > { %2841 = vrsqrt.f32 %v1546_v28  ;;  %v1804_v52 = vrot.slane %v1803_v5, 1  ;;  %v1539_v55 = vmul.f32 0.5, %v1507_v50  ;;  %v1816_v59 = vrot.slane %v1815_v15, 2 }
 0x381   : > { %v1856_v60 = vadd.f32 1e-05, %v1848_v16  ;;  %v1858_v53 = vadd.f32 1e-05, %v1850_v41  ;;  %2843 = vrsqrt.f32 %v1545_v47  ;;  %v1364_v49 = vmul.f32 %v3354_v20, %v3333_v51 }
 0x382   : > { %v1805_v3 = vadd.f32 %v1804_v52, %v1803_v5  ;;  %v1547_v4 = vadd.f32 1e-05, %v1539_v55  ;;  %v1817_v24 = vadd.f32 %v1816_v59, %v1815_v15  ;;  %v1363_v11 = vmul.f32 %v3352_v58, %v3337_v39 }
 0x383   : > { %2845 = vrsqrt.f32 %v1856_v60  ;;  %v1365_v31 = vmul.f32 %v3356_v9, %v3339_v43  ;;  %v1370_v14 = vmul.f32 %v3345_v36, %v3341_v63  ;;  %v1372_v17 = vmul.f32 %v3354_v20, %v3343_v1 }
 0x384   : > { %2847 = vrsqrt.f32 %v1858_v53  ;;  %v1849_v8 = vmul.f32 0.5, %v1805_v3  ;;  %v1818_v19 = vrot.slane %v1817_v24, 1  ;;  %v1371_v51 = vmul.f32 %v3352_v58, %v3348_v42 }
 0x385   : > { %2849 = vrsqrt.f32 %v1547_v4  ;;  %v1386_v21 = vmax.f32 %v1362_v0, %v1370_v14  ;;  %v1388_v26 = vmax.f32 %v1364_v49, %v1372_v17  ;;  %v1373_v39 = vmul.f32 %v3356_v9, %v3350_v57 }
 0x386   : > { %v1857_v33 = vadd.f32 1e-05, %v1849_v8  ;;  %v1819_v43 = vadd.f32 %v1818_v19, %v1817_v24  ;;  %v1387_v30 = vmax.f32 %v1363_v11, %v1371_v51  ;;  %v1378_v63 = vmul.f32 %v3345_v36, %v3358_v18 }
 0x387   : > { %v1389_v35 = vmax.f32 %v1365_v31, %v1373_v39  ;;  %v1380_v1 = vmul.f32 %v3354_v20, %v3360_v38  ;;  %v1379_v54 = vmul.f32 %v3352_v58, %v3362_v12  ;;  %v1381_v42 = vmul.f32 %v3356_v9, %v3364_v13 }
 0x388   : > { %2851 = vrsqrt.f32 %v1857_v33  ;;  %v1851_v37 = vmul.f32 0.5, %v1819_v43  ;;  %v3454_v29 = vmax.f32 %v1386_v21, %v1378_v63 }
 0x389   : > { %v2840_v57 = vpop.eup %2839  ;;  %v3456_v25 = vmax.f32 %v1388_v26, %v1380_v1  ;;  %v3458_v28 = vmax.f32 %v1387_v30, %v1379_v54  ;;  %v3460_v36 = vmax.f32 %v1389_v35, %v1381_v42 }
 0x38a   : > { %v2842_v18 = vpop.eup %2841  ;;  %v1560_v20 = vmul.f32 %v2840_v57, %v3367_v45  ;;  %v1859_v38 = vadd.f32 1e-05, %v1851_v37  ;;  %v1427_v58 = vsel %vm1398_vm12, %v3454_v29, 0.0  ;;  %v1676_v9 = vrot.slane %v3454_v29, 2 }
 0x38b   : > { %v2844_v12 = vpop.eup %2843  ;;  %v1562_v13 = vmul.f32 %v2842_v18, %v3370_v27  ;;  %v1428_v40 = vrot.slane %v1427_v58, 4  ;;  %v1441_v47 = vsel %vm1398_vm12, %v3456_v25, 0.0  ;;  %v1678_v5 = vrot.slane %v3456_v25, 2 }
 0x38c   : > { %v1568_v50 = vmul.f32 10.0, %v1560_v20  ;;  %v1561_v15 = vmul.f32 %v2844_v12, %v3373_v22  ;;  %2853 = vrsqrt.f32 %v1859_v38  ;;  %v1716_v45 = vsel %vm1398_vm12, %v1676_v9, 0.0 }
 0x38d   : > { %v2846_v16 = vpop.eup %2845  ;;  %v1570_v41 = vmul.f32 10.0, %v1562_v13  ;;  %v1429_v0 = vadd.f32 %v1428_v40, %v1427_v58  ;;  %v1717_v52 = vrot.slane %v1716_v45, 4  ;;  %v1442_v55 = vrot.slane %v1441_v47, 4 }
 0x38e   : > { %v2848_v59 = vpop.eup %2847  ;;  %v1576_v60 = vmul.f32 1.442695, %v1568_v50  ;;  %v1872_v27 = vmul.f32 %v2846_v16, %v3378_v61  ;;  %v1569_v53 = vmul.f32 10.0, %v1561_v15  ;;  %v1730_v49 = vsel %vm1398_vm12, %v1678_v5, 0.0 }
 0x38f   : > { %v2850_v3 = vpop.eup %2849  ;;  %v1580_v4 = vmul.f32 1.442695, %v1570_v41  ;;  %v1874_v24 = vmul.f32 %v2848_v59, %v3383_v6  ;;  %v1430_v22 = vrot.slane %v1429_v0, 2  ;;  %v1718_v11 = vadd.f32 %v1717_v52, %v1716_v45 }
 0x390   : > { %2855 = vpow2.f32 %v1576_v60  ;;  %v1880_v31 = vmul.f32 10.0, %v1872_v27  ;;  %v1578_v14 = vmul.f32 1.442695, %v1569_v53  ;;  %v1563_v17 = vmul.f32 %v2850_v3, %v3388_v32 }
 0x391   : > { %2857 = vpow2.f32 %v1580_v4  ;;  %v1882_v8 = vmul.f32 10.0, %v1874_v24  ;;  %v1431_v19 = vadd.f32 %v1430_v22, %v1429_v0  ;;  %v1719_v51 = vrot.slane %v1718_v11, 2 }
 0x392   : > { %v2852_v21 = vpop.eup %2851  ;;  %v1888_v61 = vmul.f32 1.442695, %v1880_v31  ;;  %2859 = vpow2.f32 %v1578_v14  ;;  %v1571_v26 = vmul.f32 10.0, %v1563_v17  ;;  %v1443_v39 = vadd.f32 %v1442_v55, %v1441_v47 }
 0x393   : > { %v1892_v33 = vmul.f32 1.442695, %v1882_v8  ;;  %v1873_v43 = vmul.f32 %v2852_v21, %v3400_v10  ;;  %v1432_v6 = vrot.slane %v1431_v19, 1  ;;  %v1720_v30 = vadd.f32 %v1719_v51, %v1718_v11 }
 0x394   : > { %2861 = vpow2.f32 %v1888_v61  ;;  %v1582_v63 = vmul.f32 1.442695, %v1571_v26  ;;  %v1444_v35 = vrot.slane %v1443_v39, 2  ;;  %v1731_v1 = vrot.slane %v1730_v49, 4 }
 0x395   : > { %2863 = vpow2.f32 %v1892_v33  ;;  %v1881_v32 = vmul.f32 10.0, %v1873_v43  ;;  %v1433_v54 = vadd.f32 %v1432_v6, %v1431_v19  ;;  %v1721_v42 = vrot.slane %v1720_v30, 1 }
 0x396   : > { %v2854_v37 = vpop.eup %2853  ;;  %2865 = vpow2.f32 %v1582_v63  ;;  %v1445_v57 = vadd.f32 %v1444_v35, %v1443_v39  ;;  %v1732_v18 = vadd.f32 %v1731_v1, %v1730_v49  ;;  %v1434_v47 = vsel %vm1398_vm12, %v3458_v28, 0.0 }
 0x397   : > { %v1890_v20 = vmul.f32 1.442695, %v1881_v32  ;;  %v1875_v38 = vmul.f32 %v2854_v37, %v3416_v48  ;;  %v1460_v58 = vmul.f32 0.5, %v1433_v54  ;;  %v1722_v9 = vadd.f32 %v1721_v42, %v1720_v30 }
 0x398   : > { %v1446_v10 = vrot.slane %v1445_v57, 1  ;;  %v1733_v12 = vrot.slane %v1732_v18, 2  ;;  %v1435_v27 = vrot.slane %v1434_v47, 4  ;;  %v1677_v31 = vrot.slane %v3458_v28, 2 }
 0x399   : > { %2867 = vpow2.f32 %v1890_v20  ;;  %v3479_v13 = vsub.f32 %v3454_v29, %v1460_v58  ;;  %v1748_v40 = vmul.f32 0.5, %v1722_v9  ;;  %v1883_v50 = vmul.f32 10.0, %v1875_v38 }
 0x39a   : > { %v3483_v5 = vpop.eup %2855  ;;  %v1447_v15 = vadd.f32 %v1446_v10, %v1445_v57  ;;  %v1734_v45 = vadd.f32 %v1733_v12, %v1732_v18  ;;  %v1436_v43 = vadd.f32 %v1435_v27, %v1434_v47  ;;  %v3519_v6 = vmul.f32 -1.442695, %v3396_v2 }
 0x39b   : > { %v3485_v16 = vpop.eup %2857  ;;  %v1592_v48 = vsel %vm1398_vm12, %v3483_v5, 0.0  ;;  %v1476_v41 = vmul.f32 %v3479_v13, %v3479_v13  ;;  %v3492_v0 = vsub.f32 %v3454_v29, %v1748_v40  ;;  %v1894_v22 = vmul.f32 1.442695, %v1883_v50 }
 0x39c   : > { %v3494_v52 = vpop.eup %2859  ;;  %v1593_v55 = vrot.slane %v1592_v48, 4  ;;  %v1606_v59 = vsel %vm1398_vm12, %v3485_v16, 0.0  ;;  %v1462_v60 = vmul.f32 0.5, %v1447_v15  ;;  %v1735_v4 = vrot.slane %v1734_v45, 1 }
 0x39d   : > { %v1607_v53 = vrot.slane %v1606_v59, 4  ;;  %v1599_v49 = vsel %vm1398_vm12, %v3494_v52, 0.0  ;;  %v1508_v3 = vsel %vm1398_vm12, %v1476_v41, 0.0  ;;  %v1764_v11 = vmul.f32 %v3492_v0, %v3492_v0 }
 0x39e   : > { %v3501_v24 = vpop.eup %2861  ;;  %v1509_v29 = vrot.slane %v1508_v3, 4  ;;  %v1600_v8 = vrot.slane %v1599_v49, 4  ;;  %v3510_v19 = vsub.f32 %v3456_v25, %v1462_v60  ;;  %v3514_v21 = vadd.f32 %v1593_v55, %v1592_v48 }
 0x39f   : > { %v3506_v14 = vpop.eup %2863  ;;  %v1912_v17 = vrot.slane %v3501_v24, 2  ;;  %v3516_v61 = vadd.f32 %v1607_v53, %v1606_v59  ;;  %v1780_v39 = vrot.slane %v1764_v11, 2  ;;  %v1736_v33 = vadd.f32 %v1735_v4, %v1734_v45 }
 0x3a0   : > { %v3512_v51 = vpop.eup %2865  ;;  %v1510_v26 = vadd.f32 %v1509_v29, %v1508_v3  ;;  %v1914_v63 = vrot.slane %v3506_v14, 2  ;;  %2869 = vpow2.f32 %v1894_v22  ;;  %v1723_v35 = vsel %vm1398_vm12, %v1677_v31, 0.0 }
 0x3a1   : > { %v1928_v30 = vsel %vm1398_vm12, %v1912_v17, 0.0  ;;  %v3526_v32 = vadd.f32 %v1600_v8, %v1599_v49  ;;  %v1820_v42 = vsel %vm1398_vm12, %v1780_v39, 0.0  ;;  %v1478_v37 = vmul.f32 %v3510_v19, %v3510_v19 }
 0x3a2   : > { %v1511_v54 = vrot.slane %v1510_v26, 2  ;;  %v1595_v2 = vrot.slane %v3514_v21, 2  ;;  %v1609_v57 = vrot.slane %v3516_v61, 2  ;;  %v3535_v18 = vsel %vm1398_vm12, %v3512_v51, 0.0 }
 0x3a3   : > { %v3524_v1 = vpop.eup %2867  ;;  %v1821_v20 = vrot.slane %v1820_v42, 4  ;;  %v1929_v38 = vrot.slane %v1928_v30, 4  ;;  %v1522_v9 = vsel %vm1398_vm12, %v1478_v37, 0.0  ;;  %v1750_v10 = vmul.f32 0.5, %v1736_v33 }
 0x3a4   : > { %v1512_v58 = vadd.f32 %v1511_v54, %v1510_v26  ;;  %v3539_v12 = vsel %vm1398_vm12, %v1914_v63, 0.0  ;;  %v1913_v40 = vrot.slane %v3524_v1, 2  ;;  %v1523_v50 = vrot.slane %v1522_v9, 4 }
 0x3a5   : > { %v1822_v47 = vadd.f32 %v1821_v20, %v1820_v42  ;;  %v1602_v15 = vrot.slane %v3526_v32, 2  ;;  %v3544_v48 = vsub.f32 %v3456_v25, %v1750_v10  ;;  %v1437_v41 = vrot.slane %v1436_v43, 2 }
 0x3a6   : > { %v1513_v45 = vrot.slane %v1512_v58, 1  ;;  %v1614_v55 = vrot.slane %v3535_v18, 4  ;;  %v1524_v60 = vadd.f32 %v1523_v50, %v1522_v9  ;;  %v1724_v27 = vrot.slane %v1723_v35, 4 }
 0x3a7   : > { %v1823_v59 = vrot.slane %v1822_v47, 2  ;;  %v1943_v53 = vrot.slane %v3539_v12, 4  ;;  %v1766_v3 = vmul.f32 %v3544_v48, %v3544_v48  ;;  %v1438_v4 = vadd.f32 %v1437_v41, %v1436_v43 }
 0x3a8   : > { %v1514_v49 = vadd.f32 %v1513_v45, %v1512_v58  ;;  %v1935_v22 = vsel %vm1398_vm12, %v1913_v40, 0.0  ;;  %v1525_v11 = vrot.slane %v1524_v60, 2  ;;  %v1725_v31 = vadd.f32 %v1724_v27, %v1723_v35 }
 0x3a9   : > { %v1824_v29 = vadd.f32 %v1823_v59, %v1822_v47  ;;  %v1930_v25 = vadd.f32 %v1929_v38, %v1928_v30  ;;  %v1782_v8 = vrot.slane %v1766_v3, 2  ;;  %v1439_v26 = vrot.slane %v1438_v4, 1 }
 0x3aa   : > { %v1540_v17 = vmul.f32 0.5, %v1514_v49  ;;  %v3551_v39 = vpop.eup %2869  ;;  %v1526_v63 = vadd.f32 %v1525_v11, %v1524_v60  ;;  %v1726_v54 = vrot.slane %v1725_v31, 2  ;;  %v1448_v42 = vsel %vm1398_vm12, %v3460_v36, 0.0 }
 0x3ab   : > { %v1825_v33 = vrot.slane %v1824_v29, 1  ;;  %v1936_v37 = vrot.slane %v1935_v22, 4  ;;  %v1834_v43 = vsel %vm1398_vm12, %v1782_v8, 0.0  ;;  %v1440_v58 = vadd.f32 %v1439_v26, %v1438_v4 }
 0x3ac   : > { %v1548_v20 = vadd.f32 1e-05, %v1540_v17  ;;  %v1527_v10 = vrot.slane %v1526_v63, 1  ;;  %v1835_v35 = vrot.slane %v1834_v43, 4  ;;  %v1727_v30 = vadd.f32 %v1726_v54, %v1725_v31 }
 0x3ad   : > { %v1826_v9 = vadd.f32 %v1825_v33, %v1824_v29  ;;  %v1461_v38 = vmul.f32 0.5, %v1440_v58  ;;  %v1449_v40 = vrot.slane %v1448_v42, 4  ;;  %v1679_v47 = vrot.slane %v3460_v36, 2 }
 0x3ae   : > { %2871 = vrsqrt.f32 %v1548_v20  ;;  %v1528_v45 = vadd.f32 %v1527_v10, %v1526_v63  ;;  %v1836_v41 = vadd.f32 %v1835_v35, %v1834_v43  ;;  %v1728_v59 = vrot.slane %v1727_v30, 1 }
 0x3af   : > { %v1852_v50 = vmul.f32 0.5, %v1826_v9  ;;  %v3558_v60 = vsub.f32 %v3458_v28, %v1461_v38  ;;  %v1450_v27 = vadd.f32 %v1449_v40, %v1448_v42  ;;  %v1737_v49 = vsel %vm1398_vm12, %v1679_v47, 0.0 }
 0x3b0   : > { %v1596_v3 = vadd.f32 %v1595_v2, %v3514_v21  ;;  %v1542_v29 = vmul.f32 0.5, %v1528_v45  ;;  %v1837_v11 = vrot.slane %v1836_v41, 2  ;;  %v1729_v31 = vadd.f32 %v1728_v59, %v1727_v30 }
 0x3b1   : > { %v1860_v4 = vadd.f32 1e-05, %v1852_v50  ;;  %v1477_v17 = vmul.f32 %v3558_v60, %v3558_v60  ;;  %v1451_v8 = vrot.slane %v1450_v27, 2  ;;  %v1738_v26 = vrot.slane %v1737_v49, 4 }
 0x3b2   : > { %v1597_v33 = vrot.slane %v1596_v3, 1  ;;  %v1550_v63 = vadd.f32 1e-05, %v1542_v29  ;;  %v1838_v54 = vadd.f32 %v1837_v11, %v1836_v41  ;;  %v1749_v20 = vmul.f32 0.5, %v1729_v31 }
 0x3b3   : > { %2873 = vrsqrt.f32 %v1860_v4  ;;  %v3564_v43 = vadd.f32 %v1936_v37, %v1935_v22  ;;  %v1515_v42 = vsel %vm1398_vm12, %v1477_v17, 0.0  ;;  %v1452_v58 = vadd.f32 %v1451_v8, %v1450_v27 }
 0x3b4   : > { %v1739_v21 = vadd.f32 %v1738_v26, %v1737_v49  ;;  %2875 = vrsqrt.f32 %v1550_v63  ;;  %v1839_v2 = vrot.slane %v1838_v54, 1  ;;  %v1516_v9 = vrot.slane %v1515_v42, 4 }
 0x3b5   : > { %v3568_v10 = vsub.f32 %v3458_v28, %v1749_v20  ;;  %v1453_v35 = vrot.slane %v1452_v58, 1  ;;  %v1598_v38 = vadd.f32 %v1597_v33, %v1596_v3  ;;  %v1931_v40 = vrot.slane %v1930_v25, 2 }
 0x3b6   : > { %v1740_v30 = vrot.slane %v1739_v21, 2  ;;  %v1840_v47 = vadd.f32 %v1839_v2, %v1838_v54  ;;  %v1517_v50 = vadd.f32 %v1516_v9, %v1515_v42  ;;  %2877 = vpow2.f32 %v3519_v6 }
 0x3b7   : > { %v1765_v22 = vmul.f32 %v3568_v10, %v3568_v10  ;;  %v1454_v45 = vadd.f32 %v1453_v35, %v1452_v58  ;;  %v1932_v59 = vadd.f32 %v1931_v40, %v1930_v25  ;;  %v1603_v28 = vadd.f32 %v1602_v15, %v3526_v32 }
 0x3b8   : > { %v2872_v37 = vpop.eup %2871  ;;  %v1741_v41 = vadd.f32 %v1740_v30, %v1739_v21  ;;  %v1854_v49 = vmul.f32 0.5, %v1840_v47  ;;  %v1518_v3 = vrot.slane %v1517_v50, 2  ;;  %2879 = vrcp.f32 %v1598_v38 }
 0x3b9   : > { %v1564_v27 = vmul.f32 %v2872_v37, %v3479_v13  ;;  %v1781_v4 = vrot.slane %v1765_v22, 2  ;;  %v1463_v29 = vmul.f32 0.5, %v1454_v45  ;;  %v1933_v31 = vrot.slane %v1932_v59, 1 }
 0x3ba   : > { %v1742_v11 = vrot.slane %v1741_v41, 1  ;;  %v1862_v8 = vadd.f32 1e-05, %v1854_v49  ;;  %v1519_v6 = vadd.f32 %v1518_v3, %v1517_v50  ;;  %v1604_v32 = vrot.slane %v1603_v28, 1 }
 0x3bb   : > { %v1572_v17 = vmul.f32 10.0, %v1564_v27  ;;  %v1827_v26 = vsel %vm1398_vm12, %v1781_v4, 0.0  ;;  %v3579_v25 = vsub.f32 %v3460_v36, %v1463_v29  ;;  %v1934_v20 = vadd.f32 %v1933_v31, %v1932_v59 }
 0x3bc   : > { %v1828_v33 = vrot.slane %v1827_v26, 4  ;;  %v1743_v63 = vadd.f32 %v1742_v11, %v1741_v41  ;;  %2881 = vrsqrt.f32 %v1862_v8  ;;  %v1520_v54 = vrot.slane %v1519_v6, 1 }
 0x3bd   : > { %v2874_v15 = vpop.eup %2873  ;;  %v1584_v13 = vmul.f32 1.442695, %v1572_v17  ;;  %v1479_v21 = vmul.f32 %v3579_v25, %v3579_v25  ;;  %v1915_v35 = vrot.slane %v3551_v39, 2  ;;  %v1938_v38 = vrot.slane %v3564_v43, 2 }
 0x3be   : > { %v1876_v42 = vmul.f32 %v2874_v15, %v3492_v0  ;;  %v1829_v58 = vadd.f32 %v1828_v33, %v1827_v26  ;;  %v1751_v2 = vmul.f32 0.5, %v1743_v63  ;;  %v2876_v9 = vpop.eup %2875  ;;  %v1521_v30 = vadd.f32 %v1520_v54, %v1519_v6 }
 0x3bf   : > { %2883 = vpow2.f32 %v1584_v13  ;;  %v1566_v47 = vmul.f32 %v2876_v9, %v3510_v19  ;;  %v1529_v22 = vsel %vm1398_vm12, %v1479_v21, 0.0  ;;  %v1605_v59 = vadd.f32 %v1604_v32, %v1603_v28 }
 0x3c0   : > { %v1884_v40 = vmul.f32 10.0, %v1876_v42  ;;  %v1830_v50 = vrot.slane %v1829_v58, 2  ;;  %v2878_v37 = vpop.eup %2877  ;;  %v1541_v0 = vmul.f32 0.5, %v1521_v30  ;;  %v1530_v45 = vrot.slane %v1529_v22, 4 }
 0x3c1   : > { %v3589_v41 = vsub.f32 %v3460_v36, %v1751_v2  ;;  %v1574_v49 = vmul.f32 10.0, %v1566_v47  ;;  %2885 = vrcp.f32 %v1934_v20  ;;  %v2414_v19 = vadd.f32 1.0, %v2878_v37 }
 0x3c2   : > { %v1896_v27 = vmul.f32 1.442695, %v1884_v40  ;;  %v1831_v3 = vadd.f32 %v1830_v50, %v1829_v58  ;;  %v1549_v4 = vadd.f32 1e-05, %v1541_v0  ;;  %v1531_v29 = vadd.f32 %v1530_v45, %v1529_v22  ;;  %v2880_v31 = vpop.eup %2879 }
 0x3c3   : > { %v1767_v11 = vmul.f32 %v3589_v41, %v3589_v41  ;;  %v1588_v17 = vmul.f32 1.442695, %v1574_v49  ;;  %v1939_v6 = vadd.f32 %v1938_v38, %v3564_v43  ;;  %v3597_v36 = vadd.f32 %v1614_v55, %v3535_v18 }
 0x3c4   : > { %2887 = vpow2.f32 %v1896_v27  ;;  %v1832_v8 = vrot.slane %v1831_v3, 1  ;;  %v1532_v28 = vrot.slane %v1531_v29, 2  ;;  %v1949_v33 = vsel %vm1398_vm12, %v1915_v35, 0.0 }
 0x3c5   : > { %2889 = vrsqrt.f32 %v1549_v4  ;;  %v1783_v26 = vrot.slane %v1767_v11, 2  ;;  %v1940_v32 = vrot.slane %v1939_v6, 1  ;;  %v2684_v43 = vmul.f32 -1.442695, %v3402_v62 }
 0x3c6   : > { %2891 = vpow2.f32 %v1588_v17  ;;  %v1833_v63 = vadd.f32 %v1832_v8, %v1831_v3  ;;  %v2882_v15 = vpop.eup %2881  ;;  %v1533_v13 = vadd.f32 %v1532_v28, %v1531_v29  ;;  %v1950_v58 = vrot.slane %v1949_v33, 4 }
 0x3c7   : > { %v1841_v54 = vsel %vm1398_vm12, %v1783_v26, 0.0  ;;  %2893 = vrcp.f32 %v2414_v19  ;;  %v1878_v20 = vmul.f32 %v2882_v15, %v3544_v48  ;;  %v1941_v2 = vadd.f32 %v1940_v32, %v1939_v6 }
 0x3c8   : > { %v1853_v42 = vmul.f32 0.5, %v1833_v63  ;;  %v1842_v18 = vrot.slane %v1841_v54, 4  ;;  %2895 = vrcp.f32 %v1605_v59  ;;  %v1534_v21 = vrot.slane %v1533_v13, 1 }
 0x3c9   : > { %v3603_v55 = vpop.eup %2883  ;;  %2897 = vpow2.f32 %v2684_v43  ;;  %v1886_v35 = vmul.f32 10.0, %v1878_v20  ;;  %v1944_v48 = vadd.f32 %v1943_v53, %v3539_v12  ;;  %v1616_v37 = vrot.slane %v3597_v36, 2 }
 0x3ca   : > { %v1620_v9 = vsel %vm1398_vm12, %v3603_v55, 0.0  ;;  %v1861_v30 = vadd.f32 1e-05, %v1853_v42  ;;  %v1843_v38 = vadd.f32 %v1842_v18, %v1841_v54  ;;  %v1535_v47 = vadd.f32 %v1534_v21, %v1533_v13 }
 0x3cb   : > { %v1621_v40 = vrot.slane %v1620_v9, 4  ;;  %2899 = vrcp.f32 %v1941_v2  ;;  %v2886_v62 = vpop.eup %2885  ;;  %v1900_v50 = vmul.f32 1.442695, %v1886_v35  ;;  %v3611_v0 = vadd.f32 %v1950_v58, %v1949_v33 }
 0x3cc   : > { %2901 = vrsqrt.f32 %v1861_v30  ;;  %v1844_v22 = vrot.slane %v1843_v38, 2  ;;  %v1543_v45 = vmul.f32 0.5, %v1535_v47  ;;  %v1992_v59 = vmul.f32 %v2886_v62, %v3501_v24 }
 0x3cd   : > { %2903 = vpow2.f32 %v1900_v50  ;;  %v1656_v3 = vmul.f32 %v2880_v31, %v3483_v5  ;;  %v1610_v12 = vadd.f32 %v1609_v57, %v3516_v61  ;;  %v3620_v4 = vadd.f32 %v1621_v40, %v1620_v9 }
 0x3ce   : > { %v3614_v27 = vpop.eup %2887  ;;  %v1845_v49 = vadd.f32 %v1844_v22, %v1843_v38  ;;  %v1551_v11 = vadd.f32 1e-05, %v1543_v45  ;;  %v2008_v19 = vrot.slane %v1992_v59, 2  ;;  %v1945_v28 = vrot.slane %v1944_v48, 2 }
 0x3cf   : > { %v2890_v53 = vpop.eup %2889  ;;  %v1916_v29 = vrot.slane %v3614_v27, 2  ;;  %v1611_v6 = vrot.slane %v1610_v12, 1  ;;  %v1623_v54 = vrot.slane %v3620_v4, 2  ;;  %v2979_v20 = vmov 1983009808  }
 0x3d0   : > { %v3623_v17 = vpop.eup %2891  ;;  %v1565_v24 = vmul.f32 %v2890_v53, %v3558_v60  ;;  %v1846_v8 = vrot.slane %v1845_v49, 1  ;;  %2905 = vrsqrt.f32 %v1551_v11  ;;  %v2024_v57 = vadd.f32 %v2008_v19, %v1656_v3 }
 0x3d1   : > { %v2894_v26 = vpop.eup %2893  ;;  %v1956_v5 = vsel %vm1398_vm12, %v1916_v29, 0.0  ;;  %v1634_v61 = vsel %vm1398_vm12, %v3623_v17, 0.0  ;;  %v3632_v42 = vunpack.c.l.s4 %v2979_v20  ;;  %v1612_v38 = vadd.f32 %v1611_v6, %v1610_v12 }
 0x3d2   : > { %v2896_v31 = vpop.eup %2895  ;;  %v1957_v33 = vrot.slane %v1956_v5, 4  ;;  %v1635_v63 = vrot.slane %v1634_v61, 4  ;;  %v1573_v32 = vmul.f32 10.0, %v1565_v24  ;;  %v1847_v15 = vadd.f32 %v1846_v8, %v1845_v49 }
 0x3d3   : > { %v2898_v13 = vpop.eup %2897  ;;  %v3630_v60 = vmul.f32 0.5, %v2024_v57  ;;  %v2446_v43 = vrot.slane %v2894_v26, 7  ;;  %v1657_v2 = vmul.f32 %v2896_v31, %v3494_v52  ;;  %v1946_v40 = vadd.f32 %v1945_v28, %v1944_v48 }
 0x3d4   : > { %v1636_v18 = vadd.f32 %v1635_v63, %v1634_v61  ;;  %v1586_v58 = vmul.f32 1.442695, %v1573_v32  ;;  %v1855_v21 = vmul.f32 0.5, %v1847_v15  ;;  %v2415_v30 = vadd.f32 1.0, %v2898_v13 }
 0x3d5   : > { %v2900_v9 = vpop.eup %2899  ;;  %v3636_v35 = vadd.f32 %v2446_v43, %v3630_v60  ;;  %v1958_v62 = vadd.f32 %v1957_v33, %v1956_v5  ;;  %v1947_v49 = vrot.slane %v1946_v40, 1  ;;  %v2685_v53 = vmul.f32 -1.442695, %v3411_v23 }
 0x3d6   : > { %v2902_v47 = vpop.eup %2901  ;;  %2907 = vpow2.f32 %v1586_v58  ;;  %v1863_v50 = vadd.f32 1e-05, %v1855_v21  ;;  %v1993_v22 = vmul.f32 %v2900_v9, %v3524_v1  ;;  %v1637_v45 = vrot.slane %v1636_v18, 2 }
 0x3d7   : > { %v1877_v59 = vmul.f32 %v2902_v47, %v3568_v10  ;;  %2909 = vrcp.f32 %v2415_v30  ;;  %v3640_v3 = vpop.eup %2903  ;;  %v1617_v12 = vadd.f32 %v1616_v37, %v3597_v36  ;;  %v1948_v11 = vadd.f32 %v1947_v49, %v1946_v40 }
 0x3d8   : > { %2911 = vrsqrt.f32 %v1863_v50  ;;  %v2009_v52 = vrot.slane %v1993_v22, 2  ;;  %v1918_v48 = vrot.slane %v3640_v3, 2  ;;  %v1952_v10 = vrot.slane %v3611_v0, 2 }
 0x3d9   : > { %v1885_v29 = vmul.f32 10.0, %v1877_v59  ;;  %2913 = vrcp.f32 %v1612_v38  ;;  %v1618_v1 = vrot.slane %v1617_v12, 1  ;;  %v2686_v28 = vmul.f32 -1.442695, %v3413_v34 }
 0x3da   : > { %v2025_v19 = vadd.f32 %v2009_v52, %v1657_v2  ;;  %2915 = vpow2.f32 %v2685_v53  ;;  %v2906_v24 = vpop.eup %2905  ;;  %v1970_v8 = vsel %vm1398_vm12, %v1918_v48, 0.0  ;;  %v1953_v5 = vadd.f32 %v1952_v10, %v3611_v0 }
 0x3db   : > { %v1898_v6 = vmul.f32 1.442695, %v1885_v29  ;;  %2917 = vrcp.f32 %v1948_v11  ;;  %v1971_v23 = vrot.slane %v1970_v8, 4  ;;  %v1567_v36 = vmul.f32 %v2906_v24, %v3579_v25 }
 0x3dc   : > { %v3649_v37 = vmul.f32 0.5, %v2025_v19  ;;  %v1619_v26 = vadd.f32 %v1618_v1, %v1617_v12  ;;  %v1624_v61 = vadd.f32 %v1623_v54, %v3620_v4  ;;  %v1959_v57 = vrot.slane %v1958_v62, 2 }
 0x3dd   : > { %2919 = vpow2.f32 %v1898_v6  ;;  %v1575_v31 = vmul.f32 10.0, %v1567_v36  ;;  %v2052_v63 = vunpack.c.0.s8 %v3632_v42  ;;  %v1972_v32 = vadd.f32 %v1971_v23, %v1970_v8 }
 0x3de   : > { %v2048_v33 = vcombine.low %v3630_v60, %v3649_v37  ;;  %v1954_v34 = vrot.slane %v1953_v5, 1  ;;  %2921 = vpow2.f32 %v2686_v28  ;;  %v1960_v15 = vadd.f32 %v1959_v57, %v1958_v62 }
 0x3df   : > { %v1590_v13 = vmul.f32 1.442695, %v1575_v31  ;;  %v2053_v43 = vlaneseq  ;;  %2923 = vrcp.f32 %v1619_v26  ;;  %v1625_v20 = vrot.slane %v1624_v61, 1 }
 0x3e0   : > { %v3656_v25 = vpop.eup %2907  ;;  %v1955_v54 = vadd.f32 %v1954_v34, %v1953_v5  ;;  %v1961_v58 = vrot.slane %v1960_v15, 1  ;;  %v1638_v21 = vadd.f32 %v1637_v45, %v1636_v18  ;;  %v2687_v38 = vmul.f32 -1.442695, %v3421_v7 }
 0x3e1   : > { %v2910_v0 = vpop.eup %2909  ;;  %v1627_v4 = vsel %vm1398_vm12, %v3656_v25, 0.0  ;;  %2925 = vpow2.f32 %v1590_v13  ;;  %v1973_v50 = vrot.slane %v1972_v32, 2  ;;  %v3663_v49 = vmul.f32 0.5, %v3636_v35 }
 0x3e2   : > { %v2912_v2 = vpop.eup %2911  ;;  %v1628_v9 = vrot.slane %v1627_v4, 4  ;;  %v2447_v30 = vrot.slane %v2910_v0, 7  ;;  %2927 = vrcp.f32 %v1955_v54  ;;  %v1962_v62 = vadd.f32 %v1961_v58, %v1960_v15 }
 0x3e3   : > { %v2914_v40 = vpop.eup %2913  ;;  %v1879_v47 = vmul.f32 %v2912_v2, %v3589_v41  ;;  %v1626_v18 = vadd.f32 %v1625_v20, %v1624_v61  ;;  %v1639_v48 = vrot.slane %v1638_v21, 1  ;;  %v1974_v35 = vadd.f32 %v1973_v50, %v1972_v32 }
 0x3e4   : > { %v2916_v22 = vpop.eup %2915  ;;  %v1629_v59 = vadd.f32 %v1628_v9, %v1627_v4  ;;  %v2463_v52 = vadd.f32 %v2447_v30, %v3649_v37  ;;  %2929 = vrcp.f32 %v1962_v62  ;;  %v2689_v1 = vmul.f32 -1.442695, %v3423_v44 }
 0x3e5   : > { %v2918_v45 = vpop.eup %2917  ;;  %v1887_v53 = vmul.f32 10.0, %v1879_v47  ;;  %v2416_v12 = vadd.f32 1.0, %v2916_v22  ;;  %2931 = vpow2.f32 %v2687_v38  ;;  %v1975_v28 = vrot.slane %v1974_v35, 1 }
 0x3e6   : > { %v1630_v7 = vrot.slane %v1629_v59, 2  ;;  %v3666_v29 = vmul.f32 0.5, %v2463_v52  ;;  %v1994_v41 = vmul.f32 %v2918_v45, %v3506_v14  ;;  %v2054_v26 = vshrl.u32 %v2053_v43, 7 }
 0x3e7   : > { %v3669_v11 = vpop.eup %2919  ;;  %v1902_v19 = vmul.f32 1.442695, %v1887_v53  ;;  %2933 = vrcp.f32 %v2416_v12  ;;  %v1658_v5 = vmul.f32 %v2914_v40, %v3485_v16  ;;  %v1640_v44 = vadd.f32 %v1639_v48, %v1638_v21 }
 0x3e8   : > { %v1917_v10 = vrot.slane %v3669_v11, 2  ;;  %v2486_v24 = vcombine.low %v3663_v49, %v3666_v29  ;;  %v2010_v8 = vrot.slane %v1994_v41, 2  ;;  %2935 = vrcp.f32 %v1626_v18  ;;  %v2922_v6 = vpop.eup %2921 }
 0x3e9   : > { %2937 = vpow2.f32 %v1902_v19  ;;  %v1631_v23 = vadd.f32 %v1630_v7, %v1629_v59  ;;  %v2924_v14 = vpop.eup %2923  ;;  %v2417_v61 = vadd.f32 1.0, %v2922_v6  ;;  %v1976_v31 = vadd.f32 %v1975_v28, %v1974_v35 }
 0x3ea   : > { %v1963_v36 = vsel %vm1398_vm12, %v1917_v10, 0.0  ;;  %2939 = vpow2.f32 %v2689_v1  ;;  %v2980_v34 = vmov 1966171168   ;;  %v2026_v13 = vadd.f32 %v2010_v8, %v1658_v5 }
 0x3eb   : > { %v1964_v57 = vrot.slane %v1963_v36, 4  ;;  %v3677_v32 = vpop.eup %2925  ;;  %v2491_v15 = vunpack.c.l.s4 %v2980_v34  ;;  %2941 = vrcp.f32 %v2417_v61  ;;  %v2688_v20 = vmul.f32 -1.442695, %v3425_v46 }
 0x3ec   : > { %v2928_v0 = vpop.eup %2927  ;;  %v1641_v43 = vsel %vm1398_vm12, %v3677_v32, 0.0  ;;  %2943 = vrcp.f32 %v1976_v31  ;;  %v1632_v16 = vrot.slane %v1631_v23, 1  ;;  %v2690_v21 = vmul.f32 -1.442695, %v3427_v56 }
 0x3ed   : > { %v1965_v4 = vadd.f32 %v1964_v57, %v1963_v36  ;;  %v1642_v54 = vrot.slane %v1641_v43, 4  ;;  %v1995_v58 = vmul.f32 %v2928_v0, %v3551_v39  ;;  %2945 = vpow2.f32 %v2688_v20 }
 0x3ee   : > { %v2930_v2 = vpop.eup %2929  ;;  %v3686_v9 = vsub.s32 %v2052_v63, %v2054_v26  ;;  %v1659_v46 = vmul.f32 %v2924_v14, %v3512_v51  ;;  %2947 = vrcp.f32 %v1640_v44  ;;  %v2034_v47 = vmul.f32 0.5, %v2026_v13 }
 0x3ef   : > { %v1966_v30 = vrot.slane %v1965_v4, 2  ;;  %v2932_v38 = vpop.eup %2931  ;;  %v1643_v40 = vadd.f32 %v1642_v54, %v1641_v43  ;;  %v2011_v62 = vrot.slane %v1995_v58, 2  ;;  %v1996_v50 = vmul.f32 %v2930_v2, %v3614_v27 }
 0x3f0   : > { %v2492_v39 = vunpack.c.0.s8 %v2491_v15  ;;  %v2418_v59 = vadd.f32 1.0, %v2932_v38  ;;  %v1633_v52 = vadd.f32 %v1632_v16, %v1631_v23  ;;  %2949 = vpow2.f32 %v2690_v21 }
 0x3f1   : > { %v2934_v22 = vpop.eup %2933  ;;  %v1967_v56 = vadd.f32 %v1966_v30, %v1965_v4  ;;  %v1644_v45 = vrot.slane %v1643_v40, 2  ;;  %v2027_v63 = vadd.f32 %v2011_v62, %v1659_v46  ;;  %v2012_v41 = vrot.slane %v1996_v50, 2 }
 0x3f2   : > { %v2936_v18 = vpop.eup %2935  ;;  %v2448_v42 = vrot.slane %v2934_v22, 7  ;;  %2951 = vrcp.f32 %v2418_v59  ;;  %v2056_v19 = vrot.slane %v2048_v33, %v3686_v9  ;;  %v3697_v35 = vsub.s32 %v2492_v39, %v2054_v26 }
 0x3f3   : > { %v3690_v53 = vpop.eup %2937  ;;  %v1968_v51 = vrot.slane %v1967_v56, 1  ;;  %v2035_v7 = vmul.f32 0.5, %v2027_v63  ;;  %v1660_v1 = vmul.f32 %v2936_v18, %v3603_v55  ;;  %2953 = vrcp.f32 %v1633_v52 }
 0x3f4   : > { %v1919_v12 = vrot.slane %v3690_v53, 2  ;;  %v2464_v48 = vadd.f32 %v2448_v42, %v2034_v47  ;;  %v2940_v27 = vpop.eup %2939  ;;  %v1645_v23 = vadd.f32 %v1644_v45, %v1643_v40  ;;  %v2496_v58 = vrot.slane %v2486_v24, %v3697_v35 }
 0x3f5   : > { %v1969_v10 = vadd.f32 %v1968_v51, %v1967_v56  ;;  %v2942_v8 = vpop.eup %2941  ;;  %v2049_v28 = vcombine.low %v2034_v47, %v2035_v7  ;;  %v2420_v61 = vadd.f32 1.0, %v2940_v27  ;;  %v2028_v33 = vadd.f32 %v2012_v41, %v1660_v1 }
 0x3f6   : > { %v1977_v6 = vsel %vm1398_vm12, %v1919_v12, 0.0  ;;  %v2944_v14 = vpop.eup %2943  ;;  %v2449_v5 = vrot.slane %v2942_v8, 7  ;;  %v2472_v60 = vmul.f32 0.5, %v2464_v48  ;;  %v1646_v20 = vrot.slane %v1645_v23, 1 }
 0x3f7   : > { %v1978_v36 = vrot.slane %v1977_v6, 4  ;;  %2955 = vrcp.f32 %v1969_v10  ;;  %v2946_v57 = vpop.eup %2945  ;;  %v2063_v37 = vrot.slane %v2049_v28, %v3686_v9  ;;  %v1998_v55 = vmul.f32 %v2944_v14, %v3640_v3 }
 0x3f8   : > { %v2948_v26 = vpop.eup %2947  ;;  %v2465_v31 = vadd.f32 %v2449_v5, %v2035_v7  ;;  %2957 = vrcp.f32 %v2420_v61  ;;  %v2419_v34 = vadd.f32 1.0, %v2946_v57  ;;  %v2036_v3 = vmul.f32 0.5, %v2028_v33 }
 0x3f9   : > { %v1979_v44 = vadd.f32 %v1978_v36, %v1977_v6  ;;  %v2064_v15 = vcombine.low %v2056_v19, %v2063_v37  ;;  %v2014_v13 = vrot.slane %v1998_v55, 2  ;;  %v1662_v16 = vmul.f32 %v2948_v26, %v3623_v17 }
 0x3fa   : > { %v2473_v0 = vmul.f32 0.5, %v2465_v31  ;;  %2959 = vrcp.f32 %v2419_v34  ;;  %v2950_v43 = vpop.eup %2949  ;;  %v1647_v38 = vadd.f32 %v1646_v20, %v1645_v23 }
 0x3fb   : > { %v1980_v4 = vrot.slane %v1979_v44, 2  ;;  %2084 = vst [vmem:[%s3708_s25] sm:$0xff] %v2064_v15  ;;  %v2030_v30 = vadd.f32 %v2014_v13, %v1662_v16  ;;  %v2421_v17 = vadd.f32 1.0, %v2950_v43 }
 0x3fc   : > { %v2952_v54 = vpop.eup %2951  ;;  %v2487_v21 = vcombine.low %v2472_v60, %v2473_v0  ;;  %2961 = vrcp.f32 %v1647_v38 }
 0x3fd   : > { %v1981_v2 = vadd.f32 %v1980_v4, %v1979_v44  ;;  %v2450_v46 = vrot.slane %v2952_v54, 7  ;;  %v2954_v62 = vpop.eup %2953  ;;  %v2038_v52 = vmul.f32 0.5, %v2030_v30 }
 0x3fe   : > { %v2503_v40 = vrot.slane %v2487_v21, %v3697_v35  ;;  %v1661_v24 = vmul.f32 %v2954_v62, %v3656_v25 }
 0x3ff   : > { %v1982_v47 = vrot.slane %v1981_v2, 1  ;;  %v2466_v50 = vadd.f32 %v2450_v46, %v2036_v3 }
 0x400   : > { %v2518_v39 = vcombine.high %v2496_v58, %v2503_v40 }
 0x401   : > { %v2956_v22 = vpop.eup %2955  ;;  %v1983_v59 = vadd.f32 %v1982_v47, %v1981_v2  ;;  %v2474_v48 = vmul.f32 0.5, %v2466_v50 }
 0x402   : > { %v1997_v56 = vmul.f32 %v2956_v22, %v3669_v11  ;;  %v2958_v49 = vpop.eup %2957  ;;  %v2526_v44 = vrot.slane %v2518_v39, %v3697_v35 }
 0x403   : > { %2963 = vrcp.f32 %v1983_v59  ;;  %v2452_v29 = vrot.slane %v2958_v49, 7 }
 0x404   : > { %v2013_v18 = vrot.slane %v1997_v56, 2  ;;  %v2960_v45 = vpop.eup %2959  ;;  %2965 = vrcp.f32 %v2421_v17 }
 0x405   : > { %v2468_v42 = vadd.f32 %v2452_v29, %v2038_v52  ;;  %v2451_v51 = vrot.slane %v2960_v45, 7 }
 0x406   : > { %v2029_v63 = vadd.f32 %v2013_v18, %v1661_v24  ;;  %v2962_v27 = vpop.eup %2961 }
 0x407   : > { %v1663_v25 = vmul.f32 %v2962_v27, %v3677_v32  ;;  %v2476_v36 = vmul.f32 0.5, %v2468_v42 }
 0x408   : > { %v2037_v12 = vmul.f32 0.5, %v2029_v63 }
 0x40a   : > { %v2065_v7 = vcombine.low %v2036_v3, %v2037_v12  ;;  %v2467_v41 = vadd.f32 %v2451_v51, %v2037_v12 }
 0x40c   : > { %v2475_v19 = vmul.f32 0.5, %v2467_v41  ;;  %v2073_v5 = vrot.slane %v2065_v7, %v3686_v9 }
 0x40d   : > { %v2964_v1 = vpop.eup %2963 }
 0x40e   : > { %v2488_v11 = vcombine.low %v2474_v48, %v2475_v19  ;;  %v1999_v10 = vmul.f32 %v2964_v1, %v3690_v53  ;;  %v2966_v8 = vpop.eup %2965 }
 0x40f   : > { %v2453_v23 = vrot.slane %v2966_v8, 7 }
 0x410   : > { %v2015_v6 = vrot.slane %v1999_v10, 2  ;;  %v2510_v33 = vrot.slane %v2488_v11, %v3697_v35 }
 0x412   : > { %v2031_v28 = vadd.f32 %v2015_v6, %v1663_v25 }
 0x414   : > { %v2039_v14 = vmul.f32 0.5, %v2031_v28 }
 0x416   : > { %v2066_v61 = vcombine.low %v2038_v52, %v2039_v14  ;;  %v2469_v57 = vadd.f32 %v2453_v23, %v2039_v14 }
 0x418   : > { %v2080_v60 = vrot.slane %v2066_v61, %v3686_v9  ;;  %v2477_v37 = vmul.f32 0.5, %v2469_v57 }
 0x41a   : > { %v2081_v53 = vcombine.low %v2073_v5, %v2080_v60  ;;  %v2489_v55 = vcombine.low %v2476_v36, %v2477_v37 }
 0x41c   : > { %2085 = vst [vmem:[%s3708_s25 + $0x8] sm:$0xff] %v2081_v53  ;;  %v2517_v32 = vrot.slane %v2489_v55, %v3697_v35 }
 0x41e   : > { %v2519_v26 = vcombine.high %v2510_v33, %v2517_v32 }
 0x420   : > { %v2533_v31 = vrot.slane %v2519_v26, %v3697_v35 }
 0x422   : > { %v2534_v34 = vcombine.low %v2526_v44, %v2533_v31 }
 0x424   : > { %2536 = vst [vmem:[%s377_s28] sm:$0xff] %v2534_v34 }
 0x425 PF: > { %s20_s30 = sadd.s32 1, %s2973_s30  }
 0x426   : > { %p17_p4 = scmp.ge.s32.totalorder %s20_s30, 4  }
 0x428   :  { %19 = sbr.rel (!%p17_p4) target bundleno = 1 (0x1), region = 100 }

// kernel: _lambda_.2
= control target key start
LH: loop header
LB: loop body
LE: loop exit
PB: predicated region body
PF: predicated region fallthrough
CT: control target
= control target key end

     0   :  { %s3486_s3 = smov 4   ;;  %v3487_v43 = vmov 1983009808   ;;  %v198_v45 = vlaneseq  ;;  %s3488_s10 = smov 6   ;;  %vm3492_vm0 = vmmov 0   ;;  %vm406_vm1 = vcmask 523264   ;;  %s4081_s0 = inlined_call_operand.smem [shape: u32[30], index: -1, kind: input, shape index: {}] }
   0x1   :  { %s3527_s6 = sld [smem:[%s4081_s0 + %s3486_s3]]   ;;  %v196_v44 = vunpack.c.l.s4 %v3487_v43  ;;  %s3489_s14 = smov 1   ;;  %vm911_vm2 = vcmask 15360   ;;  %vm924_vm3 = vcmask 1041408   ;;  %vm1017_vm4 = vcmask 64512  }
   0x2   :  { %s3568_s9 = sld [smem:[%s4081_s0]]   ;;  %v199_v60 = vshrl.u32 %v198_v45, 7  ;;  %s3491_s18 = smov 8   ;;  %vm1607_vm5 = vcmask 261120   ;;  %vm1453_vm6 = vcmask 138240   ;;  %vm2351_vm7 = vcmask 25600  }
   0x3   :  { %v197_v59 = vunpack.c.0.s8 %v196_v44  ;;  %s3587_s13 = sld [smem:[%s4081_s0 + %s3488_s10]]   ;;  %s3494_s22 = smov 2  }
   0x4   :  { %s3609_s17 = sld [smem:[%s4081_s0 + %s3489_s14]]   ;;  %s3495_s26 = smov 10  }
   0x5   :  { %s3628_s21 = sld [smem:[%s4081_s0 + %s3491_s18]]   ;;  %s3496_s30 = smov 3  }
   0x6   :  { %s3651_s25 = sld [smem:[%s4081_s0 + %s3494_s22]]   ;;  %s3497_s4 = smov 12  }
   0x7   :  { %v138_v0 = vld [vmem:[%s3527_s6 + $0x80] sm:$0xff]  ;;  %v139_v1 = vld [vmem:[%s3527_s6 + $0x88] sm:$0xff]  ;;  %v140_v11 = vld [vmem:[%s3527_s6 + $0x90] sm:$0xff]  ;;  %s3668_s29 = sld [smem:[%s4081_s0 + %s3495_s26]]   ;;  %s3498_s8 = smov 18  }
   0x8   :  { %v122_v2 = vld [vmem:[%s3527_s6] sm:$0xff]  ;;  %v3120_v3 = vpack.c.bf16 %v139_v1, %v138_v0  ;;  %v123_v4 = vld [vmem:[%s3527_s6 + $0x8] sm:$0xff]  ;;  %v141_v13 = vld [vmem:[%s3527_s6 + $0x98] sm:$0xff]  ;;  %s3685_s3 = sld [smem:[%s4081_s0 + %s3496_s30]]   ;;  %s3499_s12 = smov 5  }
   0x9   :  { %v170_v5 = vld [vmem:[%s3527_s6 + $0x180] sm:$0xff]  ;;  %v171_v6 = vld [vmem:[%s3527_s6 + $0x188] sm:$0xff]  ;;  %v3122_v7 = vpack.c.bf16 %v123_v4, %v122_v2  ;;  %v124_v14 = vld [vmem:[%s3527_s6 + $0x10] sm:$0xff]  ;;  %v3124_v16 = vpack.c.bf16 %v141_v13, %v140_v11  ;;  %s3742_s7 = sld [smem:[%s4081_s0 + %s3497_s4]]   ;;  %s3500_s16 = smov 13  }
   0xa   :  { %v3152_v8 = vpack.c.bf16 %v171_v6, %v170_v5  ;;  %v154_v9 = vld [vmem:[%s3527_s6 + $0x100] sm:$0xff]  ;;  %v155_v10 = vld [vmem:[%s3527_s6 + $0x108] sm:$0xff]  ;;  %3121 = vmatprep.subr.bf16.mxu0 %v3120_v3  ;;  %v125_v15 = vld [vmem:[%s3527_s6 + $0x18] sm:$0xff]  ;;  %s3749_s11 = sld [smem:[%s4081_s0 + %s3498_s8]]   ;;  %s3501_s20 = smov 7  }
   0xb   :  { %v3154_v12 = vpack.c.bf16 %v155_v10, %v154_v9  ;;  %3123 = vmatpush3.bf16.msra.mxu0 %v3122_v7  ;;  %v3126_v17 = vpack.c.bf16 %v125_v15, %v124_v14  ;;  %v172_v18 = vld [vmem:[%s3527_s6 + $0x190] sm:$0xff]  ;;  %v173_v19 = vld [vmem:[%s3527_s6 + $0x198] sm:$0xff]  ;;  %v142_v23 = vld [vmem:[%s3527_s6 + $0xa0] sm:$0xff]  ;;  %v200_v10 = vsub.s32 %v197_v59, %v199_v60  ;;  %v3490_v60 = vmov 0.0|0.0   ;;  %s2365_s15 = sld [smem:[%s4081_s0 + %s3499_s12]]   ;;  %s3502_s24 = smov 11  }
   0xc   :  { %3153 = vmatprep.subr.bf16.mxu1 %v3152_v8  ;;  %v156_v20 = vld [vmem:[%s3527_s6 + $0x110] sm:$0xff]  ;;  %v3156_v21 = vpack.c.bf16 %v173_v19, %v172_v18  ;;  %v157_v22 = vld [vmem:[%s3527_s6 + $0x118] sm:$0xff]  ;;  %v143_v24 = vld [vmem:[%s3527_s6 + $0xa8] sm:$0xff]  ;;  %3125 = vmatprep.subr.bf16.mxu0 %v3124_v16  ;;  %s3763_s19 = sld [smem:[%s4081_s0 + %s3500_s16]]   ;;  %s3503_s28 = smov 9  }
   0xd   :  { %3155 = vmatpush3.bf16.msra.mxu1 %v3154_v12  ;;  %v3158_v25 = vpack.c.bf16 %v157_v22, %v156_v20  ;;  %v3128_v26 = vpack.c.bf16 %v143_v24, %v142_v23  ;;  %v126_v27 = vld [vmem:[%s3527_s6 + $0x20] sm:$0xff]  ;;  %v127_v28 = vld [vmem:[%s3527_s6 + $0x28] sm:$0xff]  ;;  %v144_v35 = vld [vmem:[%s3527_s6 + $0xb0] sm:$0xff]  ;;  %s2367_s23 = sld [smem:[%s4081_s0 + %s3501_s20]]   ;;  %s3504_s2 = smov 14  }
   0xe   :  { %v174_v29 = vld [vmem:[%s3527_s6 + $0x1a0] sm:$0xff]  ;;  %3157 = vmatprep.subr.bf16.mxu1 %v3156_v21  ;;  %v175_v30 = vld [vmem:[%s3527_s6 + $0x1a8] sm:$0xff]  ;;  %v3130_v33 = vpack.c.bf16 %v127_v28, %v126_v27  ;;  %v145_v36 = vld [vmem:[%s3527_s6 + $0xb8] sm:$0xff]  ;;  %s2371_s27 = sld [smem:[%s4081_s0 + %s3502_s24]]   ;;  %s3506_s10 = smov 16  }
   0xf   :  { %v158_v31 = vld [vmem:[%s3527_s6 + $0x120] sm:$0xff]  ;;  %v159_v32 = vld [vmem:[%s3527_s6 + $0x128] sm:$0xff]  ;;  %3127 = vmatpush3.bf16.msra.mxu0 %v3126_v17  ;;  %v3160_v34 = vpack.c.bf16 %v175_v30, %v174_v29  ;;  %v128_v37 = vld [vmem:[%s3527_s6 + $0x30] sm:$0xff]  ;;  %v3132_v39 = vpack.c.bf16 %v145_v36, %v144_v35  ;;  %s2369_s1 = sld [smem:[%s4081_s0 + %s3503_s28]]   ;;  %s3510_s26 = smov 24  }
  0x10   :  { %3129 = vmatprep.subr.bf16.mxu0 %v3128_v26  ;;  %v3162_v38 = vpack.c.bf16 %v159_v32, %v158_v31  ;;  %v129_v40 = vld [vmem:[%s3527_s6 + $0x38] sm:$0xff]  ;;  %v176_v41 = vld [vmem:[%s3527_s6 + $0x1b0] sm:$0xff]  ;;  %v146_v49 = vld [vmem:[%s3527_s6 + $0xc0] sm:$0xff]  ;;  %s2374_s5 = sld [smem:[%s4081_s0 + %s3504_s2]]   ;;  %s3511_s30 = smov 19  }
  0x11   :  { %3159 = vmatpush3.bf16.msra.mxu1 %v3158_v25  ;;  %v177_v42 = vld [vmem:[%s3527_s6 + $0x1b8] sm:$0xff]  ;;  %v160_v47 = vld [vmem:[%s3527_s6 + $0x130] sm:$0xff]  ;;  %v147_v50 = vld [vmem:[%s3527_s6 + $0xc8] sm:$0xff]  ;;  %v3134_v51 = vpack.c.bf16 %v129_v40, %v128_v37  ;;  %s2376_s14 = sld [smem:[%s4081_s0 + %s3506_s10]]   ;;  %s3512_s4 = smov 28  }
  0x12   :  { %3161 = vmatprep.subr.bf16.mxu1 %v3160_v34  ;;  %v3164_v46 = vpack.c.bf16 %v177_v42, %v176_v41  ;;  %v161_v48 = vld [vmem:[%s3527_s6 + $0x138] sm:$0xff]  ;;  %v178_v52 = vld [vmem:[%s3527_s6 + $0x1c0] sm:$0xff]  ;;  %v179_v53 = vld [vmem:[%s3527_s6 + $0x1c8] sm:$0xff]  ;;  %v3136_v55 = vpack.c.bf16 %v147_v50, %v146_v49  ;;  %s3513_s8 = smov 21   ;;  %s3517_s24 = smov 27  }
  0x13   :  { %3131 = vmatpush3.bf16.msra.mxu0 %v3130_v33  ;;  %v3166_v54 = vpack.c.bf16 %v161_v48, %v160_v47  ;;  %v130_v56 = vld [vmem:[%s3527_s6 + $0x40] sm:$0xff]  ;;  %v131_v57 = vld [vmem:[%s3527_s6 + $0x48] sm:$0xff]  ;;  %v3168_v61 = vpack.c.bf16 %v179_v53, %v178_v52  ;;  %v148_v63 = vld [vmem:[%s3527_s6 + $0xd0] sm:$0xff]  ;;  %s2381_s12 = sld [smem:[%s4081_s0 + %s3513_s8]]   ;;  %s3518_s28 = smov 29  }
  0x14   :  { %3133 = vmatprep.subr.bf16.mxu0 %v3132_v39  ;;  %v162_v58 = vld [vmem:[%s3527_s6 + $0x140] sm:$0xff]  ;;  %v163_v62 = vld [vmem:[%s3527_s6 + $0x148] sm:$0xff]  ;;  %v149_v0 = vld [vmem:[%s3527_s6 + $0xd8] sm:$0xff]  ;;  %v3138_v3 = vpack.c.bf16 %v131_v57, %v130_v56 }
  0x15   :  { %3163 = vmatpush3.bf16.msra.mxu1 %v3162_v38  ;;  %v180_v1 = vld [vmem:[%s3527_s6 + $0x1d0] sm:$0xff]  ;;  %v181_v2 = vld [vmem:[%s3527_s6 + $0x1d8] sm:$0xff]  ;;  %v3170_v5 = vpack.c.bf16 %v163_v62, %v162_v58  ;;  %v3140_v6 = vpack.c.bf16 %v149_v0, %v148_v63  ;;  %v150_v12 = vld [vmem:[%s3527_s6 + $0xe0] sm:$0xff] }
  0x16   :  { %3165 = vmatprep.subr.bf16.mxu1 %v3164_v46  ;;  %v132_v4 = vld [vmem:[%s3527_s6 + $0x50] sm:$0xff]  ;;  %v133_v7 = vld [vmem:[%s3527_s6 + $0x58] sm:$0xff]  ;;  %v3172_v11 = vpack.c.bf16 %v181_v2, %v180_v1  ;;  %v151_v13 = vld [vmem:[%s3527_s6 + $0xe8] sm:$0xff] }
  0x17   :  { %3135 = vmatpush3.bf16.msra.mxu0 %v3134_v51  ;;  %v164_v8 = vld [vmem:[%s3527_s6 + $0x150] sm:$0xff]  ;;  %v165_v9 = vld [vmem:[%s3527_s6 + $0x158] sm:$0xff]  ;;  %v182_v14 = vld [vmem:[%s3527_s6 + $0x1e0] sm:$0xff]  ;;  %v3142_v16 = vpack.c.bf16 %v133_v7, %v132_v4  ;;  %v3144_v19 = vpack.c.bf16 %v151_v13, %v150_v12 }
  0x18   :  { %3137 = vmatprep.subr.bf16.mxu0 %v3136_v55  ;;  %v183_v15 = vld [vmem:[%s3527_s6 + $0x1e8] sm:$0xff]  ;;  %v3174_v17 = vpack.c.bf16 %v165_v9, %v164_v8  ;;  %v121_v18 = vld [vmem:[%s3568_s9] sm:$0xff]  ;;  %v152_v27 = vld [vmem:[%s3527_s6 + $0xf0] sm:$0xff]  ;;  %v3493_v9 = vmov 0.0  }
  0x19   :  { %3167 = vmatpush3.bf16.msra.mxu1 %v3166_v54  ;;  %v134_v20 = vld [vmem:[%s3527_s6 + $0x60] sm:$0xff]  ;;  %v135_v21 = vld [vmem:[%s3527_s6 + $0x68] sm:$0xff]  ;;  %v201_v23 = vrot.slane %v121_v18, %v200_v10  ;;  %v194_v24 = vcombine.high %v121_v18, %v121_v18  ;;  %v3176_v25 = vpack.c.bf16 %v183_v15, %v182_v14  ;;  %v153_v28 = vld [vmem:[%s3527_s6 + $0xf8] sm:$0xff] }
  0x1a   :  { %3169 = vmatprep.subr.bf16.mxu1 %v3168_v61  ;;  %v166_v22 = vld [vmem:[%s3527_s6 + $0x160] sm:$0xff]  ;;  %v167_v26 = vld [vmem:[%s3527_s6 + $0x168] sm:$0xff]  ;;  %v184_v29 = vld [vmem:[%s3527_s6 + $0x1f0] sm:$0xff]  ;;  %v3146_v33 = vpack.c.bf16 %v135_v21, %v134_v20  ;;  %v3148_v35 = vpack.c.bf16 %v153_v28, %v152_v27 }
  0x1b   :  { %3139 = vmatpush3.bf16.msra.mxu0 %v3138_v3  ;;  %v185_v30 = vld [vmem:[%s3527_s6 + $0x1f8] sm:$0xff]  ;;  %v209_v31 = vcombine.high %v201_v23, %v201_v23  ;;  %v208_v32 = vrot.slane %v194_v24, %v200_v10  ;;  %v3178_v34 = vpack.c.bf16 %v167_v26, %v166_v22  ;;  %v136_v36 = vld [vmem:[%s3527_s6 + $0x70] sm:$0xff]  ;;  %v375_v42 = vld [vmem:[%s3587_s13 + $0x80] sm:$0xff] }
  0x1c   :  { %3141 = vmatprep.subr.bf16.mxu0 %v3140_v6  ;;  %v137_v37 = vld [vmem:[%s3527_s6 + $0x78] sm:$0xff]  ;;  %v168_v38 = vld [vmem:[%s3527_s6 + $0x170] sm:$0xff]  ;;  %v3180_v40 = vpack.c.bf16 %v185_v30, %v184_v29  ;;  %v376_v43 = vld [vmem:[%s3587_s13 + $0x88] sm:$0xff] }
  0x1d   :  { %3171 = vmatpush3.bf16.msra.mxu1 %v3170_v5  ;;  %v210_v39 = vcombine.high %v208_v32, %v208_v32  ;;  %279 = vmatprep.mubr.f32.mxu0 %v209_v31  ;;  %v169_v41 = vld [vmem:[%s3527_s6 + $0x178] sm:$0xff]  ;;  %v3150_v44 = vpack.c.bf16 %v137_v37, %v136_v36  ;;  %v3184_v46 = vpack.c.bf16 %v376_v43, %v375_v42  ;;  %v359_v47 = vld [vmem:[%s3587_s13] sm:$0xff]  ;;  %v360_v48 = vld [vmem:[%s3587_s13 + $0x8] sm:$0xff]  ;;  %s3505_s6 = smov 15  }
  0x1e   :  { %3173 = vmatprep.subr.bf16.mxu1 %v3172_v11  ;;  %v3182_v45 = vpack.c.bf16 %v169_v41, %v168_v38  ;;  %v377_v49 = vld [vmem:[%s3587_s13 + $0x90] sm:$0xff]  ;;  %v378_v50 = vld [vmem:[%s3587_s13 + $0x98] sm:$0xff]  ;;  %v391_v51 = vld [vmem:[%s3587_s13 + $0x100] sm:$0xff]  ;;  %v3186_v53 = vpack.c.bf16 %v360_v48, %v359_v47  ;;  %s2375_s9 = sld [smem:[%s4081_s0 + %s3505_s6]]  }
  0x1f   :  { %3143 = vmatpush3.bf16.msra.mxu0 %v3142_v16  ;;  %349 = vmatprep.mubr.f32.mxu1 %v210_v39  ;;  %v392_v52 = vld [vmem:[%s3587_s13 + $0x108] sm:$0xff]  ;;  %v3188_v54 = vpack.c.bf16 %v378_v50, %v377_v49  ;;  %v361_v55 = vld [vmem:[%s3587_s13 + $0x10] sm:$0xff]  ;;  %v362_v56 = vld [vmem:[%s3587_s13 + $0x18] sm:$0xff] }
  0x20   :  { %3145 = vmatprep.subr.bf16.mxu0 %v3144_v19  ;;  %v379_v57 = vld [vmem:[%s3587_s13 + $0xa0] sm:$0xff]  ;;  %v3217_v58 = vpack.c.bf16 %v392_v52, %v391_v51  ;;  %v380_v59 = vld [vmem:[%s3587_s13 + $0xa8] sm:$0xff]  ;;  %v393_v61 = vld [vmem:[%s3587_s13 + $0x110] sm:$0xff]  ;;  %v3190_v0 = vpack.c.bf16 %v362_v56, %v361_v55 }
  0x21   :  { %3175 = vmatpush3.bf16.msra.mxu1 %v3174_v17  ;;  %v394_v62 = vld [vmem:[%s3587_s13 + $0x118] sm:$0xff]  ;;  %v357_v63 = vld [vmem:[%s3609_s17 + $0x8] sm:$0xff]  ;;  %v3192_v1 = vpack.c.bf16 %v380_v59, %v379_v57  ;;  %v363_v2 = vld [vmem:[%s3587_s13 + $0x20] sm:$0xff] }
  0x22   :  { %3177 = vmatprep.subr.bf16.mxu1 %v3176_v25  ;;  %v364_v3 = vld [vmem:[%s3587_s13 + $0x28] sm:$0xff]  ;;  %v381_v4 = vld [vmem:[%s3587_s13 + $0xb0] sm:$0xff]  ;;  %v3220_v5 = vpack.c.bf16 %v394_v62, %v393_v61  ;;  %v382_v6 = vld [vmem:[%s3587_s13 + $0xb8] sm:$0xff] }
  0x23   :  { %3147 = vmatpush3.bf16.msra.mxu0 %v3146_v33  ;;  %v395_v7 = vld [vmem:[%s3587_s13 + $0x120] sm:$0xff]  ;;  %v396_v8 = vld [vmem:[%s3587_s13 + $0x128] sm:$0xff]  ;;  %v3194_v10 = vpack.c.bf16 %v364_v3, %v363_v2  ;;  %v3196_v11 = vpack.c.bf16 %v382_v6, %v381_v4  ;;  %v365_v12 = vld [vmem:[%s3587_s13 + $0x30] sm:$0xff] }
  0x24   :  { %3149 = vmatprep.subr.bf16.mxu0 %v3148_v35  ;;  %v366_v13 = vld [vmem:[%s3587_s13 + $0x38] sm:$0xff]  ;;  %v383_v14 = vld [vmem:[%s3587_s13 + $0xc0] sm:$0xff]  ;;  %v3223_v15 = vpack.c.bf16 %v396_v8, %v395_v7  ;;  %v384_v16 = vld [vmem:[%s3587_s13 + $0xc8] sm:$0xff] }
  0x25   :  { %3179 = vmatpush3.bf16.msra.mxu1 %v3178_v34  ;;  %v397_v17 = vld [vmem:[%s3587_s13 + $0x130] sm:$0xff]  ;;  %v398_v18 = vld [vmem:[%s3587_s13 + $0x138] sm:$0xff]  ;;  %v555_v19 = vld [vmem:[%s3628_s21] sm:$0xff]  ;;  %v3198_v21 = vpack.c.bf16 %v366_v13, %v365_v12  ;;  %v3200_v22 = vpack.c.bf16 %v384_v16, %v383_v14 }
  0x26   :  { %3181 = vmatprep.subr.bf16.mxu1 %v3180_v40  ;;  %v556_v20 = vld [vmem:[%s3628_s21 + $0x8] sm:$0xff]  ;;  %v3226_v25 = vpack.c.bf16 %v398_v18, %v397_v17  ;;  %v385_v26 = vld [vmem:[%s3587_s13 + $0xd0] sm:$0xff]  ;;  %v386_v27 = vld [vmem:[%s3587_s13 + $0xd8] sm:$0xff] }
  0x27   :  { %3151 = vmatpush3.bf16.msra.mxu0 %v3150_v44  ;;  %v368_v24 = vld [vmem:[%s3587_s13 + $0x48] sm:$0xff]  ;;  %v3228_v28 = vpack.c.bf16 %v556_v20, %v555_v19  ;;  %v557_v29 = vld [vmem:[%s3628_s21 + $0x10] sm:$0xff]  ;;  %v558_v30 = vld [vmem:[%s3628_s21 + $0x18] sm:$0xff] }
  0x28   :  { %3185 = vmatprep.subr.bf16.mxu0 %v3184_v46  ;;  %v369_v33 = vld [vmem:[%s3587_s13 + $0x50] sm:$0xff]  ;;  %v370_v34 = vld [vmem:[%s3587_s13 + $0x58] sm:$0xff]  ;;  %v387_v36 = vld [vmem:[%s3587_s13 + $0xe0] sm:$0xff]  ;;  %v3232_v38 = vpack.c.bf16 %v558_v30, %v557_v29 }
  0x29   :  { %3183 = vmatpush3.bf16.msra.mxu1 %v3182_v45  ;;  %v358_v35 = vld [vmem:[%s3609_s17 + $0x10] sm:$0xff]  ;;  %v388_v37 = vld [vmem:[%s3587_s13 + $0xe8] sm:$0xff]  ;;  %v559_v39 = vld [vmem:[%s3628_s21 + $0x20] sm:$0xff]  ;;  %v3206_v42 = vpack.c.bf16 %v370_v34, %v369_v33 }
  0x2a   :  { %3216 = vmatprep.subr.bf16.mxu1 %v3490_v60  ;;  %280 = vmatmul.mubr.f32.vlgmr.msra.gmra.mrb[0].mxu0 %v201_v23  ;;  %v367_v23 = vld [vmem:[%s3587_s13 + $0x40] sm:$0xff]  ;;  %v560_v40 = vld [vmem:[%s3628_s21 + $0x28] sm:$0xff]  ;;  %v3208_v43 = vpack.c.bf16 %v388_v37, %v387_v36  ;;  %v389_v46 = vld [vmem:[%s3587_s13 + $0xf0] sm:$0xff] }
  0x2b   :  { %3187 = vmatpush3.bf16.msra.mxu0 %v3186_v53  ;;  %474 = vmatprep.mubr.f32.mxu0 %v357_v63  ;;  %v3202_v31 = vpack.c.bf16 %v368_v24, %v367_v23  ;;  %v551_v41 = vld [vmem:[%s3651_s25] sm:$0xff]  ;;  %v372_v45 = vld [vmem:[%s3587_s13 + $0x68] sm:$0xff]  ;;  %v390_v47 = vld [vmem:[%s3587_s13 + $0xf8] sm:$0xff]  ;;  %v3236_v48 = vpack.c.bf16 %v560_v40, %v559_v39 }
  0x2c   :  { %350 = vmatmul.mubr.f32.vlgmr.msra.gmra.mrb[0].mxu1 %v208_v32  ;;  %3189 = vmatprep.subr.bf16.mxu0 %v3188_v54  ;;  %v3204_v32 = vpack.c.bf16 %v386_v27, %v385_v26  ;;  %v371_v44 = vld [vmem:[%s3587_s13 + $0x60] sm:$0xff]  ;;  %v561_v49 = vld [vmem:[%s3628_s21 + $0x30] sm:$0xff]  ;;  %v562_v50 = vld [vmem:[%s3628_s21 + $0x38] sm:$0xff]  ;;  %v3212_v52 = vpack.c.bf16 %v390_v47, %v389_v46 }
  0x2d   :  { %3218 = vmatpush3.bf16.msra.mxu1 %v3217_v58  ;;  %2760 = vmatprep.mubr.msk.f32.mxu1 %vm3492_vm0, %v3493_v9  ;;  %v3210_v51 = vpack.c.bf16 %v372_v45, %v371_v44  ;;  %v373_v53 = vld [vmem:[%s3587_s13 + $0x70] sm:$0xff]  ;;  %v374_v54 = vld [vmem:[%s3587_s13 + $0x78] sm:$0xff]  ;;  %v3240_v55 = vpack.c.bf16 %v562_v50, %v561_v49  ;;  %v683_v56 = vld [vmem:[%s3668_s29] sm:$0xff]  ;;  %s3514_s13 = smov 26  }
  0x2e   :  { %3219 = vmatprep.subr.bf16.mxu1 %v3490_v60  ;;  %v684_v57 = vld [vmem:[%s3668_s29 + $0x8] sm:$0xff]  ;;  %v563_v58 = vld [vmem:[%s3628_s21 + $0x40] sm:$0xff]  ;;  %v3214_v61 = vpack.c.bf16 %v374_v54, %v373_v53  ;;  %v565_v2 = vld [vmem:[%s3628_s21 + $0x50] sm:$0xff]  ;;  %s2386_s16 = sld [smem:[%s4081_s0 + %s3514_s13]]  }
  0x2f   :  { %3191 = vmatpush3.bf16.msra.mxu0 %v3190_v0  ;;  %v564_v59 = vld [vmem:[%s3628_s21 + $0x48] sm:$0xff]  ;;  %v3260_v62 = vpack.c.bf16 %v684_v57, %v683_v56  ;;  %v685_v0 = vld [vmem:[%s3668_s29 + $0x10] sm:$0xff]  ;;  %v566_v3 = vld [vmem:[%s3628_s21 + $0x58] sm:$0xff] }
  0x30   :  { %3193 = vmatprep.subr.bf16.mxu0 %v3192_v1  ;;  %v3244_v63 = vpack.c.bf16 %v564_v59, %v563_v58  ;;  %v686_v1 = vld [vmem:[%s3668_s29 + $0x18] sm:$0xff]  ;;  %v356_v4 = vld [vmem:[%s3609_s17] sm:$0xff]  ;;  %v3248_v7 = vpack.c.bf16 %v566_v3, %v565_v2  ;;  %v568_v12 = vld [vmem:[%s3628_s21 + $0x68] sm:$0xff]  ;;  %s3515_s17 = smov 23  }
  0x31   :  { %3221 = vmatpush3.bf16.msra.mxu1 %v3220_v5  ;;  %v3264_v5 = vpack.c.bf16 %v686_v1, %v685_v0  ;;  %v667_v6 = vld [vmem:[%s3685_s3] sm:$0xff]  ;;  %v690_v16 = vld [vmem:[%s3668_s29 + $0x38] sm:$0xff]  ;;  %v569_v17 = vld [vmem:[%s3628_s21 + $0x70] sm:$0xff]  ;;  %s2383_s20 = sld [smem:[%s4081_s0 + %s3515_s17]]  }
  0x32   :  { %3222 = vmatprep.subr.bf16.mxu1 %v3490_v60  ;;  %v687_v8 = vld [vmem:[%s3668_s29 + $0x20] sm:$0xff]  ;;  %v570_v18 = vld [vmem:[%s3628_s21 + $0x78] sm:$0xff]  ;;  %v669_v23 = vld [vmem:[%s3685_s3 + $0x10] sm:$0xff] }
  0x33   :  { %3195 = vmatpush3.bf16.msra.mxu0 %v3194_v10  ;;  %v688_v10 = vld [vmem:[%s3668_s29 + $0x28] sm:$0xff]  ;;  %v3256_v20 = vpack.c.bf16 %v570_v18, %v569_v17  ;;  %v553_v24 = vld [vmem:[%s3651_s25 + $0x10] sm:$0xff]  ;;  %v554_v26 = vld [vmem:[%s3651_s25 + $0x18] sm:$0xff] }
  0x34   :  { %3197 = vmatprep.subr.bf16.mxu0 %v3196_v11  ;;  %v567_v11 = vld [vmem:[%s3628_s21 + $0x60] sm:$0xff]  ;;  %v3268_v13 = vpack.c.bf16 %v688_v10, %v687_v8  ;;  %v673_v29 = vld [vmem:[%s3685_s3 + $0x30] sm:$0xff]  ;;  %v674_v30 = vld [vmem:[%s3685_s3 + $0x38] sm:$0xff]  ;;  %s3516_s21 = smov 25  }
  0x35   :  { %3224 = vmatpush3.bf16.msra.mxu1 %v3223_v15  ;;  %v3252_v14 = vpack.c.bf16 %v568_v12, %v567_v11  ;;  %v689_v15 = vld [vmem:[%s3668_s29 + $0x30] sm:$0xff]  ;;  %v671_v27 = vld [vmem:[%s3685_s3 + $0x20] sm:$0xff]  ;;  %v678_v34 = vld [vmem:[%s3685_s3 + $0x58] sm:$0xff]  ;;  %s4038_s29 = sld [smem:[%s4081_s0 + %s3510_s26]]  }
  0x36   :  { %3225 = vmatprep.subr.bf16.mxu1 %v3490_v60  ;;  %v3272_v19 = vpack.c.bf16 %v690_v16, %v689_v15  ;;  %v677_v33 = vld [vmem:[%s3685_s3 + $0x50] sm:$0xff]  ;;  %v680_v36 = vld [vmem:[%s3685_s3 + $0x68] sm:$0xff]  ;;  %v907_v39 = vld [vmem:[%s3742_s7] sm:$0xff] }
  0x37   :  { %3199 = vmatpush3.bf16.msra.mxu0 %v3198_v21  ;;  %v668_v21 = vld [vmem:[%s3685_s3 + $0x8] sm:$0xff]  ;;  %v681_v37 = vld [vmem:[%s3685_s3 + $0x70] sm:$0xff]  ;;  %v1131_v40 = vld [vmem:[%s3749_s11 + $0x40] sm:$0xff] }
  0x38   :  { %3201 = vmatprep.subr.bf16.mxu0 %v3200_v22  ;;  %v552_v22 = vld [vmem:[%s3651_s25 + $0x8] sm:$0xff]  ;;  %v1134_v44 = vld [vmem:[%s3749_s11 + $0x58] sm:$0xff]  ;;  %v1135_v46 = vld [vmem:[%s3749_s11 + $0x60] sm:$0xff] }
  0x39   :  { %3227 = vmatpush3.bf16.msra.mxu1 %v3226_v25  ;;  %v670_v25 = vld [vmem:[%s3685_s3 + $0x18] sm:$0xff]  ;;  %v1136_v47 = vld [vmem:[%s3749_s11 + $0x68] sm:$0xff]  ;;  %v2390_v50 = vld [vmem:[%s2365_s15] ss:$0 sm:$0xff]  ;;  %s3507_s15 = smov 17  }
  0x3a   :  { %3229 = vmatprep.subr.bf16.mxu1 %v3228_v28  ;;  %v908_v59 = vld [vmem:[%s3742_s7 + $0x8] sm:$0xff]  ;;  %v1015_v11 = vld [vmem:[%s3763_s19 + $0x10] sm:$0xff]  ;;  %v1016_v12 = vld [vmem:[%s3763_s19 + $0x18] sm:$0xff]  ;;  %s2377_s18 = sld [smem:[%s4081_s0 + %s3507_s15]]  }
  0x3b   :  { %3203 = vmatpush3.bf16.msra.mxu0 %v3202_v31  ;;  %v675_v31 = vld [vmem:[%s3685_s3 + $0x40] sm:$0xff]  ;;  %v1014_v10 = vld [vmem:[%s3763_s19 + $0x8] sm:$0xff] }
  0x3c   :  { %2761 = vmatmul.mubr.msk.f32.vlgmr.msra.gmra.mrb[2].mxu1 %vm406_vm1, %v358_v35  ;;  %3205 = vmatprep.subr.bf16.mxu0 %v3204_v32  ;;  %v676_v32 = vld [vmem:[%s3685_s3 + $0x48] sm:$0xff]  ;;  %v679_v35 = vld [vmem:[%s3685_s3 + $0x60] sm:$0xff] }
  0x3d   :  { %3231 = vmatpush3.bf16.msra.mxu1 %v3228_v28  ;;  %2795 = vmatprep.mubr.f32.mxu1 %v551_v41  ;;  %v672_v28 = vld [vmem:[%s3685_s3 + $0x28] sm:$0xff]  ;;  %v1458_v16 = vld [vmem:[%s2374_s5] sm:$0x3] }
  0x3e   :  { %3233 = vmatprep.subr.bf16.mxu1 %v3232_v38  ;;  %v1132_v41 = vld [vmem:[%s3749_s11 + $0x48] sm:$0xff] }
  0x3f   :  { %3207 = vmatpush3.bf16.msra.mxu0 %v3206_v42  ;;  %v1133_v42 = vld [vmem:[%s3749_s11 + $0x50] sm:$0xff] }
  0x40   :  { %3209 = vmatprep.subr.bf16.mxu0 %v3208_v43  ;;  %v3276_v43 = vpack.c.bf16 %v1132_v41, %v1131_v40  ;;  %v3280_v45 = vpack.c.bf16 %v1134_v44, %v1133_v42 }
  0x41   :  { %3235 = vmatpush3.bf16.msra.mxu1 %v3232_v38  ;;  %v682_v38 = vld [vmem:[%s3685_s3 + $0x78] sm:$0xff]  ;;  %s2379_s3 = sld [smem:[%s4081_s0 + %s3511_s30]]  }
  0x42   :  { %3237 = vmatprep.subr.bf16.mxu1 %v3236_v48 }
  0x43   :  { %3211 = vmatpush3.bf16.msra.mxu0 %v3210_v51 }
  0x44   :  { %3213 = vmatprep.subr.bf16.mxu0 %v3212_v52 }
  0x45   :  { %3239 = vmatpush3.bf16.msra.mxu1 %v3236_v48  ;;  %v3284_v48 = vpack.c.bf16 %v1136_v47, %v1135_v46 }
  0x46   :  { %3241 = vmatprep.subr.bf16.mxu1 %v3240_v55 }
  0x47   :  { %3215 = vmatpush3.bf16.msra.mxu0 %v3214_v61  ;;  %v909_v61 = vld [vmem:[%s3742_s7 + $0x10] sm:$0xff] }
  0x48   :  { %3261 = vmatprep.subr.bf16.mxu0 %v3260_v62 }
  0x49   :  { %3243 = vmatpush3.bf16.msra.mxu1 %v3240_v55 }
  0x4a   :  { %3245 = vmatprep.subr.bf16.mxu1 %v3244_v63  ;;  %475 = vmatmul.mubr.f32.vlgmr.msra.gmra.mrb[2].mxu0 %v356_v4  ;;  %v2391_v4 = vld [vmem:[%s2367_s23] ss:$0 sm:$0xff]  ;;  %s2385_s23 = sld [smem:[%s4081_s0 + %s3516_s21]]  }
  0x4b   :  { %3263 = vmatpush3.bf16.msra.mxu0 %v3260_v62  ;;  %2817 = vmatprep.mubr.msk.f32.mxu0 %vm406_vm1, %v667_v6  ;;  %v910_v62 = vld [vmem:[%s3742_s7 + $0x18] sm:$0xff]  ;;  %s2388_s7 = sld [smem:[%s4081_s0 + %s3512_s4]]  }
  0x4c   :  { %3265 = vmatprep.subr.bf16.mxu0 %v3264_v5 }
  0x4d   :  { %3247 = vmatpush3.bf16.msra.mxu1 %v3244_v63  ;;  %v1013_v63 = vld [vmem:[%s3763_s19] sm:$0xff]  ;;  %s3508_s19 = smov 20  }
  0x4e   :  { %3249 = vmatprep.subr.bf16.mxu1 %v3248_v7  ;;  %s3874_s22 = sld [smem:[%s4081_s0 + %s3508_s19]]  }
  0x4f   :  { %3267 = vmatpush3.bf16.msra.mxu0 %v3264_v5 }
  0x50   :  { %3269 = vmatprep.subr.bf16.mxu0 %v3268_v13 }
  0x51   :  { %3251 = vmatpush3.bf16.msra.mxu1 %v3248_v7 }
  0x52   :  { %3253 = vmatprep.subr.bf16.mxu1 %v3252_v14 }
  0x53   :  { %3271 = vmatpush3.bf16.msra.mxu0 %v3268_v13  ;;  %v3798_v13 = vld [vmem:[%s2371_s27] ss:$0 sm:$0xff]  ;;  %s2387_s27 = sld [smem:[%s4081_s0 + %s3517_s24]]  }
  0x54   :  { %3273 = vmatprep.subr.bf16.mxu0 %v3272_v19 }
  0x55   :  { %3255 = vmatpush3.bf16.msra.mxu1 %v3252_v14  ;;  %v2393_v14 = vld [vmem:[%s2369_s1] ss:$0 sm:$0xff]  ;;  %s2389_s1 = sld [smem:[%s4081_s0 + %s3518_s28]]  }
  0x56   :  { %3257 = vmatprep.subr.bf16.mxu1 %v3256_v20 }
  0x57   :  { %3275 = vmatpush3.bf16.msra.mxu0 %v3272_v19 }
  0x58   :  { %3277 = vmatprep.subr.bf16.mxu0 %v3276_v43 }
  0x59   :  { %3259 = vmatpush3.bf16.msra.mxu1 %v3256_v20 }
  0x5a   :  { %2818 = vmatmul.mubr.msk.f32.vlgmr.msra.gmra.mrb[4].mxu0 %vm406_vm1, %v668_v21 }
  0x5b   :  { %2820 = vmatprep.mubr.msk.f32.mxu0 %vm406_vm1, %v669_v23  ;;  %3279 = vmatpush3.bf16.msra.mxu0 %v3276_v43 }
  0x5c   :  { %2796 = vmatmul.mubr.f32.vlgmr.msra.gmra.mrb[4].mxu1 %v552_v22  ;;  %3281 = vmatprep.subr.bf16.mxu0 %v3280_v45 }
  0x5d   :  { %2798 = vmatprep.mubr.f32.mxu1 %v553_v24 }
  0x5e   :  { %2821 = vmatmul.mubr.msk.f32.gmra.mrb[6].mxu0 %vm406_vm1, %v670_v25 }
  0x5f   :  { %2823 = vmatprep.mubr.msk.f32.mxu0 %vm406_vm1, %v671_v27  ;;  %3283 = vmatpush3.bf16.msra.mxu0 %v3280_v45 }
  0x60   :  { %2799 = vmatmul.mubr.f32.gmra.mrb[6].mxu1 %v554_v26  ;;  %3285 = vmatprep.subr.bf16.mxu0 %v3284_v48 }
  0x61   :  { %2843 = vmatprep.mubr.msk.f32.mxu1 %vm911_vm2, %v907_v39 }
  0x62   :  { %2824 = vmatmul.mubr.msk.f32.gmra.mrb[8].mxu0 %vm406_vm1, %v672_v28 }
  0x63   :  { %2826 = vmatprep.mubr.msk.f32.mxu0 %vm406_vm1, %v673_v29  ;;  %3287 = vmatpush3.bf16.msra.mxu0 %v3284_v48 }
  0x66   :  { %2827 = vmatmul.mubr.msk.f32.gmra.mrb[10].mxu0 %vm406_vm1, %v674_v30  ;;  %v1532_v30 = vld [vmem:[%s2375_s9] sm:$0x3] }
  0x67   :  { %2829 = vmatprep.mubr.msk.f32.mxu0 %vm406_vm1, %v675_v31 }
  0x6a   :  { %2830 = vmatmul.mubr.msk.f32.gmra.mrb[12].mxu0 %vm406_vm1, %v676_v32 }
  0x6b   :  { %2832 = vmatprep.mubr.msk.f32.mxu0 %vm406_vm1, %v677_v33 }
  0x6e   :  { %2833 = vmatmul.mubr.msk.f32.gmra.mrb[14].mxu0 %vm406_vm1, %v678_v34 }
  0x6f   :  { %2835 = vmatprep.mubr.msk.f32.mxu0 %vm406_vm1, %v679_v35 }
  0x72   :  { %2836 = vmatmul.mubr.msk.f32.gmra.mrb[16].mxu0 %vm406_vm1, %v680_v36 }
  0x73   :  { %2838 = vmatprep.mubr.msk.f32.mxu0 %vm406_vm1, %v681_v37 }
  0x76   :  { %2839 = vmatmul.mubr.msk.f32.gmra.mrb[18].mxu0 %vm406_vm1, %v682_v38 }
  0xfd   :  { %v2479_v49 = vpop.f32.mrb[0].mxu0 }
  0xfe   :  { %v2480_v51 = vpop.f32.mrb[1].mxu0 }
  0xff   :  { %v2514_v52 = vpop.f32.mrb[0].mxu1  ;;  %v2481_v53 = vadd.f32 %v2480_v51, %v2479_v49 }
 0x100   :  { %v2515_v54 = vpop.f32.mrb[1].mxu1 }
 0x101   :  { %v2516_v55 = vadd.f32 %v2515_v54, %v2514_v52  ;;  %v282_v56 = vadd.f32 %v2481_v53, %v2390_v50  ;;  %v1606_v52 = vld [vmem:[%s2376_s14] sm:$0x3] }
 0x103   :  { %v352_v57 = vadd.f32 %v2516_v55, %v282_v56 }
 0x105   :  { %v355_v58 = vmax.f32 %v352_v57, 0.0 }
 0x107   :  { %2841 = vmatprep.subr.msk.mxu1 %vm924_vm3, %v355_v58 }
 0x108   :  { %2842 = vmatpush3.msk.msra.mxu1 %vm924_vm3, %v355_v58 }
 0x109   :  { %2844 = vmatmul.mubr.msk.f32.vlgmr.msra.gmra.mrb[8].mxu1 %vm911_vm2, %v908_v59 }
 0x10a   :  { %2846 = vmatprep.mubr.msk.f32.mxu1 %vm911_vm2, %v909_v61 }
 0x10d   :  { %2847 = vmatmul.mubr.msk.f32.gmra.mrb[10].mxu1 %vm911_vm2, %v910_v62 }
 0x10e   :  { %2851 = vmatprep.mubr.msk.f32.mxu1 %vm1017_vm4, %v1013_v63 }
 0x10f   :  { %v546_v0 = vpop.f32.mrb[2].mxu1 }
 0x110   :  { %v2762_v1 = vpop.f32.mrb[3].mxu1 }
 0x11d   :  { %v2549_v2 = vpop.f32.mrb[2].mxu0 }
 0x11e   :  { %v2550_v3 = vpop.f32.mrb[3].mxu0 }
 0x11f   :  { %v2551_v5 = vadd.f32 %v2550_v3, %v2549_v2 }
 0x121   :  { %v477_v6 = vadd.f32 %v2551_v5, %v2391_v4 }
 0x123   :  { %v547_v7 = vadd.f32 %v546_v0, %v477_v6 }
 0x125   :  { %v550_v8 = vmax.f32 %v547_v7, 0.0 }
 0x127   :  { %2849 = vmatprep.subr.mxu1 %v550_v8 }
 0x128   :  { %2850 = vmatpush3.msra.mxu1 %v550_v8 }
 0x129   :  { %2852 = vmatmul.mubr.msk.f32.vlgmr.msra.gmra.mrb[12].mxu1 %vm1017_vm4, %v1014_v10  ;;  %2923 = vmatprep.subr.mxu1 %v3493_v9 }
 0x12a   :  { %2924 = vmatpush3.msk.msra.mxu1 %vm924_vm3, %v355_v58  ;;  %2854 = vmatprep.mubr.msk.f32.mxu1 %vm1017_vm4, %v1015_v11 }
 0x12b   :  { %2928 = vmatprep.subr.mxu1 %v3493_v9 }
 0x12d   :  { %2855 = vmatmul.mubr.msk.f32.gmra.mrb[14].mxu1 %vm1017_vm4, %v1016_v12  ;;  %v2819_v15 = vpop.f32.mrb[4].mxu0 }
 0x12e   :  { %2925 = vmatprep.mubr.msk.f32.mxu1 %vm3492_vm0, %v3493_v9  ;;  %v818_v18 = vadd.f32 %v2819_v15, %v3798_v13  ;;  %v812_v19 = vpop.f32.mrb[5].mxu0 }
 0x12f   :  { %v2797_v17 = vpop.f32.mrb[4].mxu1  ;;  %v813_v22 = vadd.f32 %v3798_v13, %v812_v19 }
 0x130   :  { %v3804_v20 = vadd.f32 %v2797_v17, %v2393_v14  ;;  %v644_v21 = vpop.f32.mrb[5].mxu1  ;;  %v892_v24 = vmax.f32 %v818_v18, 0.0 }
 0x131   :  { %v3807_v23 = vadd.f32 %v2393_v14, %v644_v21  ;;  %2926 = vmatmul.mubr.msk.f32.vlgmr.msra.gmra.mrb[16].mxu1 %vm911_vm2, %v1458_v16  ;;  %v891_v26 = vmax.f32 %v813_v22, 0.0  ;;  %v2822_v27 = vpop.f32.mrb[6].mxu0 }
 0x132   :  { %v664_v25 = vmax.f32 %v3804_v20, 0.0  ;;  %2929 = vmatpush3.msra.mxu1 %v550_v8  ;;  %2930 = vmatprep.mubr.msk.f32.mxu1 %vm3492_vm0, %v3493_v9  ;;  %v828_v31 = vadd.f32 %v2822_v27, %v3798_v13  ;;  %v822_v32 = vpop.f32.mrb[7].mxu0 }
 0x133   :  { %v663_v28 = vmax.f32 %v3807_v23, 0.0  ;;  %v2800_v29 = vpop.f32.mrb[6].mxu1  ;;  %3324 = vmatprep.subr.bf16.mxu1 %v3490_v60  ;;  %v3331_v35 = vpack.c.bf16 %v892_v24, %v891_v26  ;;  %v823_v36 = vadd.f32 %v3798_v13, %v822_v32  ;;  %v1138_v32 = vld [vmem:[%s3749_s11 + $0x78] sm:$0xff]  ;;  %v1760_v23 = vld [vmem:[%s3874_s22 + $0x40] sm:$0xff] }
 0x134   :  { %v3818_v33 = vadd.f32 %v2800_v29, %v2393_v14  ;;  %v654_v34 = vpop.f32.mrb[7].mxu1  ;;  %v894_v39 = vmax.f32 %v828_v31, 0.0  ;;  %v1137_v31 = vld [vmem:[%s3749_s11 + $0x70] sm:$0xff] }
 0x135   :  { %v3325_v37 = vpack.c.bf16 %v664_v25, %v663_v28  ;;  %v3826_v38 = vadd.f32 %v2393_v14, %v654_v34  ;;  %2931 = vmatmul.mubr.msk.f32.vlgmr.msra.gmra.mrb[18].mxu1 %vm1017_vm4, %v1532_v30  ;;  %v893_v41 = vmax.f32 %v823_v36, 0.0  ;;  %v2825_v42 = vpop.f32.mrb[8].mxu0  ;;  %v3288_v34 = vpack.c.bf16 %v1138_v32, %v1137_v31  ;;  %v1124_v36 = vld [vmem:[%s3749_s11 + $0x8] sm:$0xff]  ;;  %v1335_v31 = vld [vmem:[%s3749_s11 + $0x90] sm:$0xff] }
 0x136   :  { %v666_v40 = vmax.f32 %v3818_v33, 0.0  ;;  %2941 = vmatprep.mubr.msk.f32.mxu1 %vm3492_vm0, %v3493_v9  ;;  %v838_v44 = vadd.f32 %v2825_v42, %v3798_v13  ;;  %v832_v45 = vpop.f32.mrb[9].mxu0  ;;  %v1767_v33 = vld [vmem:[%s3874_s22 + $0x78] sm:$0xff] }
 0x137   :  { %v665_v43 = vmax.f32 %v3826_v38, 0.0  ;;  %3326 = vmatpush3.bf16.msra.mxu1 %v3325_v37  ;;  %v3334_v46 = vpack.c.bf16 %v894_v39, %v893_v41  ;;  %v833_v47 = vadd.f32 %v3798_v13, %v832_v45  ;;  %3289 = vmatprep.subr.bf16.mxu0 %v3288_v34  ;;  %v1752_v39 = vld [vmem:[%s3874_s22] sm:$0xff]  ;;  %v1753_v41 = vld [vmem:[%s3874_s22 + $0x8] sm:$0xff]  ;;  %v1755_v45 = vld [vmem:[%s3874_s22 + $0x18] sm:$0xff] }
 0x138   :  { %3327 = vmatprep.subr.bf16.mxu1 %v3490_v60  ;;  %v896_v49 = vmax.f32 %v838_v44, 0.0  ;;  %3291 = vmatpush3.bf16.msra.mxu0 %v3288_v34  ;;  %v3367_v42 = vpack.c.bf16 %v1753_v41, %v1752_v39  ;;  %v1754_v44 = vld [vmem:[%s3874_s22 + $0x10] sm:$0xff]  ;;  %v1336_v34 = vld [vmem:[%s3749_s11 + $0x98] sm:$0xff]  ;;  %v1337_v41 = vld [vmem:[%s3749_s11 + $0xa0] sm:$0xff] }
 0x139   :  { %v3328_v48 = vpack.c.bf16 %v666_v40, %v665_v43  ;;  %v895_v50 = vmax.f32 %v833_v47, 0.0  ;;  %v2828_v51 = vpop.f32.mrb[10].mxu0  ;;  %v1756_v47 = vld [vmem:[%s3874_s22 + $0x20] sm:$0xff] }
 0x13a   :  { %v848_v53 = vadd.f32 %v2828_v51, %v3798_v13  ;;  %v842_v54 = vpop.f32.mrb[11].mxu0  ;;  %v1759_v51 = vld [vmem:[%s3874_s22 + $0x38] sm:$0xff] }
 0x13b   :  { %3329 = vmatpush3.bf16.msra.mxu1 %v3328_v48  ;;  %v3337_v55 = vpack.c.bf16 %v896_v49, %v895_v50  ;;  %v843_v56 = vadd.f32 %v3798_v13, %v842_v54  ;;  %v1757_v48 = vld [vmem:[%s3874_s22 + $0x28] sm:$0xff]  ;;  %v1758_v50 = vld [vmem:[%s3874_s22 + $0x30] sm:$0xff] }
 0x13c   :  { %3330 = vmatprep.subr.bf16.mxu1 %v3490_v60  ;;  %v898_v57 = vmax.f32 %v848_v53, 0.0  ;;  %v3373_v49 = vpack.c.bf16 %v1757_v48, %v1756_v47  ;;  %v1339_v48 = vld [vmem:[%s3749_s11 + $0xb0] sm:$0xff] }
 0x13d   :  { %v897_v58 = vmax.f32 %v843_v56, 0.0  ;;  %v2831_v59 = vpop.f32.mrb[12].mxu0 }
 0x13e   :  { %2942 = vmatmul.mubr.msk.f32.vlgmr.msra.gmra.mrb[20].mxu1 %vm1607_vm5, %v1606_v52  ;;  %v858_v61 = vadd.f32 %v2831_v59, %v3798_v13  ;;  %v852_v62 = vpop.f32.mrb[13].mxu0  ;;  %v3376_v52 = vpack.c.bf16 %v1759_v51, %v1758_v50  ;;  %v1126_v59 = vld [vmem:[%s3749_s11 + $0x18] sm:$0xff] }
 0x13f   :  { %3332 = vmatpush3.bf16.msra.mxu1 %v3331_v35  ;;  %2976 = vmatprep.mubr.msk.f32.mxu1 %vm3492_vm0, %v3493_v9  ;;  %v3340_v63 = vpack.c.bf16 %v898_v57, %v897_v58  ;;  %v853_v0 = vadd.f32 %v3798_v13, %v852_v62  ;;  %v1123_v35 = vld [vmem:[%s3749_s11] sm:$0xff]  ;;  %v1125_v58 = vld [vmem:[%s3749_s11 + $0x10] sm:$0xff] }
 0x140   :  { %3333 = vmatprep.subr.bf16.mxu1 %v3490_v60  ;;  %v900_v1 = vmax.f32 %v858_v61, 0.0  ;;  %v3292_v37 = vpack.c.bf16 %v1124_v36, %v1123_v35  ;;  %v2002_v35 = vld [vmem:[%s3874_s22 + $0xf0] sm:$0xff]  ;;  %v2003_v36 = vld [vmem:[%s3874_s22 + $0xf8] sm:$0xff] }
 0x141   :  { %v899_v2 = vmax.f32 %v853_v0, 0.0  ;;  %v2834_v3 = vpop.f32.mrb[14].mxu0  ;;  %v3296_v0 = vpack.c.bf16 %v1126_v59, %v1125_v58  ;;  %v3400_v39 = vpack.c.bf16 %v2003_v36, %v2002_v35  ;;  %v1915_v59 = vld [vmem:[%s3874_s22 + $0x88] sm:$0xff] }
 0x142   :  { %v868_v4 = vadd.f32 %v2834_v3, %v3798_v13  ;;  %v862_v5 = vpop.f32.mrb[15].mxu0  ;;  %3293 = vmatprep.subr.bf16.mxu0 %v3292_v37  ;;  %v1128_v3 = vld [vmem:[%s3749_s11 + $0x28] sm:$0xff] }
 0x143   :  { %3335 = vmatpush3.bf16.msra.mxu1 %v3334_v46  ;;  %v3343_v6 = vpack.c.bf16 %v900_v1, %v899_v2  ;;  %v863_v7 = vadd.f32 %v3798_v13, %v862_v5  ;;  %v3370_v46 = vpack.c.bf16 %v1755_v45, %v1754_v44  ;;  %v1127_v1 = vld [vmem:[%s3749_s11 + $0x20] sm:$0xff]  ;;  %v1997_v5 = vld [vmem:[%s3874_s22 + $0xc8] sm:$0xff] }
 0x144   :  { %3336 = vmatprep.subr.bf16.mxu1 %v3490_v60  ;;  %v902_v8 = vmax.f32 %v868_v4, 0.0  ;;  %v1996_v4 = vld [vmem:[%s3874_s22 + $0xc0] sm:$0xff] }
 0x145   :  { %v901_v10 = vmax.f32 %v863_v7, 0.0  ;;  %v2837_v11 = vpop.f32.mrb[16].mxu0 }
 0x146   :  { %v878_v12 = vadd.f32 %v2837_v11, %v3798_v13  ;;  %v872_v14 = vpop.f32.mrb[17].mxu0  ;;  %v1129_v11 = vld [vmem:[%s3749_s11 + $0x30] sm:$0xff] }
 0x147   :  { %3338 = vmatpush3.bf16.msra.mxu1 %v3337_v55  ;;  %v3346_v15 = vpack.c.bf16 %v902_v8, %v901_v10  ;;  %v873_v16 = vadd.f32 %v3798_v13, %v872_v14  ;;  %v3300_v10 = vpack.c.bf16 %v1128_v3, %v1127_v1  ;;  %v1130_v14 = vld [vmem:[%s3749_s11 + $0x38] sm:$0xff]  ;;  %v1918_v3 = vld [vmem:[%s3874_s22 + $0xa0] sm:$0xff] }
 0x148   :  { %3339 = vmatprep.subr.bf16.mxu1 %v3490_v60  ;;  %v904_v17 = vmax.f32 %v878_v12, 0.0  ;;  %v3391_v12 = vpack.c.bf16 %v1997_v5, %v1996_v4  ;;  %v1919_v4 = vld [vmem:[%s3874_s22 + $0xa8] sm:$0xff] }
 0x149   :  { %v903_v18 = vmax.f32 %v873_v16, 0.0  ;;  %v2840_v19 = vpop.f32.mrb[18].mxu0  ;;  %v1998_v16 = vld [vmem:[%s3874_s22 + $0xd0] sm:$0xff]  ;;  %v3385_v5 = vpack.c.bf16 %v1919_v4, %v1918_v3  ;;  %v2186_v3 = vld [vmem:[%s4038_s29 + $0x38] sm:$0xff] }
 0x14a   :  { %v888_v21 = vadd.f32 %v2840_v19, %v3798_v13  ;;  %v882_v22 = vpop.f32.mrb[19].mxu0  ;;  %v3304_v19 = vpack.c.bf16 %v1130_v14, %v1129_v11 }
 0x14b   :  { %3341 = vmatpush3.bf16.msra.mxu1 %v3340_v63  ;;  %v3349_v24 = vpack.c.bf16 %v904_v17, %v903_v18  ;;  %v883_v26 = vadd.f32 %v3798_v13, %v882_v22  ;;  %v1681_v13 = vld [vmem:[%s2377_s18] sm:$0x3]  ;;  %v1999_v17 = vld [vmem:[%s3874_s22 + $0xd8] sm:$0xff] }
 0x14c   :  { %3342 = vmatprep.subr.bf16.mxu1 %v3490_v60  ;;  %v906_v27 = vmax.f32 %v888_v21, 0.0  ;;  %v1333_v21 = vld [vmem:[%s3749_s11 + $0x80] sm:$0xff]  ;;  %v3394_v22 = vpack.c.bf16 %v1999_v17, %v1998_v16 }
 0x14d   :  { %v905_v29 = vmax.f32 %v883_v26, 0.0 }
 0x14f   :  { %3344 = vmatpush3.bf16.msra.mxu1 %v3343_v6  ;;  %v3352_v30 = vpack.c.bf16 %v906_v27, %v905_v29  ;;  %v2000_v27 = vld [vmem:[%s3874_s22 + $0xe0] sm:$0xff]  ;;  %v2001_v29 = vld [vmem:[%s3874_s22 + $0xe8] sm:$0xff] }
 0x150   :  { %3345 = vmatprep.subr.bf16.mxu1 %v3490_v60  ;;  %v3397_v32 = vpack.c.bf16 %v2001_v29, %v2000_v27 }
 0x153   :  { %3347 = vmatpush3.bf16.msra.mxu1 %v3346_v15 }
 0x154   :  { %3348 = vmatprep.subr.bf16.mxu1 %v3490_v60 }
 0x157   :  { %3350 = vmatpush3.bf16.msra.mxu1 %v3349_v24  ;;  %v1334_v24 = vld [vmem:[%s3749_s11 + $0x88] sm:$0xff] }
 0x158   :  { %3351 = vmatprep.subr.bf16.mxu1 %v3490_v60 }
 0x15b   :  { %3353 = vmatpush3.bf16.msra.mxu1 %v3352_v30 }
 0x15c   :  { %3366 = vmatprep.subr.bf16.mxu1 %v3490_v60 }
 0x15e   :  { %2977 = vmatmul.mubr.f32.vlgmr.msra.gmra.mrb[22].mxu1 %v1681_v13  ;;  %v3308_v13 = vpack.c.bf16 %v1334_v24, %v1333_v21 }
 0x15f   :  { %3014 = vmatprep.mubr.msk.f32.mxu1 %vm3492_vm0, %v3493_v9  ;;  %3368 = vmatpush3.bf16.msra.mxu1 %v3367_v42  ;;  %v1338_v42 = vld [vmem:[%s3749_s11 + $0xa8] sm:$0xff] }
 0x160   :  { %3369 = vmatprep.subr.bf16.mxu1 %v3490_v60 }
 0x163   :  { %3371 = vmatpush3.bf16.msra.mxu1 %v3370_v46  ;;  %v3316_v46 = vpack.c.bf16 %v1338_v42, %v1337_v41  ;;  %v2179_v41 = vld [vmem:[%s4038_s29] sm:$0xff]  ;;  %v2180_v42 = vld [vmem:[%s4038_s29 + $0x8] sm:$0xff] }
 0x164   :  { %3372 = vmatprep.subr.bf16.mxu1 %v3490_v60 }
 0x167   :  { %3374 = vmatpush3.bf16.msra.mxu1 %v3373_v49  ;;  %v1340_v49 = vld [vmem:[%s3749_s11 + $0xb8] sm:$0xff]  ;;  %s3509_s11 = smov 22  }
 0x168   :  { %3375 = vmatprep.subr.bf16.mxu1 %v3490_v60  ;;  %v3320_v50 = vpack.c.bf16 %v1340_v49, %v1339_v48  ;;  %s4010_s25 = sld [smem:[%s4081_s0 + %s3509_s11]]   ;;  %v2183_v48 = vld [vmem:[%s4038_s29 + $0x20] sm:$0xff]  ;;  %v2184_v49 = vld [vmem:[%s4038_s29 + $0x28] sm:$0xff] }
 0x16b   :  { %3377 = vmatpush3.bf16.msra.mxu1 %v3376_v52 }
 0x16c   :  { %3390 = vmatprep.subr.bf16.mxu1 %v3490_v60 }
 0x16e   :  { %v2087_v11 = vld [vmem:[%s4010_s25 + $0x8] sm:$0xff]  ;;  %v2088_v14 = vld [vmem:[%s4010_s25 + $0x10] sm:$0xff]  ;;  %v2090_v17 = vld [vmem:[%s4010_s25 + $0x20] sm:$0xff] }
 0x16f   :  { %v2092_v21 = vld [vmem:[%s4010_s25 + $0x30] sm:$0xff]  ;;  %v2094_v24 = vld [vmem:[%s4010_s25 + $0x40] sm:$0xff]  ;;  %v2095_v27 = vld [vmem:[%s4010_s25 + $0x48] sm:$0xff] }
 0x170   :  { %v3415_v29 = vpack.c.bf16 %v2095_v27, %v2094_v24  ;;  %v2100_v36 = vld [vmem:[%s4010_s25 + $0x70] sm:$0xff] }
 0x1dc   :  { %v3888_v53 = vpop.f32.mrb[8].mxu1 }
 0x1dd   :  { %v994_v54 = vpop.f32.mrb[9].mxu1 }
 0x1e0   :  { %v3890_v55 = vpop.f32.mrb[10].mxu1 }
 0x1e1   :  { %v3892_v56 = vpop.f32.mrb[11].mxu1 }
 0x1fc   :  { %v2853_v57 = vpop.f32.mrb[12].mxu1 }
 0x1fd   :  { %v3897_v61 = vmul.f32 %v2853_v57, %v3888_v53  ;;  %v1096_v62 = vpop.f32.mrb[13].mxu1  ;;  %v1765_v57 = vld [vmem:[%s3874_s22 + $0x68] sm:$0xff] }
 0x1fe   :  { %v3899_v63 = vmul.f32 %v1096_v62, %v994_v54  ;;  %v1916_v62 = vld [vmem:[%s3874_s22 + $0x90] sm:$0xff] }
 0x1ff   :  { %v1120_v52 = vmul.f32 %v3897_v61, %v664_v25  ;;  %v1764_v25 = vld [vmem:[%s3874_s22 + $0x60] sm:$0xff] }
 0x200   :  { %v2856_v2 = vpop.f32.mrb[14].mxu1  ;;  %2873 = vmatprep.mubr.msk.f32.mxu0 %vm406_vm1, %v3899_v63  ;;  %v1119_v47 = vmul.f32 %v3899_v63, %v663_v28  ;;  %v1761_v28 = vld [vmem:[%s3874_s22 + $0x48] sm:$0xff]  ;;  %v3361_v38 = vpack.c.bf16 %v1765_v57, %v1764_v25  ;;  %v1917_v63 = vld [vmem:[%s3874_s22 + $0x98] sm:$0xff] }
 0x201   :  { %v3908_v6 = vmul.f32 %v2856_v2, %v3890_v55  ;;  %v1106_v7 = vpop.f32.mrb[15].mxu1  ;;  %2874 = vmatmul.mubr.msk.f32.vlgmr.msra.gmra.mrb[20].mxu0 %vm406_vm1, %v3897_v61  ;;  %v3355_v51 = vpack.c.bf16 %v1761_v28, %v1760_v23  ;;  %v3382_v2 = vpack.c.bf16 %v1917_v63, %v1916_v62  ;;  %v2441_v63 = vld [vmem:[%s2381_s12] ss:$0 sm:$0xff] }
 0x202   :  { %v3913_v8 = vmul.f32 %v1106_v7, %v3892_v56  ;;  %3295 = vmatpush3.bf16.msra.mxu0 %v3292_v37  ;;  %v3312_v37 = vpack.c.bf16 %v1336_v34, %v1335_v31  ;;  %v1921_v7 = vld [vmem:[%s3874_s22 + $0xb8] sm:$0xff]  ;;  %v2099_v34 = vld [vmem:[%s4010_s25 + $0x68] sm:$0xff] }
 0x203   :  { %3297 = vmatprep.subr.bf16.mxu0 %v3296_v0  ;;  %v1122_v20 = vmul.f32 %v3908_v6, %v666_v40  ;;  %v1914_v40 = vld [vmem:[%s3874_s22 + $0x80] sm:$0xff] }
 0x204   :  { %2876 = vmatprep.mubr.msk.f32.mxu0 %vm406_vm1, %v3913_v8  ;;  %v1528_v15 = vpop.f32.mrb[16].mxu1  ;;  %v3379_v61 = vpack.c.bf16 %v1915_v59, %v1914_v40 }
 0x205   :  { %2877 = vmatmul.mubr.msk.f32.gmra.mrb[22].mxu0 %vm406_vm1, %v3908_v6  ;;  %v2927_v18 = vpop.f32.mrb[17].mxu1  ;;  %3015 = vmatmul.mubr.msk.f32.vlgmr.msra.gmra.mrb[24].mxu1 %vm406_vm1, %v1528_v15  ;;  %v1920_v6 = vld [vmem:[%s3874_s22 + $0xb0] sm:$0xff]  ;;  %v2089_v15 = vld [vmem:[%s4010_s25 + $0x18] sm:$0xff] }
 0x206   :  { %3299 = vmatpush3.bf16.msra.mxu0 %v3296_v0  ;;  %2895 = vmatprep.mubr.msk.f32.mxu0 %vm406_vm1, %v994_v54  ;;  %v1763_v54 = vld [vmem:[%s3874_s22 + $0x58] sm:$0xff]  ;;  %v3406_v16 = vpack.c.bf16 %v2089_v15, %v2088_v14  ;;  %v2091_v18 = vld [vmem:[%s4010_s25 + $0x28] sm:$0xff]  ;;  %v2269_v14 = vld [vmem:[%s2386_s16 + $0x10] sm:$0xff] }
 0x207   :  { %3301 = vmatprep.subr.bf16.mxu0 %v3300_v10  ;;  %3392 = vmatpush3.bf16.msra.mxu1 %v3391_v12  ;;  %v2270_v15 = vld [vmem:[%s2386_s16 + $0x18] sm:$0xff] }
 0x208   :  { %v3927_v26 = vpop.f32.mrb[18].mxu1  ;;  %3393 = vmatprep.subr.bf16.mxu1 %v3490_v60  ;;  %3052 = vmatprep.mubr.msk.f32.mxu1 %vm3492_vm0, %v3493_v9 }
 0x209   :  { %v2932_v30 = vpop.f32.mrb[19].mxu1 }
 0x20a   :  { %3303 = vmatpush3.bf16.msra.mxu0 %v3300_v10  ;;  %v2086_v10 = vld [vmem:[%s4010_s25] sm:$0xff]  ;;  %v2096_v30 = vld [vmem:[%s4010_s25 + $0x50] sm:$0xff] }
 0x20b   :  { %3305 = vmatprep.subr.bf16.mxu0 %v3304_v19  ;;  %3395 = vmatpush3.bf16.msra.mxu1 %v3394_v22  ;;  %v3403_v12 = vpack.c.bf16 %v2087_v11, %v2086_v10  ;;  %v2093_v22 = vld [vmem:[%s4010_s25 + $0x38] sm:$0xff] }
 0x20c   :  { %3396 = vmatprep.subr.bf16.mxu1 %v3490_v60 }
 0x20e   :  { %3307 = vmatpush3.bf16.msra.mxu0 %v3304_v19  ;;  %v3409_v19 = vpack.c.bf16 %v2091_v18, %v2090_v17  ;;  %v2443_v17 = vld [vmem:[%s2385_s23] ss:$0 sm:$0xff] }
 0x20f   :  { %3309 = vmatprep.subr.bf16.mxu0 %v3308_v13  ;;  %3398 = vmatpush3.bf16.msra.mxu1 %v3397_v32  ;;  %v2098_v32 = vld [vmem:[%s4010_s25 + $0x60] sm:$0xff] }
 0x210   :  { %3399 = vmatprep.subr.bf16.mxu1 %v3490_v60  ;;  %v3421_v35 = vpack.c.bf16 %v2099_v34, %v2098_v32 }
 0x211   :  { %v3941_v44 = vpop.f32.mrb[20].mxu1  ;;  %2896 = vmatmul.mubr.msk.f32.vlgmr.msra.gmra.mrb[20].mxu0 %vm406_vm1, %v3888_v53  ;;  %v1762_v53 = vld [vmem:[%s3874_s22 + $0x50] sm:$0xff] }
 0x212   :  { %v2943_v45 = vpop.f32.mrb[21].mxu1  ;;  %2898 = vmatprep.mubr.msk.f32.mxu0 %vm406_vm1, %v3892_v56  ;;  %3311 = vmatpush3.bf16.msra.mxu0 %v3308_v13  ;;  %v3358_v56 = vpack.c.bf16 %v1763_v54, %v1762_v53  ;;  %v2097_v13 = vld [vmem:[%s4010_s25 + $0x58] sm:$0xff] }
 0x213   :  { %3313 = vmatprep.subr.bf16.mxu0 %v3312_v37  ;;  %3401 = vmatpush3.bf16.msra.mxu1 %v3400_v39  ;;  %v3418_v31 = vpack.c.bf16 %v2097_v13, %v2096_v30  ;;  %v3427_v45 = vpack.c.bf16 %v2180_v42, %v2179_v41 }
 0x214   :  { %3426 = vmatprep.subr.bf16.mxu1 %v3490_v60 }
 0x215   :  { %2899 = vmatmul.mubr.msk.f32.gmra.mrb[22].mxu0 %vm406_vm1, %v3890_v55  ;;  %v1121_v55 = vmul.f32 %v3913_v8, %v665_v43  ;;  %v1766_v43 = vld [vmem:[%s3874_s22 + $0x70] sm:$0xff]  ;;  %v3388_v8 = vpack.c.bf16 %v1921_v7, %v1920_v6  ;;  %v2268_v6 = vld [vmem:[%s2386_s16 + $0x8] sm:$0xff]  ;;  %v2442_v7 = vld [vmem:[%s2383_s20] ss:$0 sm:$0xff] }
 0x216   :  { %3315 = vmatpush3.bf16.msra.mxu0 %v3312_v37  ;;  %2917 = vmatprep.mubr.msk.f32.mxu0 %vm406_vm1, %v1119_v47  ;;  %v3364_v58 = vpack.c.bf16 %v1767_v33, %v1766_v43  ;;  %v2101_v37 = vld [vmem:[%s4010_s25 + $0x78] sm:$0xff] }
 0x217   :  { %3317 = vmatprep.subr.bf16.mxu0 %v3316_v46  ;;  %v3424_v39 = vpack.c.bf16 %v2101_v37, %v2100_v36 }
 0x21a   :  { %3319 = vmatpush3.bf16.msra.mxu0 %v3316_v46  ;;  %v2182_v46 = vld [vmem:[%s4038_s29 + $0x18] sm:$0xff] }
 0x21b   :  { %3321 = vmatprep.subr.bf16.mxu0 %v3320_v50 }
 0x21e   :  { %3323 = vmatpush3.bf16.msra.mxu0 %v3320_v50  ;;  %v3433_v50 = vpack.c.bf16 %v2184_v49, %v2183_v48 }
 0x21f   :  { %3354 = vmatprep.subr.bf16.mxu0 %v3490_v60 }
 0x221   :  { %2918 = vmatmul.mubr.msk.f32.vlgmr.msra.gmra.mrb[20].mxu0 %vm406_vm1, %v1120_v52 }
 0x222   :  { %2920 = vmatprep.mubr.msk.f32.mxu0 %vm406_vm1, %v1121_v55  ;;  %3356 = vmatpush3.bf16.msra.mxu0 %v3355_v51  ;;  %v2432_v51 = vld [vmem:[%s2379_s3] ss:$0 sm:$0xff] }
 0x223   :  { %3357 = vmatprep.subr.bf16.mxu0 %v3490_v60 }
 0x225   :  { %2921 = vmatmul.mubr.msk.f32.gmra.mrb[22].mxu0 %vm406_vm1, %v1122_v20 }
 0x226   :  { %3359 = vmatpush3.bf16.msra.mxu0 %v3358_v56  ;;  %2995 = vmatprep.mubr.msk.f32.mxu0 %vm3492_vm0, %v3493_v9 }
 0x227   :  { %3360 = vmatprep.subr.bf16.mxu0 %v3490_v60 }
 0x22a   :  { %3362 = vmatpush3.bf16.msra.mxu0 %v3361_v38 }
 0x22b   :  { %3363 = vmatprep.subr.bf16.mxu0 %v3490_v60 }
 0x22e   :  { %3365 = vmatpush3.bf16.msra.mxu0 %v3364_v58 }
 0x22f   :  { %3378 = vmatprep.subr.bf16.mxu0 %v3490_v60 }
 0x231   :  { %v1748_v0 = vpop.f32.mrb[22].mxu1  ;;  %2996 = vmatmul.mubr.msk.f32.vlgmr.msra.gmra.mrb[24].mxu0 %vm406_vm1, %v3927_v26  ;;  %v3412_v26 = vpack.c.bf16 %v2093_v22, %v2092_v21 }
 0x232   :  { %3053 = vmatmul.mubr.msk.f32.vlgmr.msra.gmra.mrb[26].mxu1 %vm406_vm1, %v1748_v0  ;;  %v2978_v1 = vpop.f32.mrb[23].mxu1  ;;  %3380 = vmatpush3.bf16.msra.mxu0 %v3379_v61 }
 0x233   :  { %3033 = vmatprep.mubr.msk.f32.mxu0 %vm3492_vm0, %v3493_v9  ;;  %3381 = vmatprep.subr.bf16.mxu0 %v3490_v60 }
 0x234   :  { %3106 = vmatprep.mubr.msk.f32.mxu1 %vm3492_vm0, %v3493_v9  ;;  %3428 = vmatpush3.bf16.msra.mxu1 %v3427_v45 }
 0x235   :  { %3429 = vmatprep.subr.bf16.mxu1 %v3490_v60 }
 0x236   :  { %3383 = vmatpush3.bf16.msra.mxu0 %v3382_v2  ;;  %v2185_v2 = vld [vmem:[%s4038_s29 + $0x30] sm:$0xff] }
 0x237   :  { %3384 = vmatprep.subr.bf16.mxu0 %v3490_v60  ;;  %v3436_v4 = vpack.c.bf16 %v2186_v3, %v2185_v2 }
 0x23a   :  { %3386 = vmatpush3.bf16.msra.mxu0 %v3385_v5  ;;  %v2267_v5 = vld [vmem:[%s2386_s16] sm:$0xff] }
 0x23b   :  { %3387 = vmatprep.subr.bf16.mxu0 %v3490_v60  ;;  %v3439_v10 = vpack.c.bf16 %v2268_v6, %v2267_v5 }
 0x23e   :  { %3389 = vmatpush3.bf16.msra.mxu0 %v3388_v8 }
 0x23f   :  { %3402 = vmatprep.subr.bf16.mxu0 %v3490_v60 }
 0x241   :  { %3034 = vmatmul.mubr.msk.f32.vlgmr.msra.gmra.mrb[26].mxu0 %vm406_vm1, %v3941_v44  ;;  %v2181_v44 = vld [vmem:[%s4038_s29 + $0x10] sm:$0xff] }
 0x242   :  { %3087 = vmatprep.mubr.msk.f32.mxu0 %vm3492_vm0, %v3493_v9  ;;  %3404 = vmatpush3.bf16.msra.mxu0 %v3403_v12  ;;  %v3430_v47 = vpack.c.bf16 %v2182_v46, %v2181_v44 }
 0x243   :  { %3405 = vmatprep.subr.bf16.mxu0 %v3490_v60 }
 0x244   :  { %3431 = vmatpush3.bf16.msra.mxu1 %v3430_v47 }
 0x245   :  { %3432 = vmatprep.subr.bf16.mxu1 %v3490_v60 }
 0x246   :  { %3407 = vmatpush3.bf16.msra.mxu0 %v3406_v16  ;;  %v3442_v16 = vpack.c.bf16 %v2270_v15, %v2269_v14 }
 0x247   :  { %3408 = vmatprep.subr.bf16.mxu0 %v3490_v60 }
 0x248   :  { %3434 = vmatpush3.bf16.msra.mxu1 %v3433_v50 }
 0x249   :  { %3435 = vmatprep.subr.bf16.mxu1 %v3490_v60 }
 0x24a   :  { %3410 = vmatpush3.bf16.msra.mxu0 %v3409_v19 }
 0x24b   :  { %3411 = vmatprep.subr.bf16.mxu0 %v3490_v60 }
 0x24c   :  { %3437 = vmatpush3.bf16.msra.mxu1 %v3436_v4 }
 0x24d   :  { %3438 = vmatprep.subr.bf16.mxu1 %v3490_v60 }
 0x24e   :  { %3413 = vmatpush3.bf16.msra.mxu0 %v3412_v26 }
 0x24f   :  { %3414 = vmatprep.subr.bf16.mxu0 %v3490_v60 }
 0x252   :  { %3416 = vmatpush3.bf16.msra.mxu0 %v3415_v29 }
 0x253   :  { %3417 = vmatprep.subr.bf16.mxu0 %v3490_v60 }
 0x256   :  { %3419 = vmatpush3.bf16.msra.mxu0 %v3418_v31 }
 0x257   :  { %3420 = vmatprep.subr.bf16.mxu0 %v3490_v60 }
 0x25a   :  { %3422 = vmatpush3.bf16.msra.mxu0 %v3421_v35 }
 0x25b   :  { %3423 = vmatprep.subr.bf16.mxu0 %v3490_v60 }
 0x25e   :  { %3425 = vmatpush3.bf16.msra.mxu0 %v3424_v39 }
 0x2d8   :  { %v1910_v23 = vpop.f32.mrb[24].mxu1 }
 0x2d9   :  { %v3016_v28 = vpop.f32.mrb[25].mxu1 }
 0x2f4   :  { %v2919_v52 = vpop.f32.mrb[20].mxu0 }
 0x2f5   :  { %v1450_v53 = vadd.f32 %v2919_v52, %v2432_v51  ;;  %v1419_v54 = vpop.f32.mrb[21].mxu0 }
 0x2f6   :  { %v1449_v55 = vadd.f32 %v2432_v51, %v1419_v54 }
 0x2f7   :  { %1455 = vst.msk [vmem:[%s2388_s7 + $0x8] sm:$0xff] %vm1453_vm6, %v1450_v53 }
 0x2f8   :  { %1454 = vst.msk [vmem:[%s2388_s7] sm:$0xff] %vm1453_vm6, %v1449_v55  ;;  %v2922_v56 = vpop.f32.mrb[22].mxu0 }
 0x2f9   :  { %v1452_v20 = vadd.f32 %v2922_v56, %v2432_v51  ;;  %v1429_v25 = vpop.f32.mrb[23].mxu0 }
 0x2fa   :  { %v1451_v57 = vadd.f32 %v2432_v51, %v1429_v25 }
 0x2fb   :  { %1457 = vst.msk [vmem:[%s2388_s7 + $0x18] sm:$0xff] %vm1453_vm6, %v1452_v20 }
 0x2fc   :  { %1456 = vst.msk [vmem:[%s2388_s7 + $0x10] sm:$0xff] %vm1453_vm6, %v1451_v57 }
 0x304   :  { %v1837_v38 = vpop.f32.mrb[24].mxu0 }
 0x305   :  { %v2073_v43 = vpop.f32.mrb[26].mxu1  ;;  %v1911_v33 = vadd.f32 %v1910_v23, %v1837_v38  ;;  %v2997_v58 = vpop.f32.mrb[25].mxu0 }
 0x306   :  { %v3054_v40 = vpop.f32.mrb[27].mxu1 }
 0x314   :  { %v1991_v59 = vpop.f32.mrb[26].mxu0 }
 0x315   :  { %v1995_v61 = vadd.f32 %v1991_v59, %v1911_v33  ;;  %v3035_v62 = vpop.f32.mrb[27].mxu0 }
 0x317   :  { %v2077_v0 = vadd.f32 %v2073_v43, %v1995_v61 }
 0x319   :  { %v2085_v1 = vadd.f32 %v2441_v63, %v2077_v0 }
 0x31b   :  { %3088 = vmatmul.mubr.f32.vlgmr.msra.gmra.mrb[28].mxu0 %v2085_v1 }
 0x3ee   :  { %v2175_v8 = vpop.f32.mrb[28].mxu0 }
 0x3ef   :  { %v2176_v11 = vadd.f32 %v2442_v7, %v2175_v8  ;;  %v3089_v12 = vpop.f32.mrb[29].mxu0 }
 0x3f1   :  { %3107 = vmatmul.mubr.msk.f32.vlgmr.msra.gmra.mrb[28].mxu1 %vm406_vm1, %v2176_v11 }
 0x3f2   :  { %3440 = vmatpush3.bf16.msra.mxu1 %v3439_v10  ;;  %3117 = vmatprep.mubr.msk.f32.mxu1 %vm3492_vm0, %v3493_v9 }
 0x3f3   :  { %3441 = vmatprep.subr.bf16.mxu1 %v3490_v60  ;;  %v2445_v60 = vld [vmem:[%s2387_s27] ss:$0 sm:$0xff] }
 0x3f6   :  { %3443 = vmatpush3.bf16.msra.mxu1 %v3442_v16 }
 0x4c4   :  { %v2263_v18 = vpop.f32.mrb[28].mxu1 }
 0x4c5   :  { %v2264_v19 = vadd.f32 %v2443_v17, %v2263_v18  ;;  %v3108_v21 = vpop.f32.mrb[29].mxu1 }
 0x4c7   :  { %3118 = vmatmul.mubr.msk.f32.vlgmr.msra.gmra.mrb[30].mxu1 %vm1607_vm5, %v2264_v19 }
 0x59a   :  { %v2347_v9 = vpop.f32.mrb[30].mxu1 }
 0x59b   :  { %v2348_v22 = vadd.f32 %v2445_v60, %v2347_v9  ;;  %v3119_v24 = vpop.f32.mrb[31].mxu1 }
 0x59d   :  { %2352 = vst.msk [vmem:[%s2389_s1] sm:$0x3] %vm2351_vm7, %v2348_v22 }

</bundles_post_ra>
